<compile_context>
chip_gen: v7x
topology: tpu7x:2x2x1
jax: 0.10.0
libtpu: 0.0.40
codegen_flags: <defaults>
</compile_context>

<pallas_src>
import functools

import jax
import jax.numpy as jnp
from jax.experimental import pallas as pl
from jax.experimental.pallas import tpu as pltpu

LANE = 128


def _round_up(v, m):
    return ((v + m - 1) // m) * m


def _pad2(a, rows, cols, dtype=None):
    out = jnp.zeros((rows, cols), a.dtype if dtype is None else dtype)
    return out.at[: a.shape[0], : a.shape[1]].set(a.astype(out.dtype))


def _vmem_cap_bytes():
    phys = 64 * 1024 * 1024  # conservative fallback (v7x)
    try:
        phys = int(pltpu.get_tpu_info().vmem_capacity_bytes)
    except Exception:
        pass
    # leave headroom for compiler scratch / spills (v7x has only 64 MiB per TC)
    return max(32 * 1024 * 1024, phys - 16 * 1024 * 1024)


def _vmem_limit(need_bytes):
    return int(min(_vmem_cap_bytes(),
                   max(16 * 1024 * 1024, need_bytes + 4 * 1024 * 1024)))


def _default_tile_n():
    try:
        kind = jax.devices()[0].device_kind.lower()
    except Exception:
        return 128
    if "v6" in kind or "v7" in kind or "7x" in kind:
        return 256  # 2x256^2 MXU: 256-row output tiles fill the systolic array
    return 128


# ----------------------------------------------------------------------------
# Row-tiled kernels (large-graph path). adjacency tile arrives as int8 and is
# upcast to bf16 in-kernel; all matmuls are bf16 x bf16 -> f32 on the MXU.
# ----------------------------------------------------------------------------
def _sage_kernel(adj_ref, invdeg_ref, hagg_ref, hself_ref, wl_ref, wr_ref,
                 b_ref, out_ref):
    adj = adj_ref[...].astype(jnp.bfloat16)                    # i8 -> bf16 (VPU)
    agg = jnp.dot(adj, hagg_ref[...], preferred_element_type=jnp.float32)
    agg = (invdeg_ref[...] * agg).astype(jnp.bfloat16)         # mean aggregation
    out = (jnp.dot(agg, wl_ref[...], preferred_element_type=jnp.float32)
           + jnp.dot(hself_ref[...], wr_ref[...], preferred_element_type=jnp.float32)
           + b_ref[...])
    out_ref[...] = jnp.maximum(out, 0.0).astype(out_ref.dtype)


def _gcn_kernel(adj_ref, d_ref, dh_ref, hself_ref, w_ref, b_ref, out_ref):
    adj = adj_ref[...].astype(jnp.bfloat16)
    agg = jnp.dot(adj, dh_ref[...], preferred_element_type=jnp.float32)
    d_t = d_ref[...]
    z = (d_t * agg
         + (d_t * d_t) * hself_ref[...].astype(jnp.float32)).astype(jnp.bfloat16)
    out = jnp.dot(z, w_ref[...], preferred_element_type=jnp.float32) + b_ref[...]
    out_ref[...] = jnp.maximum(out, 0.0).astype(out_ref.dtype)


def _gcn_fc_kernel(adj_ref, d_ref, dh_ref, hself_ref, w_ref, b_ref,
                   wfc_ref, bfc_ref, out_ref):
    adj = adj_ref[...].astype(jnp.bfloat16)
    agg = jnp.dot(adj, dh_ref[...], preferred_element_type=jnp.float32)
    d_t = d_ref[...]
    z = (d_t * agg
         + (d_t * d_t) * hself_ref[...].astype(jnp.float32)).astype(jnp.bfloat16)
    g = jnp.maximum(
        jnp.dot(z, w_ref[...], preferred_element_type=jnp.float32) + b_ref[...], 0.0)
    out_ref[...] = (jnp.dot(g.astype(jnp.bfloat16), wfc_ref[...],
                            preferred_element_type=jnp.float32) + bfc_ref[...])


# ----------------------------------------------------------------------------
# Fully fused kernel (small-graph path): adjacency resident in VMEM once,
# all four conv layers + fc computed in a single pallas_call.
# ----------------------------------------------------------------------------
def _fused_kernel(adj_ref, invdeg_ref, d_ref, x_ref,
                  wl1_ref, wr1_ref, b1_ref, wl2_ref, wr2_ref, b2_ref,
                  wg1_ref, bg1_ref, wg2_ref, bg2_ref, wfc_ref, bfc_ref,
                  out_ref):
    adj = adj_ref[...]            # (Np, Np) bf16, loaded once for all layers
    invd = invdeg_ref[...]        # (Np, 1) f32
    d = d_ref[...]                # (Np, 1) f32

    def sage(h_bf, wl, wr, b):
        agg = jnp.dot(adj, h_bf, preferred_element_type=jnp.float32)
        agg = (invd * agg).astype(jnp.bfloat16)
        o = (jnp.dot(agg, wl, preferred_element_type=jnp.float32)
             + jnp.dot(h_bf, wr, preferred_element_type=jnp.float32) + b)
        return jnp.maximum(o, 0.0)

    def gcn(h_f32, w, b):
        dh = (d * h_f32).astype(jnp.bfloat16)
        agg = jnp.dot(adj, dh, preferred_element_type=jnp.float32)
        z = (d * agg + (d * d) * h_f32).astype(jnp.bfloat16)
        o = jnp.dot(z, w, preferred_element_type=jnp.float32) + b
        return jnp.maximum(o, 0.0)

    h = sage(x_ref[...], wl1_ref[...], wr1_ref[...], b1_ref[...])       # SAGE1
    h = sage(h.astype(jnp.bfloat16), wl2_ref[...], wr2_ref[...], b2_ref[...])
    g = gcn(h, wg1_ref[...], bg1_ref[...])                              # GCN1
    g = gcn(g, wg2_ref[...], bg2_ref[...])                              # GCN2
    out_ref[...] = (jnp.dot(g.astype(jnp.bfloat16), wfc_ref[...],
                            preferred_element_type=jnp.float32) + bfc_ref[...])


# ----------------------------------------------------------------------------
# pallas_call wrappers.
# ----------------------------------------------------------------------------
def _sage_layer(adj, inv_deg, h_full, h_self, wl, wr, b, tile_n, out_dtype):
    np_, c = h_full.shape
    hp = wl.shape[1]
    num_tiles = np_ // tile_n
    need = (2 * tile_n * np_ * 1            # adj int8 tile (double-buffered)
            + tile_n * np_ * 2              # in-kernel bf16 upcast of the tile
            + 2 * np_ * c * 2               # resident bf16 h (counted 2x)
            + 2 * tile_n * c * 2            # bf16 self tile
            + 2 * tile_n * 4                # 1/deg tile
            + 2 * (2 * c * hp * 2 + hp * 4) # weights (bf16) + bias (f32)
            + 2 * tile_n * hp * 2           # out tile (bf16)
            + tile_n * c * 4 + 2 * tile_n * hp * 4)  # f32 temporaries
    return pl.pallas_call(
        _sage_kernel,
        out_shape=jax.ShapeDtypeStruct((np_, hp), out_dtype),
        grid=(num_tiles,),
        in_specs=[
            pl.BlockSpec((tile_n, np_), lambda i: (i, 0)),   # adjacency tile (int8)
            pl.BlockSpec((tile_n, 1), lambda i: (i, 0)),     # 1/deg_in tile
            pl.BlockSpec((np_, c), lambda i: (0, 0)),        # resident bf16 h
            pl.BlockSpec((tile_n, c), lambda i: (i, 0)),     # bf16 self tile
            pl.BlockSpec((c, hp), lambda i: (0, 0)),         # W_l (bf16)
            pl.BlockSpec((c, hp), lambda i: (0, 0)),         # W_r (bf16)
            pl.BlockSpec((1, hp), lambda i: (0, 0)),         # bias (f32)
        ],
        out_specs=pl.BlockSpec((tile_n, hp), lambda i: (i, 0)),
        compiler_params=pltpu.CompilerParams(
            dimension_semantics=("parallel",),
            vmem_limit_bytes=_vmem_limit(need)),
    )(adj, inv_deg, h_full, h_self, wl, wr, b)


def _gcn_layer(adj, d, dh_full, h_self, w, b, tile_n, out_dtype):
    np_, c = dh_full.shape
    hp = w.shape[1]
    num_tiles = np_ // tile_n
    need = (2 * tile_n * np_ * 1 + tile_n * np_ * 2
            + 2 * np_ * c * 2 + 2 * tile_n * c * 2 + 2 * tile_n * 4
            + 2 * (c * hp * 2 + hp * 4)
            + 2 * tile_n * hp * 2
            + 2 * tile_n * c * 4 + 2 * tile_n * hp * 4)
    return pl.pallas_call(
        _gcn_kernel,
        out_shape=jax.ShapeDtypeStruct((np_, hp), out_dtype),
        grid=(num_tiles,),
        in_specs=[
            pl.BlockSpec((tile_n, np_), lambda i: (i, 0)),
            pl.BlockSpec((tile_n, 1), lambda i: (i, 0)),     # d row tile
            pl.BlockSpec((np_, c), lambda i: (0, 0)),        # resident bf16 d*h
            pl.BlockSpec((tile_n, c), lambda i: (i, 0)),     # bf16 self tile
            pl.BlockSpec((c, hp), lambda i: (0, 0)),
            pl.BlockSpec((1, hp), lambda i: (0, 0)),
        ],
        out_specs=pl.BlockSpec((tile_n, hp), lambda i: (i, 0)),
        compiler_params=pltpu.CompilerParams(
            dimension_semantics=("parallel",),
            vmem_limit_bytes=_vmem_limit(need)),
    )(adj, d, dh_full, h_self, w, b)


def _gcn_fc_layer(adj, d, dh_full, h_self, w, b, wfc, bfc, tile_n):
    np_, c = dh_full.shape
    hp = w.shape[1]
    op = wfc.shape[1]
    num_tiles = np_ // tile_n
    need = (2 * tile_n * np_ * 1 + tile_n * np_ * 2
            + 2 * np_ * c * 2 + 2 * tile_n * c * 2 + 2 * tile_n * 4
            + 2 * (c * hp * 2 + hp * 4 + hp * op * 2 + op * 4)
            + 2 * tile_n * op * 4
            + 2 * tile_n * c * 4 + 2 * tile_n * hp * 4)
    return pl.pallas_call(
        _gcn_fc_kernel,
        out_shape=jax.ShapeDtypeStruct((np_, op), jnp.float32),
        grid=(num_tiles,),
        in_specs=[
            pl.BlockSpec((tile_n, np_), lambda i: (i, 0)),
            pl.BlockSpec((tile_n, 1), lambda i: (i, 0)),
            pl.BlockSpec((np_, c), lambda i: (0, 0)),
            pl.BlockSpec((tile_n, c), lambda i: (i, 0)),
            pl.BlockSpec((c, hp), lambda i: (0, 0)),
            pl.BlockSpec((1, hp), lambda i: (0, 0)),
            pl.BlockSpec((hp, op), lambda i: (0, 0)),
            pl.BlockSpec((1, op), lambda i: (0, 0)),
        ],
        out_specs=pl.BlockSpec((tile_n, op), lambda i: (i, 0)),
        compiler_params=pltpu.CompilerParams(
            dimension_semantics=("parallel",),
            vmem_limit_bytes=_vmem_limit(need)),
    )(adj, d, dh_full, h_self, w, b, wfc, bfc)


def _fused_forward(adj_bf, inv_deg, d, x_bf, weights, vmem_bytes):
    np_ = adj_bf.shape[0]
    coutp = weights[-2].shape[1]
    return pl.pallas_call(
        _fused_kernel,
        out_shape=jax.ShapeDtypeStruct((np_, coutp), jnp.float32),
        compiler_params=pltpu.CompilerParams(vmem_limit_bytes=vmem_bytes),
    )(adj_bf, inv_deg, d, x_bf, *weights)


# ----------------------------------------------------------------------------
# Full forward (sequential GCN_SAGE_HYBRID, parallel=False, inference mode).
# ----------------------------------------------------------------------------
@functools.partial(jax.jit, static_argnames=("tile_n", "allow_fused"))
def gcn_sage_hybrid_forward(x, edge_index, params, tile_n=128, allow_fused=True):
    assert tile_n % LANE == 0
    n, cin = x.shape
    h1 = params["wl1"].shape[1]
    h2 = params["wg1"].shape[1]
    cout = params["wfc"].shape[1]

    cp = _round_up(cin, LANE)
    h1p = _round_up(h1, LANE)
    h2p = _round_up(h2, LANE)
    coutp = _round_up(cout, LANE)
    np_ = _round_up(n, tile_n)

    src, dst = edge_index[0], edge_index[1]

    # O(E) degree scatters (no O(N^2) wrapper passes).
    deg_in = jnp.zeros((np_,), jnp.float32).at[dst].add(1.0).reshape(np_, 1)
    inv_deg = jnp.where(deg_in > 0, 1.0 / deg_in, 0.0)   # SAGE mean aggregation
    d = 1.0 / jnp.sqrt(deg_in + 1.0)                     # GCN sym-norm (self loops)

    # Dense padded adjacency built directly in its int8 storage dtype.
    # A[dst, src] counts edges src -> dst (exact for multiplicity <= 127).
    # TODO(synk): assert max edge multiplicity <= 127 for exotic multigraphs.
    adj_i8 = jnp.zeros((np_, np_), jnp.int8).at[dst, src].add(1)

    bf = jnp.bfloat16
    # Zero-pad to lane-dense (x128) channel dims; weights cast to bf16 once.
    x_bf = _pad2(x, np_, cp, bf)
    wl1 = _pad2(params["wl1"], cp, h1p, bf)
    wr1 = _pad2(params["wr1"], cp, h1p, bf)
    b1 = _pad2(params["b1"], 1, h1p)
    wl2 = _pad2(params["wl2"], h1p, h1p, bf)
    wr2 = _pad2(params["wr2"], h1p, h1p, bf)
    b2 = _pad2(params["b2"], 1, h1p)
    wg1 = _pad2(params["wg1"], h1p, h2p, bf)
    bg1 = _pad2(params["bg1"], 1, h2p)
    wg2 = _pad2(params["wg2"], h2p, h2p, bf)
    bg2 = _pad2(params["bg2"], 1, h2p)
    wfc = _pad2(params["wfc"], h2p, coutp, bf)
    bfc = _pad2(params["bfc"], 1, coutp)

    # Fused single-kernel path when the bf16 adjacency + activations fit VMEM.
    cap = _vmem_cap_bytes()
    hmax = max(cp, h1p, h2p, coutp)
    wbytes = 2 * (2 * cp * h1p + 2 * h1p * h1p + h1p * h2p + h2p * h2p + h2p * coutp)
    fused_need = (2 * np_ * np_ * 2 + 2 * np_ * cp * 2
                  + 10 * np_ * hmax * 4 + 2 * wbytes)
    if allow_fused and np_ <= 2048 and fused_need <= cap:
        adj_bf = adj_i8.astype(bf)
        weights = (wl1, wr1, b1, wl2, wr2, b2, wg1, bg1, wg2, bg2, wfc, bfc)
        out = _fused_forward(adj_bf, inv_deg, d, x_bf, weights,
                             _vmem_limit(fused_need))
        return out[:n, :cout]

    # Row-tiled per-layer path (large graphs). Inter-layer hidden states are
    # bf16; the GCN aggregation operand d*h is precomputed (hoisted) per layer.
    h = _sage_layer(adj_i8, inv_deg, x_bf, x_bf, wl1, wr1, b1, tile_n, bf)
    h = _sage_layer(adj_i8, inv_deg, h, h, wl2, wr2, b2, tile_n, bf)
    dh = (d * h.astype(jnp.float32)).astype(bf)
    h = _gcn_layer(adj_i8, d, dh, h, wg1, bg1, tile_n, bf)
    dh = (d * h.astype(jnp.float32)).astype(bf)
    out = _gcn_fc_layer(adj_i8, d, dh, h, wg2, bg2, wfc, bfc, tile_n)
    return out[:n, :cout]


# ----------------------------------------------------------------------------
# Pure-JAX f32 reference (same math as the PyTorch module in eval mode).
# ----------------------------------------------------------------------------
def reference_forward(x, edge_index, params):
    n = x.shape[0]
    src, dst = edge_index[0], edge_index[1]
    adj = jnp.zeros((n, n), jnp.float32).at[dst, src].add(1.0)
    deg_in = jnp.sum(adj, axis=1, keepdims=True)
    a_mean = adj / jnp.where(deg_in > 0, deg_in, 1.0)
    a_tilde = adj + jnp.eye(n, dtype=jnp.float32)
    deg = jnp.sum(a_tilde, axis=1)
    dd = jnp.where(deg > 0, 1.0 / jnp.sqrt(deg), 0.0)
    a_hat = a_tilde * dd[:, None] * dd[None, :]

    h = jnp.maximum(a_mean @ x @ params["wl1"] + x @ params["wr1"] + params["b1"], 0.0)
    h = jnp.maximum(a_mean @ h @ params["wl2"] + h @ params["wr2"] + params["b2"], 0.0)
    g = jnp.maximum(a_hat @ (h @ params["wg1"]) + params["bg1"], 0.0)
    g = jnp.maximum(a_hat @ (g @ params["wg2"]) + params["bg2"], 0.0)
    return g @ params["wfc"] + params["bfc"]


def init_params(key, in_channels, h1, h2, out_channels):
    ks = jax.random.split(key, 9)
    s = 0.1

    def w(k, i, o):
        return jax.random.normal(k, (i, o), jnp.float32) * s

    return {
        "wl1": w(ks[0], in_channels, h1), "wr1": w(ks[1], in_channels, h1),
        "b1": jnp.zeros((1, h1), jnp.float32),
        "wl2": w(ks[2], h1, h1), "wr2": w(ks[3], h1, h1),
        "b2": jnp.full((1, h1), 0.01, jnp.float32),
        "wg1": w(ks[4], h1, h2), "bg1": jnp.full((1, h2), 0.02, jnp.float32),
        "wg2": w(ks[5], h2, h2), "bg2": jnp.full((1, h2), 0.03, jnp.float32),
        "wfc": w(ks[6], h2, out_channels),
        "bfc": jnp.full((1, out_channels), 0.04, jnp.float32),
    }


if __name__ == "__main__":
    key = jax.random.PRNGKey(0)
    k_x, k_e, k_p = jax.random.split(key, 3)

    N = 200        # graph nodes (padded to the tile size)
    E = 800        # directed edges
    IN_CH = 8
    HID1 = 32
    HID2 = 32
    OUT_CH = 4

    x = jax.random.normal(k_x, (N, IN_CH), jnp.float32)
    edge_index = jax.random.randint(k_e, (2, E), 0, N, jnp.int32)
    params = init_params(k_p, IN_CH, HID1, HID2, OUT_CH)

    ref = jax.block_until_ready(reference_forward(x, edge_index, params))
    tile_n = _default_tile_n()

    out_fused = jax.block_until_ready(
        gcn_sage_hybrid_forward(x, edge_index, params, tile_n=tile_n,
                                allow_fused=True))
    out_tiled = jax.block_until_ready(
        gcn_sage_hybrid_forward(x, edge_index, params, tile_n=tile_n,
                                allow_fused=False))

    for name, out in (("fused", out_fused), ("tiled", out_tiled)):
        assert out.shape == (N, OUT_CH), f"{name}: bad shape {out.shape}"
        max_err = float(jnp.max(jnp.abs(out - ref)))
        assert jnp.allclose(out, ref, atol=3e-2, rtol=3e-2), \
            f"{name} mismatch vs ref: {max_err}"

    print("KERNEL_OK")
</pallas_src>

<mosaic_0001>
module attributes {stable_mosaic.version = 11 : i64} {
  func.func private @main(%arg0: i32) attributes {dimension_semantics = [#tpu.dimension_semantics<core_parallel>], iteration_bounds = array<i64: 2>, tpu.core_type = #tpu.core_type<sc_scalar_subcore>, window_params = []} {
    return
  }
}

module attributes {stable_mosaic.version = 11 : i64} {
  func.func private @main(%arg0: i32) attributes {dimension_semantics = [#tpu.dimension_semantics<core_parallel>], iteration_bounds = array<i64: 2>, tpu.core_type = #tpu.core_type<sc_scalar_subcore>, window_params = []} {
    return
  }
}

module attributes {stable_mosaic.version = 11 : i64} {
  func.func @_fused_kernel(%arg0: memref<256x256xbf16, #tpu.memory_space<vmem>>, %arg1: memref<256x1xf32, #tpu.memory_space<vmem>>, %arg2: memref<256x1xf32, #tpu.memory_space<vmem>>, %arg3: memref<256x128xbf16, #tpu.memory_space<vmem>>, %arg4: memref<128x128xbf16, #tpu.memory_space<vmem>>, %arg5: memref<128x128xbf16, #tpu.memory_space<vmem>>, %arg6: memref<1x128xf32, #tpu.memory_space<vmem>>, %arg7: memref<128x128xbf16, #tpu.memory_space<vmem>>, %arg8: memref<128x128xbf16, #tpu.memory_space<vmem>>, %arg9: memref<1x128xf32, #tpu.memory_space<vmem>>, %arg10: memref<128x128xbf16, #tpu.memory_space<vmem>>, %arg11: memref<1x128xf32, #tpu.memory_space<vmem>>, %arg12: memref<128x128xbf16, #tpu.memory_space<vmem>>, %arg13: memref<1x128xf32, #tpu.memory_space<vmem>>, %arg14: memref<128x128xbf16, #tpu.memory_space<vmem>>, %arg15: memref<1x128xf32, #tpu.memory_space<vmem>>, %arg16: memref<256x128xf32, #tpu.memory_space<vmem>>) attributes {dimension_semantics = [], scalar_prefetch = 0 : i64, scratch_operands = 0 : i64, tpu.core_type = #tpu.core_type<tc>} {
    %c0 = arith.constant 0 : index
    %c0_0 = arith.constant 0 : index
    %0 = vector.load %arg0[%c0, %c0_0] : memref<256x256xbf16, #tpu.memory_space<vmem>>, vector<256x256xbf16>
    %c0_1 = arith.constant 0 : index
    %c0_2 = arith.constant 0 : index
    %1 = vector.load %arg1[%c0_1, %c0_2] : memref<256x1xf32, #tpu.memory_space<vmem>>, vector<256x1xf32>
    %c0_3 = arith.constant 0 : index
    %c0_4 = arith.constant 0 : index
    %2 = vector.load %arg2[%c0_3, %c0_4] : memref<256x1xf32, #tpu.memory_space<vmem>>, vector<256x1xf32>
    %c0_5 = arith.constant 0 : index
    %c0_6 = arith.constant 0 : index
    %3 = vector.load %arg3[%c0_5, %c0_6] : memref<256x128xbf16, #tpu.memory_space<vmem>>, vector<256x128xbf16>
    %c0_7 = arith.constant 0 : index
    %c0_8 = arith.constant 0 : index
    %4 = vector.load %arg4[%c0_7, %c0_8] : memref<128x128xbf16, #tpu.memory_space<vmem>>, vector<128x128xbf16>
    %c0_9 = arith.constant 0 : index
    %c0_10 = arith.constant 0 : index
    %5 = vector.load %arg5[%c0_9, %c0_10] : memref<128x128xbf16, #tpu.memory_space<vmem>>, vector<128x128xbf16>
    %c0_11 = arith.constant 0 : index
    %c0_12 = arith.constant 0 : index
    %6 = vector.load %arg6[%c0_11, %c0_12] : memref<1x128xf32, #tpu.memory_space<vmem>>, vector<1x128xf32>
    %cst = arith.constant dense<0.000000e+00> : vector<256x128xf32>
    %7 = tpu.matmul %0, %3, %cst {dimension_numbers = #tpu.dot_dimension_numbers<[1], [0], [0], [1], [0, 0, 1, 1], [], []>} : vector<256x256xbf16>, vector<256x128xbf16>, vector<256x128xf32> -> vector<256x128xf32>
    %8 = vector.broadcast %1 : vector<256x1xf32> to vector<256x128xf32>
    %9 = arith.mulf %8, %7 : vector<256x128xf32>
    %10 = arith.truncf %9 : vector<256x128xf32> to vector<256x128xbf16>
    %cst_13 = arith.constant dense<0.000000e+00> : vector<256x128xf32>
    %11 = tpu.matmul %10, %4, %cst_13 {dimension_numbers = #tpu.dot_dimension_numbers<[1], [0], [0], [1], [0, 0, 1, 1], [], []>} : vector<256x128xbf16>, vector<128x128xbf16>, vector<256x128xf32> -> vector<256x128xf32>
    %cst_14 = arith.constant dense<0.000000e+00> : vector<256x128xf32>
    %12 = tpu.matmul %3, %5, %cst_14 {dimension_numbers = #tpu.dot_dimension_numbers<[1], [0], [0], [1], [0, 0, 1, 1], [], []>} : vector<256x128xbf16>, vector<128x128xbf16>, vector<256x128xf32> -> vector<256x128xf32>
    %13 = arith.addf %11, %12 : vector<256x128xf32>
    %14 = vector.broadcast %6 : vector<1x128xf32> to vector<256x128xf32>
    %15 = arith.addf %13, %14 : vector<256x128xf32>
    %cst_15 = arith.constant 0.000000e+00 : f32
    %16 = vector.broadcast %cst_15 : f32 to vector<256x128xf32>
    %17 = arith.maximumf %15, %16 : vector<256x128xf32>
    %18 = arith.truncf %17 : vector<256x128xf32> to vector<256x128xbf16>
    %c0_16 = arith.constant 0 : index
    %c0_17 = arith.constant 0 : index
    %19 = vector.load %arg7[%c0_16, %c0_17] : memref<128x128xbf16, #tpu.memory_space<vmem>>, vector<128x128xbf16>
    %c0_18 = arith.constant 0 : index
    %c0_19 = arith.constant 0 : index
    %20 = vector.load %arg8[%c0_18, %c0_19] : memref<128x128xbf16, #tpu.memory_space<vmem>>, vector<128x128xbf16>
    %c0_20 = arith.constant 0 : index
    %c0_21 = arith.constant 0 : index
    %21 = vector.load %arg9[%c0_20, %c0_21] : memref<1x128xf32, #tpu.memory_space<vmem>>, vector<1x128xf32>
    %cst_22 = arith.constant dense<0.000000e+00> : vector<256x128xf32>
    %22 = tpu.matmul %0, %18, %cst_22 {dimension_numbers = #tpu.dot_dimension_numbers<[1], [0], [0], [1], [0, 0, 1, 1], [], []>} : vector<256x256xbf16>, vector<256x128xbf16>, vector<256x128xf32> -> vector<256x128xf32>
    %23 = vector.broadcast %1 : vector<256x1xf32> to vector<256x128xf32>
    %24 = arith.mulf %23, %22 : vector<256x128xf32>
    %25 = arith.truncf %24 : vector<256x128xf32> to vector<256x128xbf16>
    %cst_23 = arith.constant dense<0.000000e+00> : vector<256x128xf32>
    %26 = tpu.matmul %25, %19, %cst_23 {dimension_numbers = #tpu.dot_dimension_numbers<[1], [0], [0], [1], [0, 0, 1, 1], [], []>} : vector<256x128xbf16>, vector<128x128xbf16>, vector<256x128xf32> -> vector<256x128xf32>
    %cst_24 = arith.constant dense<0.000000e+00> : vector<256x128xf32>
    %27 = tpu.matmul %18, %20, %cst_24 {dimension_numbers = #tpu.dot_dimension_numbers<[1], [0], [0], [1], [0, 0, 1, 1], [], []>} : vector<256x128xbf16>, vector<128x128xbf16>, vector<256x128xf32> -> vector<256x128xf32>
    %28 = arith.addf %26, %27 : vector<256x128xf32>
    %29 = vector.broadcast %21 : vector<1x128xf32> to vector<256x128xf32>
    %30 = arith.addf %28, %29 : vector<256x128xf32>
    %cst_25 = arith.constant 0.000000e+00 : f32
    %31 = vector.broadcast %cst_25 : f32 to vector<256x128xf32>
    %32 = arith.maximumf %30, %31 : vector<256x128xf32>
    %c0_26 = arith.constant 0 : index
    %c0_27 = arith.constant 0 : index
    %33 = vector.load %arg10[%c0_26, %c0_27] : memref<128x128xbf16, #tpu.memory_space<vmem>>, vector<128x128xbf16>
    %c0_28 = arith.constant 0 : index
    %c0_29 = arith.constant 0 : index
    %34 = vector.load %arg11[%c0_28, %c0_29] : memref<1x128xf32, #tpu.memory_space<vmem>>, vector<1x128xf32>
    %35 = vector.broadcast %2 : vector<256x1xf32> to vector<256x128xf32>
    %36 = arith.mulf %35, %32 : vector<256x128xf32>
    %37 = arith.truncf %36 : vector<256x128xf32> to vector<256x128xbf16>
    %cst_30 = arith.constant dense<0.000000e+00> : vector<256x128xf32>
    %38 = tpu.matmul %0, %37, %cst_30 {dimension_numbers = #tpu.dot_dimension_numbers<[1], [0], [0], [1], [0, 0, 1, 1], [], []>} : vector<256x256xbf16>, vector<256x128xbf16>, vector<256x128xf32> -> vector<256x128xf32>
    %39 = vector.broadcast %2 : vector<256x1xf32> to vector<256x128xf32>
    %40 = arith.mulf %39, %38 : vector<256x128xf32>
    %41 = arith.mulf %2, %2 : vector<256x1xf32>
    %42 = vector.broadcast %41 : vector<256x1xf32> to vector<256x128xf32>
    %43 = arith.mulf %42, %32 : vector<256x128xf32>
    %44 = arith.addf %40, %43 : vector<256x128xf32>
    %45 = arith.truncf %44 : vector<256x128xf32> to vector<256x128xbf16>
    %cst_31 = arith.constant dense<0.000000e+00> : vector<256x128xf32>
    %46 = tpu.matmul %45, %33, %cst_31 {dimension_numbers = #tpu.dot_dimension_numbers<[1], [0], [0], [1], [0, 0, 1, 1], [], []>} : vector<256x128xbf16>, vector<128x128xbf16>, vector<256x128xf32> -> vector<256x128xf32>
    %47 = vector.broadcast %34 : vector<1x128xf32> to vector<256x128xf32>
    %48 = arith.addf %46, %47 : vector<256x128xf32>
    %cst_32 = arith.constant 0.000000e+00 : f32
    %49 = vector.broadcast %cst_32 : f32 to vector<256x128xf32>
    %50 = arith.maximumf %48, %49 : vector<256x128xf32>
    %c0_33 = arith.constant 0 : index
    %c0_34 = arith.constant 0 : index
    %51 = vector.load %arg12[%c0_33, %c0_34] : memref<128x128xbf16, #tpu.memory_space<vmem>>, vector<128x128xbf16>
    %c0_35 = arith.constant 0 : index
    %c0_36 = arith.constant 0 : index
    %52 = vector.load %arg13[%c0_35, %c0_36] : memref<1x128xf32, #tpu.memory_space<vmem>>, vector<1x128xf32>
    %53 = vector.broadcast %2 : vector<256x1xf32> to vector<256x128xf32>
    %54 = arith.mulf %53, %50 : vector<256x128xf32>
    %55 = arith.truncf %54 : vector<256x128xf32> to vector<256x128xbf16>
    %cst_37 = arith.constant dense<0.000000e+00> : vector<256x128xf32>
    %56 = tpu.matmul %0, %55, %cst_37 {dimension_numbers = #tpu.dot_dimension_numbers<[1], [0], [0], [1], [0, 0, 1, 1], [], []>} : vector<256x256xbf16>, vector<256x128xbf16>, vector<256x128xf32> -> vector<256x128xf32>
    %57 = vector.broadcast %2 : vector<256x1xf32> to vector<256x128xf32>
    %58 = arith.mulf %57, %56 : vector<256x128xf32>
    %59 = arith.mulf %2, %2 : vector<256x1xf32>
    %60 = vector.broadcast %59 : vector<256x1xf32> to vector<256x128xf32>
    %61 = arith.mulf %60, %50 : vector<256x128xf32>
    %62 = arith.addf %58, %61 : vector<256x128xf32>
    %63 = arith.truncf %62 : vector<256x128xf32> to vector<256x128xbf16>
    %cst_38 = arith.constant dense<0.000000e+00> : vector<256x128xf32>
    %64 = tpu.matmul %63, %51, %cst_38 {dimension_numbers = #tpu.dot_dimension_numbers<[1], [0], [0], [1], [0, 0, 1, 1], [], []>} : vector<256x128xbf16>, vector<128x128xbf16>, vector<256x128xf32> -> vector<256x128xf32>
    %65 = vector.broadcast %52 : vector<1x128xf32> to vector<256x128xf32>
    %66 = arith.addf %64, %65 : vector<256x128xf32>
    %cst_39 = arith.constant 0.000000e+00 : f32
    %67 = vector.broadcast %cst_39 : f32 to vector<256x128xf32>
    %68 = arith.maximumf %66, %67 : vector<256x128xf32>
    %69 = arith.truncf %68 : vector<256x128xf32> to vector<256x128xbf16>
    %c0_40 = arith.constant 0 : index
    %c0_41 = arith.constant 0 : index
    %70 = vector.load %arg14[%c0_40, %c0_41] : memref<128x128xbf16, #tpu.memory_space<vmem>>, vector<128x128xbf16>
    %cst_42 = arith.constant dense<0.000000e+00> : vector<256x128xf32>
    %71 = tpu.matmul %69, %70, %cst_42 {dimension_numbers = #tpu.dot_dimension_numbers<[1], [0], [0], [1], [0, 0, 1, 1], [], []>} : vector<256x128xbf16>, vector<128x128xbf16>, vector<256x128xf32> -> vector<256x128xf32>
    %c0_43 = arith.constant 0 : index
    %c0_44 = arith.constant 0 : index
    %72 = vector.load %arg15[%c0_43, %c0_44] : memref<1x128xf32, #tpu.memory_space<vmem>>, vector<1x128xf32>
    %73 = vector.broadcast %72 : vector<1x128xf32> to vector<256x128xf32>
    %74 = arith.addf %71, %73 : vector<256x128xf32>
    %c0_45 = arith.constant 0 : index
    %c0_46 = arith.constant 0 : index
    %75 = vector.load %arg16[%c0_45, %c0_46] : memref<256x128xf32, #tpu.memory_space<vmem>>, vector<256x128xf32>
    tpu.vector_store %arg16[%c0_45, %c0_46], %74 {strides = array<i32>} : memref<256x128xf32, #tpu.memory_space<vmem>>, vector<256x128xf32>,
    return
  }
}

</mosaic_0001>

<bundles_post_ra>
// kernel: gcn_sage_hybrid_forward.1
= control target key start
LH: loop header
LB: loop body
LE: loop exit
PB: predicated region body
PF: predicated region fallthrough
CT: control target
= control target key end

     0   :  { %v5208_v0 = vmov 0   ;;  %s7727_s1 = inlined_call_operand.vmem [shape: f32[256,1], index: 1, kind: input, shape index: {}]   ;;  %s7728_s3 = inlined_call_operand.vmem [shape: bf16[256,128], index: 3, kind: input, shape index: {}]   ;;  %s7729_s0 = inlined_call_operand.vmem [shape: bf16[256,256], index: 0, kind: input, shape index: {}]   ;;  %s7730_s5 = inlined_call_operand.vmem [shape: bf16[128,128], index: 5, kind: input, shape index: {}]   ;;  %s7731_s2 = inlined_call_operand.vmem [shape: f32[256,1], index: 2, kind: input, shape index: {}]   ;;  %s7732_s4 = inlined_call_operand.vmem [shape: bf16[128,128], index: 4, kind: input, shape index: {}]   ;;  %s7733_s8 = inlined_call_operand.vmem [shape: bf16[128,128], index: 8, kind: input, shape index: {}]   ;;  %s7734_s6 = inlined_call_operand.vmem [shape: f32[1,128], index: 6, kind: input, shape index: {}]   ;;  %s7735_s7 = inlined_call_operand.vmem [shape: bf16[128,128], index: 7, kind: input, shape index: {}]   ;;  %s7736_s9 = inlined_call_operand.vmem [shape: f32[1,128], index: 9, kind: input, shape index: {}]   ;;  %s7737_s10 = inlined_call_operand.vmem [shape: bf16[128,128], index: 10, kind: input, shape index: {}]   ;;  %s7738_s11 = inlined_call_operand.vmem [shape: f32[1,128], index: 11, kind: input, shape index: {}]   ;;  %s7739_s12 = inlined_call_operand.vmem [shape: bf16[128,128], index: 12, kind: input, shape index: {}]   ;;  %s7740_s14 = inlined_call_operand.vmem [shape: bf16[128,128], index: 14, kind: input, shape index: {}]   ;;  %s7741_s13 = inlined_call_operand.vmem [shape: f32[1,128], index: 13, kind: input, shape index: {}]   ;;  %s7742_s15 = inlined_call_operand.vmem [shape: f32[1,128], index: 15, kind: input, shape index: {}]   ;;  %s7743_s16 = inlined_call_operand.vmem [shape: f32[256,128], index: 16, kind: output, shape index: {}]  }
   0x1   :  { %7923 = sst [smem:[#allocation53_spill]] %s7727_s1  ;;  %5023 = vset.pattern.permute.xlu1 %v5208_v0  ;;  %5022 = vset.pattern.permute.xlu0 %v5208_v0  ;;  %v5303_v3 = vld [vmem:[%s7728_s3 + $0x40] sm:$0xff]   ;;  %v5322_v7 = vld [vmem:[%s7728_s3 + $0x48] sm:$0xff]   ;;  %v5340_v11 = vld [vmem:[%s7728_s3 + $0x50] sm:$0xff]  }
   0x2   :  { %s7924_s23 = sld [smem:[#allocation53_spill]]  ;;  %v5308_v4 = vld [vmem:[%s7728_s3] sm:$0xff]   ;;  %3989 = vmatprep.subr.bf16.mxu0 %v5303_v3  ;;  %4941 = vmatprep.subr.bf16.mxu1 %v5303_v3  ;;  %v5328_v8 = vld [vmem:[%s7728_s3 + $0x8] sm:$0xff]   ;;  %v5347_v12 = vld [vmem:[%s7728_s3 + $0x10] sm:$0xff]  }
   0x3   :  { %3990 = vmatpush3.bf16.msra.mxu0 %v5308_v4  ;;  %4949 = vmatpush3.bf16.msra.mxu1 %v5308_v4  ;;  %v5360_v15 = vld [vmem:[%s7728_s3 + $0x58] sm:$0xff]   ;;  %v5380_v19 = vld [vmem:[%s7728_s3 + $0x60] sm:$0xff]   ;;  %v5400_v23 = vld [vmem:[%s7728_s3 + $0x68] sm:$0xff]  }
   0x4   :  { %3991 = vmatprep.subr.bf16.mxu0 %v5322_v7  ;;  %4942 = vmatprep.subr.bf16.mxu1 %v5322_v7  ;;  %v5367_v16 = vld [vmem:[%s7728_s3 + $0x18] sm:$0xff]   ;;  %v5387_v20 = vld [vmem:[%s7728_s3 + $0x20] sm:$0xff]   ;;  %v5407_v24 = vld [vmem:[%s7728_s3 + $0x28] sm:$0xff]  }
   0x5   :  { %v5419_v27 = vld [vmem:[%s7728_s3 + $0x70] sm:$0xff]   ;;  %v5425_v28 = vld [vmem:[%s7729_s0 + $0x4] ss:$8 sps:$4 sm:$0xff]   ;;  %v5445_v32 = vld [vmem:[%s7728_s3 + $0x78] sm:$0xff]  }
   0x6   :  { %v5432_v29 = vld [vmem:[%s7728_s3 + $0x30] sm:$0xff]   ;;  %503 = vmatprep.mubr.bf16.mxu0 %v5425_v28  ;;  %v5453_v33 = vld [vmem:[%s7728_s3 + $0x38] sm:$0xff]   ;;  %v5049_v36 = vld [vmem:[%s7729_s0 + $0xc4] ss:$8 sps:$4 sm:$0xff]  }
   0x7   :  { %3992 = vmatpush3.bf16.msra.mxu0 %v5328_v8  ;;  %4950 = vmatpush3.bf16.msra.mxu1 %v5328_v8  ;;  %v5042_v37 = vld [vmem:[%s7729_s0] ss:$8 sps:$4 sm:$0xff]   ;;  %v5043_v38 = vld [vmem:[%s7729_s0 + $0x14] ss:$8 sps:$4 sm:$0xff]   ;;  %v5045_v45 = vld [vmem:[%s7729_s0 + $0x10] ss:$8 sps:$4 sm:$0xff]  }
   0x8   :  { %v88_v1 = vld [vmem:[%s7924_s23 + $0x10] sm:$0xff]  ;;  %v86_v2 = vld [vmem:[%s7924_s23] sm:$0xff]  ;;  %v89_v5 = vld [vmem:[%s7924_s23 + $0x18] sm:$0xff]  ;;  %3993 = vmatprep.subr.bf16.mxu0 %v5340_v11  ;;  %4943 = vmatprep.subr.bf16.mxu1 %v5340_v11 }
   0x9   :  { %644 = vperm.xlu1 %5023, %v88_v1   ;;  %634 = vperm.xlu0 %5022, %v86_v2   ;;  %v87_v6 = vld [vmem:[%s7924_s23 + $0x8] sm:$0xff]  ;;  %v90_v10 = vld [vmem:[%s7924_s23 + $0x20] sm:$0xff]  ;;  %v93_v13 = vld [vmem:[%s7924_s23 + $0x38] sm:$0xff] }
   0xa   :  { %v91_v9 = vld [vmem:[%s7924_s23 + $0x28] sm:$0xff]  ;;  %v92_v14 = vld [vmem:[%s7924_s23 + $0x30] sm:$0xff]  ;;  %v94_v18 = vld [vmem:[%s7924_s23 + $0x40] sm:$0xff]  ;;  %599 = vmatprep.mubr.bf16.mxu1 %v5049_v36 }
   0xb   :  { %3994 = vmatpush3.bf16.msra.mxu0 %v5347_v12  ;;  %4951 = vmatpush3.bf16.msra.mxu1 %v5347_v12  ;;  %v95_v17 = vld [vmem:[%s7924_s23 + $0x48] sm:$0xff]  ;;  %v97_v21 = vld [vmem:[%s7924_s23 + $0x58] sm:$0xff]  ;;  %v96_v22 = vld [vmem:[%s7924_s23 + $0x50] sm:$0xff] }
   0xc   :  { %3995 = vmatprep.subr.bf16.mxu0 %v5360_v15  ;;  %4944 = vmatprep.subr.bf16.mxu1 %v5360_v15  ;;  %v99_v25 = vld [vmem:[%s7924_s23 + $0x68] sm:$0xff]  ;;  %v98_v26 = vld [vmem:[%s7924_s23 + $0x60] sm:$0xff]  ;;  %v101_v30 = vld [vmem:[%s7924_s23 + $0x78] sm:$0xff] }
   0xd   :  { %649 = vperm.xlu1 %5023, %v89_v5   ;;  %639 = vperm.xlu0 %5022, %v87_v6   ;;  %v100_v31 = vld [vmem:[%s7924_s23 + $0x70] sm:$0xff]  ;;  %v103_v34 = vld [vmem:[%s7924_s23 + $0x88] sm:$0xff]  ;;  %v102_v35 = vld [vmem:[%s7924_s23 + $0x80] sm:$0xff] }
   0xe   :  { %v105_v39 = vld [vmem:[%s7924_s23 + $0x98] sm:$0xff]  ;;  %v104_v40 = vld [vmem:[%s7924_s23 + $0x90] sm:$0xff]  ;;  %v5051_v41 = vld [vmem:[%s7729_s0 + $0xc0] ss:$8 sps:$4 sm:$0xff]  }
   0xf   :  { %3996 = vmatpush3.bf16.msra.mxu0 %v5367_v16  ;;  %4952 = vmatpush3.bf16.msra.mxu1 %v5367_v16  ;;  %v5055_v42 = vld [vmem:[%s7729_s0 + $0xd4] ss:$8 sps:$4 sm:$0xff]   ;;  %v107_v43 = vld [vmem:[%s7924_s23 + $0xa8] sm:$0xff]  ;;  %v106_v44 = vld [vmem:[%s7924_s23 + $0xa0] sm:$0xff] }
  0x10   :  { %3997 = vmatprep.subr.bf16.mxu0 %v5380_v19  ;;  %4945 = vmatprep.subr.bf16.mxu1 %v5380_v19  ;;  %v5046_v46 = vld [vmem:[%s7729_s0 + $0x24] ss:$8 sps:$4 sm:$0xff]   ;;  %v109_v47 = vld [vmem:[%s7924_s23 + $0xb8] sm:$0xff]  ;;  %v108_v48 = vld [vmem:[%s7924_s23 + $0xb0] sm:$0xff] }
  0x11   :  { %659 = vperm.xlu1 %5023, %v91_v9   ;;  %654 = vperm.xlu0 %5022, %v90_v10   ;;  %v5057_v49 = vld [vmem:[%s7729_s0 + $0xd0] ss:$8 sps:$4 sm:$0xff]   ;;  %v5061_v50 = vld [vmem:[%s7729_s0 + $0xe4] ss:$8 sps:$4 sm:$0xff]   ;;  %v5048_v53 = vld [vmem:[%s7729_s0 + $0x20] ss:$8 sps:$4 sm:$0xff]  }
  0x12   :  { %v111_v51 = vld [vmem:[%s7924_s23 + $0xc8] sm:$0xff]  ;;  %v110_v52 = vld [vmem:[%s7924_s23 + $0xc0] sm:$0xff]  ;;  %v5052_v54 = vld [vmem:[%s7729_s0 + $0x34] ss:$8 sps:$4 sm:$0xff]  }
  0x13   :  { %3998 = vmatpush3.bf16.msra.mxu0 %v5387_v20  ;;  %4953 = vmatpush3.bf16.msra.mxu1 %v5387_v20  ;;  %v113_v55 = vld [vmem:[%s7924_s23 + $0xd8] sm:$0xff]  ;;  %v112_v56 = vld [vmem:[%s7924_s23 + $0xd0] sm:$0xff]  ;;  %v5063_v57 = vld [vmem:[%s7729_s0 + $0xe0] ss:$8 sps:$4 sm:$0xff]  }
  0x14   :  { %3999 = vmatprep.subr.bf16.mxu0 %v5400_v23  ;;  %4946 = vmatprep.subr.bf16.mxu1 %v5400_v23  ;;  %v5067_v58 = vld [vmem:[%s7729_s0 + $0xf4] ss:$8 sps:$4 sm:$0xff]   ;;  %v115_v59 = vld [vmem:[%s7924_s23 + $0xe8] sm:$0xff]  ;;  %v114_v60 = vld [vmem:[%s7924_s23 + $0xe0] sm:$0xff] }
  0x15   :  { %669 = vperm.xlu1 %5023, %v93_v13   ;;  %664 = vperm.xlu0 %5022, %v92_v14   ;;  %v5054_v61 = vld [vmem:[%s7729_s0 + $0x30] ss:$8 sps:$4 sm:$0xff]   ;;  %v5058_v62 = vld [vmem:[%s7729_s0 + $0x44] ss:$8 sps:$4 sm:$0xff]   ;;  %v5060_v10 = vld [vmem:[%s7729_s0 + $0x40] ss:$8 sps:$4 sm:$0xff]  }
  0x16   :  { %v117_v63 = vld [vmem:[%s7924_s23 + $0xf8] sm:$0xff]  ;;  %v116_v0 = vld [vmem:[%s7924_s23 + $0xf0] sm:$0xff]  ;;  %v5088_v2 = vld [vmem:[%s7730_s5] sm:$0xff]  }
  0x17   :  { %4000 = vmatpush3.bf16.msra.mxu0 %v5407_v24  ;;  %4954 = vmatpush3.bf16.msra.mxu1 %v5407_v24  ;;  %v5069_v1 = vld [vmem:[%s7729_s0 + $0xf0] ss:$8 sps:$4 sm:$0xff]   ;;  %v5562_v5 = vld [vmem:[%s7731_s2 + $0x88] sm:$0xff]  ;;  %v5570_v9 = vld [vmem:[%s7731_s2 + $0x80] sm:$0xff] }
  0x18   :  { %4001 = vmatprep.subr.bf16.mxu0 %v5419_v27  ;;  %4947 = vmatprep.subr.bf16.mxu1 %v5419_v27  ;;  %v5089_v6 = vld [vmem:[%s7730_s5 + $0x8] sm:$0xff]   ;;  %v5064_v13 = vld [vmem:[%s7729_s0 + $0x54] ss:$8 sps:$4 sm:$0xff]  }
  0x19   :  { %679 = vperm.xlu1 %5023, %v95_v17   ;;  %674 = vperm.xlu0 %5022, %v94_v18   ;;  %v5090_v14 = vld [vmem:[%s7730_s5 + $0x10] sm:$0xff]   ;;  %v5587_v17 = vld [vmem:[%s7731_s2 + $0x8] sm:$0xff]  ;;  %v5592_v18 = vld [vmem:[%s7731_s2] sm:$0xff] }
  0x1a   :  { %v5638_v36 = vld [vmem:[%s7731_s2 + $0xa8] sm:$0xff] }
  0x1b   :  { %4002 = vmatpush3.bf16.msra.mxu0 %v5432_v29  ;;  %4955 = vmatpush3.bf16.msra.mxu1 %v5432_v29 }
  0x1c   :  { %4003 = vmatprep.subr.bf16.mxu0 %v5445_v32  ;;  %4948 = vmatprep.subr.bf16.mxu1 %v5445_v32 }
  0x1d   :  { %689 = vperm.xlu1 %5023, %v97_v21   ;;  %684 = vperm.xlu0 %5022, %v96_v22   ;;  %v5602_v21 = vld [vmem:[%s7731_s2 + $0x98] sm:$0xff]  ;;  %v5607_v22 = vld [vmem:[%s7731_s2 + $0x90] sm:$0xff] }
  0x1f   :  { %4004 = vmatpush3.bf16.msra.mxu0 %v5453_v33  ;;  %4956 = vmatpush3.bf16.msra.mxu1 %v5453_v33 }
  0x20   :  { %4605 = vmatprep.subr.bf16.mxu1 %v5088_v2 }
  0x21   :  { %699 = vperm.xlu1 %5023, %v99_v25   ;;  %694 = vperm.xlu0 %5022, %v98_v26   ;;  %v5066_v25 = vld [vmem:[%s7729_s0 + $0x50] ss:$8 sps:$4 sm:$0xff]   ;;  %v5070_v26 = vld [vmem:[%s7729_s0 + $0x64] ss:$8 sps:$4 sm:$0xff]  }
  0x22   :  { %504 = vmatmul.mubr.bf16.vlgmr.msra.gmra.mrb[0].mxu0 %v5042_v37  ;;  %600 = vmatmul.mubr.bf16.vlgmr.msra.gmra.mrb[0].mxu1 %v5051_v41  ;;  %v5643_v37 = vld [vmem:[%s7731_s2 + $0xa0] sm:$0xff]  ;;  %v5659_v41 = vld [vmem:[%s7731_s2 + $0x28] sm:$0xff] }
  0x23   :  { %511 = vmatprep.mubr.bf16.mxu0 %v5043_v38  ;;  %607 = vmatprep.mubr.bf16.mxu1 %v5055_v42  ;;  %v5072_v38 = vld [vmem:[%s7729_s0 + $0x60] ss:$8 sps:$4 sm:$0xff]  }
  0x24   :  { %4606 = vmatpush3.bf16.msra.mxu1 %v5088_v2  ;;  %v5664_v42 = vld [vmem:[%s7731_s2 + $0x20] sm:$0xff]  ;;  %v5806_v2 = vld [vmem:[%s7731_s2 + $0xf8] sm:$0xff] }
  0x25   :  { %709 = vperm.xlu1 %5023, %v101_v30   ;;  %704 = vperm.xlu0 %5022, %v100_v31   ;;  %v5092_v30 = vld [vmem:[%s7730_s5 + $0x20] sm:$0xff]   ;;  %v5623_v31 = vld [vmem:[%s7731_s2 + $0x18] sm:$0xff] }
  0x26   :  { %4607 = vmatprep.subr.bf16.mxu1 %v5089_v6 }
  0x28   :  { %4608 = vmatpush3.bf16.msra.mxu1 %v5089_v6  ;;  %v5811_v6 = vld [vmem:[%s7731_s2 + $0xf0] sm:$0xff] }
  0x29   :  { %719 = vperm.xlu1 %5023, %v103_v34   ;;  %714 = vperm.xlu0 %5022, %v102_v35   ;;  %v5628_v34 = vld [vmem:[%s7731_s2 + $0x10] sm:$0xff]  ;;  %v5093_v35 = vld [vmem:[%s7730_s5 + $0x28] sm:$0xff]  }
  0x2a   :  { %512 = vmatmul.mubr.bf16.gmra.mrb[4].mxu0 %v5045_v45  ;;  %608 = vmatmul.mubr.bf16.gmra.mrb[4].mxu1 %v5057_v49  ;;  %v5679_v45 = vld [vmem:[%s7731_s2 + $0xb0] sm:$0xff] }
  0x2b   :  { %519 = vmatprep.mubr.bf16.mxu0 %v5046_v46  ;;  %615 = vmatprep.mubr.bf16.mxu1 %v5061_v50  ;;  %v5075_v46 = vld [vmem:[%s7729_s0 + $0x70] ss:$8 sps:$4 sm:$0xff]   ;;  %v5704_v50 = vld [vmem:[%s7731_s2 + $0xc8] sm:$0xff] }
  0x2c   :  { %4609 = vmatprep.subr.bf16.mxu1 %v5090_v14  ;;  %v5697_v49 = vld [vmem:[%s7731_s2 + $0x30] sm:$0xff] }
  0x2d   :  { %729 = vperm.xlu1 %5023, %v105_v39   ;;  %724 = vperm.xlu0 %5022, %v104_v40   ;;  %v5073_v39 = vld [vmem:[%s7729_s0 + $0x74] ss:$8 sps:$4 sm:$0xff]  }
  0x2e   :  { %4610 = vmatpush3.bf16.msra.mxu1 %v5090_v14  ;;  %v5094_v40 = vld [vmem:[%s7730_s5 + $0x30] sm:$0xff]   ;;  %v133_v14 = vld [vmem:[%s7731_s2 + $0x78] sm:$0xff] }
  0x31   :  { %739 = vperm.xlu1 %5023, %v107_v43   ;;  %734 = vperm.xlu0 %5022, %v106_v44   ;;  %v5095_v43 = vld [vmem:[%s7730_s5 + $0x38] sm:$0xff]  }
  0x32   :  { %520 = vmatmul.mubr.bf16.gmra.mrb[8].mxu0 %v5048_v53  ;;  %616 = vmatmul.mubr.bf16.gmra.mrb[8].mxu1 %v5063_v57  ;;  %v5674_v44 = vld [vmem:[%s7731_s2 + $0xb8] sm:$0xff]  ;;  %v5082_v57 = vld [vmem:[%s7729_s0 + $0xa4] ss:$8 sps:$4 sm:$0xff]  }
  0x33   :  { %527 = vmatprep.mubr.bf16.mxu0 %v5052_v54  ;;  %623 = vmatprep.mubr.bf16.mxu1 %v5067_v58  ;;  %v5079_v53 = vld [vmem:[%s7729_s0 + $0x94] ss:$8 sps:$4 sm:$0xff]   ;;  %v5724_v54 = vld [vmem:[%s7731_s2 + $0x48] sm:$0xff]  ;;  %v5096_v58 = vld [vmem:[%s7732_s4] sm:$0xff]  }
  0x35   :  { %749 = vperm.xlu1 %5023, %v109_v47   ;;  %744 = vperm.xlu0 %5022, %v108_v48   ;;  %v5076_v47 = vld [vmem:[%s7729_s0 + $0x84] ss:$8 sps:$4 sm:$0xff]   ;;  %v5692_v48 = vld [vmem:[%s7731_s2 + $0x38] sm:$0xff] }
  0x39   :  { %759 = vperm.xlu1 %5023, %v111_v51   ;;  %754 = vperm.xlu0 %5022, %v110_v52   ;;  %v5709_v51 = vld [vmem:[%s7731_s2 + $0xc0] sm:$0xff] }
  0x3a   :  { %528 = vmatmul.mubr.bf16.gmra.mrb[12].mxu0 %v5054_v61  ;;  %624 = vmatmul.mubr.bf16.gmra.mrb[12].mxu1 %v5069_v1  ;;  %v5078_v52 = vld [vmem:[%s7729_s0 + $0x80] ss:$8 sps:$4 sm:$0xff]  }
  0x3b   :  { %535 = vmatprep.mubr.bf16.mxu0 %v5058_v62  ;;  %4621 = vmatprep.mubr.bf16.mxu1 %v5308_v4  ;;  %v5091_v4 = vld [vmem:[%s7730_s5 + $0x18] sm:$0xff]   ;;  %v5779_v61 = vld [vmem:[%s7731_s2 + $0xe0] sm:$0xff]  ;;  %v5098_v62 = vld [vmem:[%s7732_s4 + $0x10] sm:$0xff]  }
  0x3c   :  { %4611 = vmatprep.subr.bf16.mxu1 %v5091_v4  ;;  %v130_v1 = vld [vmem:[%s7731_s2 + $0x60] sm:$0xff] }
  0x3d   :  { %769 = vperm.xlu1 %5023, %v113_v55   ;;  %764 = vperm.xlu0 %5022, %v112_v56   ;;  %v5741_v55 = vld [vmem:[%s7731_s2 + $0xd0] sm:$0xff] }
  0x3e   :  { %4612 = vmatpush3.bf16.msra.mxu1 %v5091_v4  ;;  %v5081_v56 = vld [vmem:[%s7729_s0 + $0x90] ss:$8 sps:$4 sm:$0xff]   ;;  %v2493_v4 = vmul.f32 %v5587_v17, %v5587_v17 }
  0x3f   :  { %4613 = vmatprep.subr.bf16.mxu1 %v5092_v30 }
  0x41   :  { %779 = vperm.xlu1 %5023, %v115_v59   ;;  %774 = vperm.xlu0 %5022, %v114_v60   ;;  %v5757_v59 = vld [vmem:[%s7731_s2 + $0x58] sm:$0xff]  ;;  %v5762_v60 = vld [vmem:[%s7731_s2 + $0x50] sm:$0xff] }
  0x42   :  { %536 = vmatmul.mubr.bf16.gmra.mrb[16].mxu0 %v5060_v10  ;;  %4614 = vmatpush3.bf16.msra.mxu1 %v5092_v30  ;;  %v5087_v10 = vld [vmem:[%s7729_s0 + $0xb0] ss:$8 sps:$4 sm:$0xff]   ;;  %v2499_v30 = vmul.f32 %v5692_v48, %v5692_v48 }
  0x43   :  { %543 = vmatprep.mubr.bf16.mxu0 %v5064_v13  ;;  %4615 = vmatprep.subr.bf16.mxu1 %v5093_v35  ;;  %v5100_v13 = vld [vmem:[%s7732_s4 + $0x20] sm:$0xff]  }
  0x45   :  { %789 = vperm.xlu1 %5023, %v117_v63   ;;  %784 = vperm.xlu0 %5022, %v116_v0   ;;  %v5084_v63 = vld [vmem:[%s7729_s0 + $0xa0] ss:$8 sps:$4 sm:$0xff]   ;;  %v5085_v0 = vld [vmem:[%s7729_s0 + $0xb4] ss:$8 sps:$4 sm:$0xff]  }
  0x46   :  { %4616 = vmatpush3.bf16.msra.mxu1 %v5093_v35 }
  0x47   :  { %4617 = vmatprep.subr.bf16.mxu1 %v5094_v40 }
  0x49   :  { %2178 = vperm.xlu1 %5023, %v5562_v5   ;;  %2173 = vperm.xlu0 %5022, %v5570_v9  }
  0x4a   :  { %544 = vmatmul.mubr.bf16.gmra.mrb[20].mxu0 %v5066_v25  ;;  %4618 = vmatpush3.bf16.msra.mxu1 %v5094_v40  ;;  %v2492_v25 = vmul.f32 %v5592_v18, %v5592_v18  ;;  %v2507_v40 = vmul.f32 %v133_v14, %v133_v14 }
  0x4b   :  { %551 = vmatprep.mubr.bf16.mxu0 %v5070_v26  ;;  %4619 = vmatprep.subr.bf16.mxu1 %v5095_v43  ;;  %v5102_v26 = vld [vmem:[%s7732_s4 + $0x30] sm:$0xff]  }
  0x4d   :  { %2098 = vperm.xlu1 %5023, %v5587_v17   ;;  %2093 = vperm.xlu0 %5022, %v5592_v18   ;;  %v2494_v17 = vmul.f32 %v5628_v34, %v5628_v34  ;;  %v2496_v18 = vmul.f32 %v5664_v42, %v5664_v42 }
  0x4e   :  { %4620 = vmatpush3.bf16.msra.mxu1 %v5095_v43  ;;  %v2510_v43 = vmul.f32 %v5607_v22, %v5607_v22 }
  0x4f   :  { %4653 = vmatprep.subr.bf16.mxu1 %v5096_v58 }
  0x51   :  { %2188 = vperm.xlu1 %5023, %v5602_v21   ;;  %2183 = vperm.xlu0 %5022, %v5607_v22   ;;  %v2516_v22 = vmul.f32 %v5709_v51, %v5709_v51 }
  0x52   :  { %552 = vmatmul.mubr.bf16.gmra.mrb[24].mxu0 %v5072_v38  ;;  %4622 = vmatmul.mubr.bf16.vlgmr.msra.gmra.mrb[16].mxu1 %v5328_v8  ;;  %v5729_v8 = vld [vmem:[%s7731_s2 + $0x40] sm:$0xff] }
  0x53   :  { %559 = vmatprep.mubr.bf16.mxu0 %v5073_v39  ;;  %4625 = vmatprep.mubr.bf16.mxu1 %v5347_v12  ;;  %v5736_v12 = vld [vmem:[%s7731_s2 + $0xd8] sm:$0xff]  ;;  %v2500_v35 = vmul.f32 %v5729_v8, %v5729_v8  ;;  %v2504_v39 = vmul.f32 %v130_v1, %v130_v1 }
  0x54   :  { %4654 = vmatpush3.bf16.msra.mxu1 %v5096_v58 }
  0x55   :  { %2108 = vperm.xlu1 %5023, %v5623_v31   ;;  %2103 = vperm.xlu0 %5022, %v5628_v34   ;;  %v2501_v34 = vmul.f32 %v5724_v54, %v5724_v54 }
  0x59   :  { %2198 = vperm.xlu1 %5023, %v5638_v36   ;;  %2193 = vperm.xlu0 %5022, %v5643_v37  }
  0x5a   :  { %560 = vmatmul.mubr.bf16.gmra.mrb[28].mxu0 %v5075_v46  ;;  %4626 = vmatmul.mubr.bf16.gmra.mrb[20].mxu1 %v5367_v16  ;;  %v5097_v16 = vld [vmem:[%s7732_s4 + $0x8] sm:$0xff]   ;;  %v2512_v46 = vmul.f32 %v5643_v37, %v5643_v37  ;;  %v2518_v37 = vmul.f32 %v5741_v55, %v5741_v55 }
  0x5b   :  { %567 = vmatprep.mubr.bf16.mxu0 %v5076_v47  ;;  %4629 = vmatprep.mubr.bf16.mxu1 %v5387_v20  ;;  %v5774_v20 = vld [vmem:[%s7731_s2 + $0xe8] sm:$0xff] }
  0x5c   :  { %4655 = vmatprep.subr.bf16.mxu1 %v5097_v16 }
  0x5d   :  { %2118 = vperm.xlu1 %5023, %v5659_v41   ;;  %2113 = vperm.xlu0 %5022, %v5664_v42   ;;  %v2511_v42 = vmul.f32 %v5602_v21, %v5602_v21  ;;  %v2517_v21 = vmul.f32 %v5704_v50, %v5704_v50 }
  0x5e   :  { %4656 = vmatpush3.bf16.msra.mxu1 %v5097_v16 }
  0x5f   :  { %4657 = vmatprep.subr.bf16.mxu1 %v5098_v62 }
  0x61   :  { %2208 = vperm.xlu1 %5023, %v5674_v44   ;;  %2203 = vperm.xlu0 %5022, %v5679_v45  }
  0x62   :  { %568 = vmatmul.mubr.bf16.gmra.mrb[32].mxu0 %v5078_v52  ;;  %4630 = vmatmul.mubr.bf16.gmra.mrb[24].mxu1 %v5407_v24  ;;  %v131_v24 = vld [vmem:[%s7731_s2 + $0x68] sm:$0xff] }
  0x63   :  { %575 = vmatprep.mubr.bf16.mxu0 %v5079_v53  ;;  %4633 = vmatprep.mubr.bf16.mxu1 %v5432_v29  ;;  %v5099_v29 = vld [vmem:[%s7732_s4 + $0x18] sm:$0xff]   ;;  %v2505_v38 = vmul.f32 %v131_v24, %v131_v24 }
  0x64   :  { %4658 = vmatpush3.bf16.msra.mxu1 %v5098_v62 }
  0x65   :  { %2128 = vperm.xlu1 %5023, %v5692_v48   ;;  %2123 = vperm.xlu0 %5022, %v5697_v49  }
  0x66   :  { %4659 = vmatprep.subr.bf16.mxu1 %v5099_v29 }
  0x68   :  { %4660 = vmatpush3.bf16.msra.mxu1 %v5099_v29 }
  0x69   :  { %2218 = vperm.xlu1 %5023, %v5704_v50   ;;  %2213 = vperm.xlu0 %5022, %v5709_v51   ;;  %v2522_v50 = vmul.f32 %v5811_v6, %v5811_v6 }
  0x6a   :  { %576 = vmatmul.mubr.bf16.gmra.mrb[36].mxu0 %v5081_v56  ;;  %4634 = vmatmul.mubr.bf16.gmra.mrb[28].mxu1 %v5453_v33  ;;  %v132_v33 = vld [vmem:[%s7731_s2 + $0x70] sm:$0xff] }
  0x6b   :  { %583 = vmatprep.mubr.bf16.mxu0 %v5082_v57  ;;  %4637 = vmatprep.mubr.bf16.mxu1 %v5303_v3  ;;  %v5101_v3 = vld [vmem:[%s7732_s4 + $0x28] sm:$0xff]  }
  0x6c   :  { %4661 = vmatprep.subr.bf16.mxu1 %v5100_v13 }
  0x6d   :  { %2138 = vperm.xlu1 %5023, %v5724_v54   ;;  %2133 = vperm.xlu0 %5022, %v5729_v8  }
  0x6e   :  { %4662 = vmatpush3.bf16.msra.mxu1 %v5100_v13 }
  0x6f   :  { %4663 = vmatprep.subr.bf16.mxu1 %v5101_v3 }
  0x71   :  { %2228 = vperm.xlu1 %5023, %v5736_v12   ;;  %2223 = vperm.xlu0 %5022, %v5741_v55  }
  0x72   :  { %584 = vmatmul.mubr.bf16.gmra.mrb[40].mxu0 %v5084_v63  ;;  %4638 = vmatmul.mubr.bf16.gmra.mrb[32].mxu1 %v5322_v7  ;;  %v5103_v7 = vld [vmem:[%s7732_s4 + $0x38] sm:$0xff]   ;;  %v5104_v63 = vld [vmem:[%s7733_s8] sm:$0xff]  }
  0x73   :  { %591 = vmatprep.mubr.bf16.mxu0 %v5085_v0  ;;  %4641 = vmatprep.mubr.bf16.mxu1 %v5340_v11  ;;  %v2497_v11 = vmul.f32 %v5659_v41, %v5659_v41  ;;  %v2506_v41 = vmul.f32 %v132_v33, %v132_v33 }
  0x74   :  { %4664 = vmatpush3.bf16.msra.mxu1 %v5101_v3 }
  0x75   :  { %2148 = vperm.xlu1 %5023, %v5757_v59   ;;  %2143 = vperm.xlu0 %5022, %v5762_v60  }
  0x76   :  { %4665 = vmatprep.subr.bf16.mxu1 %v5102_v26 }
  0x78   :  { %4666 = vmatpush3.bf16.msra.mxu1 %v5102_v26 }
  0x79   :  { %2238 = vperm.xlu1 %5023, %v5774_v20   ;;  %2233 = vperm.xlu0 %5022, %v5779_v61  }
  0x7a   :  { %592 = vmatmul.mubr.bf16.gmra.mrb[44].mxu0 %v5087_v10  ;;  %4642 = vmatmul.mubr.bf16.gmra.mrb[36].mxu1 %v5360_v15  ;;  %v2503_v15 = vmul.f32 %v5757_v59, %v5757_v59 }
  0x7b   :  { %1409 = vmatprep.mubr.bf16.mxu0 %v5425_v28  ;;  %v2495_v28 = vmul.f32 %v5623_v31, %v5623_v31  ;;  %4667 = vmatprep.subr.bf16.mxu1 %v5103_v7  ;;  %v2498_v31 = vmul.f32 %v5697_v49, %v5697_v49  ;;  %v2523_v49 = vmul.f32 %v5806_v2, %v5806_v2 }
  0x7c   :  { %4645 = vmatprep.mubr.bf16.mxu1 %v5380_v19  ;;  %4668 = vmatpush3.bf16.msra.mxu1 %v5103_v7  ;;  %v2502_v19 = vmul.f32 %v5762_v60, %v5762_v60 }
  0x7d   :  { %2158 = vperm.xlu1 %5023, %v131_v24   ;;  %2153 = vperm.xlu0 %5022, %v130_v1  }
  0x7e   :  { %4701 = vmatprep.subr.bf16.mxu1 %v5104_v63 }
  0x81   :  { %2248 = vperm.xlu1 %5023, %v5806_v2   ;;  %2243 = vperm.xlu0 %5022, %v5811_v6  }
  0x82   :  { %4646 = vmatmul.mubr.bf16.gmra.mrb[40].mxu1 %v5400_v23  ;;  %v2509_v23 = vmul.f32 %v5562_v5, %v5562_v5  ;;  %v2515_v5 = vmul.f32 %v5674_v44, %v5674_v44  ;;  %v2521_v44 = vmul.f32 %v5774_v20, %v5774_v20 }
  0x83   :  { %4649 = vmatprep.mubr.bf16.mxu1 %v5419_v27  ;;  %v2508_v27 = vmul.f32 %v5570_v9, %v5570_v9  ;;  %v2514_v9 = vmul.f32 %v5679_v45, %v5679_v45  ;;  %v2520_v45 = vmul.f32 %v5779_v61, %v5779_v61 }
  0x85   :  { %2168 = vperm.xlu1 %5023, %v133_v14   ;;  %2163 = vperm.xlu0 %5022, %v132_v33  }
  0x88   :  { %v5898_v47 = vpop.permute.xlu0 %634  ;;  %v5900_v48 = vpop.permute.xlu1 %644 }
  0x89   :  { %2531 = vperm.xlu1 %5023, %v2493_v4   ;;  %2526 = vperm.xlu0 %5022, %v2492_v25  }
  0x8a   :  { %4650 = vmatmul.mubr.bf16.gmra.mrb[44].mxu1 %v5445_v32  ;;  %v2513_v32 = vmul.f32 %v5638_v36, %v5638_v36  ;;  %v2519_v36 = vmul.f32 %v5736_v12, %v5736_v12 }
  0x8c   :  { %v5906_v51 = vpop.permute.xlu0 %639  ;;  %v5908_v52 = vpop.permute.xlu1 %649 }
  0x8d   :  { %2541 = vperm.xlu1 %5023, %v2495_v28   ;;  %2536 = vperm.xlu0 %5022, %v2494_v17  }
  0x90   :  { %v5910_v53 = vpop.permute.xlu0 %654  ;;  %v5912_v54 = vpop.permute.xlu1 %659 }
  0x91   :  { %2551 = vperm.xlu1 %5023, %v2497_v11   ;;  %2546 = vperm.xlu0 %5022, %v2496_v18  }
  0x94   :  { %v5914_v8 = vpop.permute.xlu0 %664  ;;  %v5916_v12 = vpop.permute.xlu1 %669 }
  0x95   :  { %2561 = vperm.xlu1 %5023, %v2499_v30   ;;  %2556 = vperm.xlu0 %5022, %v2498_v31  }
  0x98   :  { %v5918_v55 = vpop.permute.xlu0 %674  ;;  %v5920_v56 = vpop.permute.xlu1 %679 }
  0x99   :  { %2571 = vperm.xlu1 %5023, %v2501_v34   ;;  %2566 = vperm.xlu0 %5022, %v2500_v35  }
  0x9c   :  { %v5922_v57 = vpop.permute.xlu0 %684  ;;  %v5924_v58 = vpop.permute.xlu1 %689 }
  0x9d   :  { %2581 = vperm.xlu1 %5023, %v2503_v15   ;;  %2576 = vperm.xlu0 %5022, %v2502_v19  }
  0xa0   :  { %v5926_v59 = vpop.permute.xlu0 %694  ;;  %v5928_v60 = vpop.permute.xlu1 %699 }
  0xa1   :  { %2591 = vperm.xlu1 %5023, %v2505_v38   ;;  %2586 = vperm.xlu0 %5022, %v2504_v39  }
  0xa4   :  { %v5930_v16 = vpop.permute.xlu0 %704  ;;  %v5932_v20 = vpop.permute.xlu1 %709 }
  0xa5   :  { %2601 = vperm.xlu1 %5023, %v2507_v40   ;;  %2596 = vperm.xlu0 %5022, %v2506_v41  }
  0xa8   :  { %v5934_v61 = vpop.permute.xlu0 %714  ;;  %v5936_v62 = vpop.permute.xlu1 %719 }
  0xa9   :  { %2611 = vperm.xlu1 %5023, %v2509_v23   ;;  %2606 = vperm.xlu0 %5022, %v2508_v27  }
  0xac   :  { %v5941_v0 = vpop.permute.xlu0 %724  ;;  %v5943_v24 = vpop.permute.xlu1 %729 }
  0xad   :  { %2621 = vperm.xlu1 %5023, %v2511_v42   ;;  %2616 = vperm.xlu0 %5022, %v2510_v43  }
  0xb0   :  { %v5945_v1 = vpop.permute.xlu0 %734  ;;  %v5947_v29 = vpop.permute.xlu1 %739 }
  0xb1   :  { %2631 = vperm.xlu1 %5023, %v2513_v32   ;;  %2626 = vperm.xlu0 %5022, %v2512_v46  }
  0xb4   :  { %v5949_v6 = vpop.permute.xlu0 %744  ;;  %v5951_v13 = vpop.permute.xlu1 %749 }
  0xb5   :  { %2641 = vperm.xlu1 %5023, %v2515_v5   ;;  %2636 = vperm.xlu0 %5022, %v2514_v9  }
  0xb8   :  { %v5953_v7 = vpop.permute.xlu0 %754  ;;  %v5960_v15 = vpop.permute.xlu1 %759 }
  0xb9   :  { %2651 = vperm.xlu1 %5023, %v2517_v21   ;;  %2646 = vperm.xlu0 %5022, %v2516_v22  }
  0xbc   :  { %v5967_v9 = vpop.permute.xlu0 %764 }
  0xbd   :  { %2661 = vperm.xlu1 %5023, %v2519_v36   ;;  %2656 = vperm.xlu0 %5022, %v2518_v37  }
  0xc1   :  { %2671 = vperm.xlu1 %5023, %v2521_v44   ;;  %2666 = vperm.xlu0 %5022, %v2520_v45  }
  0xc5   :  { %2681 = vperm.xlu1 %5023, %v2523_v49   ;;  %2676 = vperm.xlu0 %5022, %v2522_v50   ;;  %v5974_v49 = vpop.permute.xlu1 %769 }
  0xf5   :  { %v4005_v2 = vpop.f32.mrb[0].mxu0  ;;  %v4077_v3 = vpop.f32.mrb[0].mxu1 }
  0xf6   :  { %v4006_v10 = vpop.f32.mrb[1].mxu0  ;;  %v4078_v25 = vpop.f32.mrb[1].mxu1 }
  0xf7   :  { %v4007_v14 = vadd.f32 %v4006_v10, %v4005_v2  ;;  %v4008_v33 = vpop.f32.mrb[2].mxu0  ;;  %v4079_v28 = vadd.f32 %v4078_v25, %v4077_v3  ;;  %v4080_v17 = vpop.f32.mrb[2].mxu1  ;;  %v5105_v10 = vld [vmem:[%s7733_s8 + $0x8] sm:$0xff]  }
  0xf8   :  { %v4009_v4 = vpop.f32.mrb[3].mxu0  ;;  %v4081_v30 = vpop.f32.mrb[3].mxu1 }
  0xf9   :  { %v4010_v26 = vadd.f32 %v4009_v4, %v4008_v33  ;;  %v792_v11 = vmul.f32 %v4007_v14, %v5898_v47  ;;  %v5958_v34 = vmul.f32 %v4079_v28, %v5953_v7  ;;  %v4082_v35 = vadd.f32 %v4081_v30, %v4080_v17  ;;  %v5106_v30 = vld [vmem:[%s7733_s8 + $0x10] sm:$0xff]  }
  0xfb   :  { %v793_v18 = vmul.f32 %v4010_v26, %v5906_v51  ;;  %v5963_v40 = vmul.f32 %v4082_v35, %v5960_v15 }
  0xfd   :  { %v4011_v31 = vpop.f32.mrb[4].mxu0  ;;  %v824_v38 = vpack.c.bf16 %v793_v18, %v792_v11  ;;  %v4083_v23 = vpop.f32.mrb[4].mxu1  ;;  %v836_v43 = vpack.c.bf16 %v5963_v40, %v5958_v34  ;;  %v6061_v34 = vld [vmem:[%s7734_s6] ss:$0 sm:$0xff] }
  0xfe   :  { %v4012_v19 = vpop.f32.mrb[5].mxu0  ;;  %v4084_v42 = vpop.f32.mrb[5].mxu1 }
  0xff   :  { %v4013_v39 = vadd.f32 %v4012_v19, %v4011_v31  ;;  %v4014_v41 = vpop.f32.mrb[6].mxu0  ;;  %4669 = vmatprep.mubr.bf16.mxu1 %v824_v38  ;;  %v4085_v46 = vadd.f32 %v4084_v42, %v4083_v23  ;;  %v4086_v5 = vpop.f32.mrb[6].mxu1 }
 0x100   :  { %v4015_v27 = vpop.f32.mrb[7].mxu0  ;;  %v4087_v36 = vpop.f32.mrb[7].mxu1 }
 0x101   :  { %v4016_v32 = vadd.f32 %v4015_v27, %v4014_v41  ;;  %v794_v21 = vmul.f32 %v4013_v39, %v5900_v48  ;;  %v5972_v44 = vmul.f32 %v4085_v46, %v5967_v9  ;;  %v4088_v45 = vadd.f32 %v4087_v36, %v4086_v5  ;;  %v5987_v31 = vpop.permute.xlu0 %774  ;;  %v5994_v23 = vpop.permute.xlu1 %779 }
 0x103   :  { %v795_v22 = vmul.f32 %v4016_v32, %v5908_v52  ;;  %v5980_v33 = vmul.f32 %v4088_v45, %v5974_v49  ;;  %v5107_v32 = vld [vmem:[%s7733_s8 + $0x18] sm:$0xff]  }
 0x105   :  { %v4017_v37 = vpop.f32.mrb[8].mxu0  ;;  %v825_v50 = vpack.c.bf16 %v795_v22, %v794_v21  ;;  %v4089_v4 = vpop.f32.mrb[8].mxu1  ;;  %v837_v28 = vpack.c.bf16 %v5980_v33, %v5972_v44 }
 0x106   :  { %v4018_v2 = vpop.f32.mrb[9].mxu0  ;;  %v4090_v26 = vpop.f32.mrb[9].mxu1 }
 0x107   :  { %v4019_v14 = vadd.f32 %v4018_v2, %v4017_v37  ;;  %v4020_v3 = vpop.f32.mrb[10].mxu0  ;;  %4670 = vmatmul.mubr.bf16.vlgmr.msra.gmra.mrb[16].mxu1 %v825_v50  ;;  %v4091_v11 = vadd.f32 %v4090_v26, %v4089_v4  ;;  %v4092_v18 = vpop.f32.mrb[10].mxu1 }
 0x108   :  { %v4021_v25 = vpop.f32.mrb[11].mxu0  ;;  %4702 = vmatpush3.bf16.msra.mxu1 %v5104_v63  ;;  %v4093_v38 = vpop.f32.mrb[11].mxu1 }
 0x109   :  { %v4022_v17 = vadd.f32 %v4021_v25, %v4020_v3  ;;  %4703 = vmatprep.subr.bf16.mxu1 %v5105_v10  ;;  %v796_v35 = vmul.f32 %v4019_v14, %v5910_v53  ;;  %v5992_v41 = vmul.f32 %v4091_v11, %v5987_v31  ;;  %v4094_v63 = vadd.f32 %v4093_v38, %v4092_v18  ;;  %v5108_v14 = vld [vmem:[%s7733_s8 + $0x20] sm:$0xff]   ;;  %v6007_v3 = vpop.permute.xlu0 %784  ;;  %v5109_v38 = vld [vmem:[%s7733_s8 + $0x28] sm:$0xff]  }
 0x10b   :  { %v797_v19 = vmul.f32 %v4022_v17, %v5912_v54  ;;  %v6000_v5 = vmul.f32 %v4094_v63, %v5994_v23 }
 0x10c   :  { %4704 = vmatpush3.bf16.msra.mxu1 %v5105_v10 }
 0x10d   :  { %v4023_v39 = vpop.f32.mrb[12].mxu0  ;;  %v826_v42 = vpack.c.bf16 %v797_v19, %v796_v35  ;;  %4705 = vmatprep.subr.bf16.mxu1 %v5106_v30  ;;  %v4095_v22 = vpop.f32.mrb[12].mxu1  ;;  %v838_v45 = vpack.c.bf16 %v6000_v5, %v5992_v41 }
 0x10e   :  { %v4024_v27 = vpop.f32.mrb[13].mxu0  ;;  %v4096_v37 = vpop.f32.mrb[13].mxu1 }
 0x10f   :  { %v4025_v46 = vadd.f32 %v4024_v27, %v4023_v39  ;;  %v4026_v21 = vpop.f32.mrb[14].mxu0  ;;  %4673 = vmatprep.mubr.bf16.mxu1 %v826_v42  ;;  %v4097_v2 = vadd.f32 %v4096_v37, %v4095_v22  ;;  %v4098_v10 = vpop.f32.mrb[14].mxu1 }
 0x110   :  { %v4027_v36 = vpop.f32.mrb[15].mxu0  ;;  %4706 = vmatpush3.bf16.msra.mxu1 %v5106_v30  ;;  %v4099_v26 = vpop.f32.mrb[15].mxu1 }
 0x111   :  { %v4028_v50 = vadd.f32 %v4027_v36, %v4026_v21  ;;  %4707 = vmatprep.subr.bf16.mxu1 %v5107_v32  ;;  %v798_v4 = vmul.f32 %v4025_v46, %v5914_v8  ;;  %v6012_v11 = vmul.f32 %v4097_v2, %v6007_v3  ;;  %v4100_v18 = vadd.f32 %v4099_v26, %v4098_v10  ;;  %v6014_v30 = vpop.permute.xlu1 %789 }
 0x113   :  { %v799_v25 = vmul.f32 %v4028_v50, %v5916_v12  ;;  %v6020_v63 = vmul.f32 %v4100_v18, %v6014_v30 }
 0x114   :  { %4708 = vmatpush3.bf16.msra.mxu1 %v5107_v32 }
 0x115   :  { %v4029_v17 = vpop.f32.mrb[16].mxu0  ;;  %v827_v19 = vpack.c.bf16 %v799_v25, %v798_v4  ;;  %4709 = vmatprep.subr.bf16.mxu1 %v5108_v14  ;;  %v839_v46 = vpack.c.bf16 %v6020_v63, %v6012_v11 }
 0x116   :  { %v4030_v35 = vpop.f32.mrb[17].mxu0 }
 0x117   :  { %v4031_v39 = vadd.f32 %v4030_v35, %v4029_v17  ;;  %v4032_v27 = vpop.f32.mrb[18].mxu0  ;;  %4674 = vmatmul.mubr.bf16.gmra.mrb[20].mxu1 %v827_v19 }
 0x118   :  { %v4033_v42 = vpop.f32.mrb[19].mxu0  ;;  %4710 = vmatpush3.bf16.msra.mxu1 %v5108_v14 }
 0x119   :  { %v4034_v32 = vadd.f32 %v4033_v42, %v4032_v27  ;;  %4711 = vmatprep.subr.bf16.mxu1 %v5109_v38  ;;  %v800_v21 = vmul.f32 %v4031_v39, %v5918_v55 }
 0x11b   :  { %v801_v22 = vmul.f32 %v4034_v32, %v5920_v56 }
 0x11c   :  { %4712 = vmatpush3.bf16.msra.mxu1 %v5109_v38 }
 0x11d   :  { %v4035_v36 = vpop.f32.mrb[20].mxu0  ;;  %v828_v50 = vpack.c.bf16 %v801_v22, %v800_v21 }
 0x11e   :  { %v4036_v37 = vpop.f32.mrb[21].mxu0 }
 0x11f   :  { %v4037_v2 = vadd.f32 %v4036_v37, %v4035_v36  ;;  %v4038_v10 = vpop.f32.mrb[22].mxu0  ;;  %4677 = vmatprep.mubr.bf16.mxu1 %v828_v50 }
 0x120   :  { %v4039_v4 = vpop.f32.mrb[23].mxu0 }
 0x121   :  { %v4040_v25 = vadd.f32 %v4039_v4, %v4038_v10  ;;  %v802_v26 = vmul.f32 %v4037_v2, %v5922_v57 }
 0x123   :  { %v803_v17 = vmul.f32 %v4040_v25, %v5924_v58 }
 0x125   :  { %v4041_v14 = vpop.f32.mrb[24].mxu0  ;;  %v829_v35 = vpack.c.bf16 %v803_v17, %v802_v26 }
 0x126   :  { %v4042_v18 = vpop.f32.mrb[25].mxu0 }
 0x127   :  { %v4043_v19 = vadd.f32 %v4042_v18, %v4041_v14  ;;  %v4044_v39 = vpop.f32.mrb[26].mxu0  ;;  %4678 = vmatmul.mubr.bf16.gmra.mrb[24].mxu1 %v829_v35 }
 0x128   :  { %v4045_v27 = vpop.f32.mrb[27].mxu0 }
 0x129   :  { %v4046_v42 = vadd.f32 %v4045_v27, %v4044_v39  ;;  %v804_v38 = vmul.f32 %v4043_v19, %v5926_v59 }
 0x12b   :  { %v805_v32 = vmul.f32 %v4046_v42, %v5928_v60 }
 0x12d   :  { %v4047_v21 = vpop.f32.mrb[28].mxu0  ;;  %v830_v36 = vpack.c.bf16 %v805_v32, %v804_v38 }
 0x12e   :  { %v4048_v22 = vpop.f32.mrb[29].mxu0 }
 0x12f   :  { %v4049_v37 = vadd.f32 %v4048_v22, %v4047_v21  ;;  %v4050_v50 = vpop.f32.mrb[30].mxu0  ;;  %4681 = vmatprep.mubr.bf16.mxu1 %v830_v36 }
 0x130   :  { %v4051_v2 = vpop.f32.mrb[31].mxu0 }
 0x131   :  { %v4052_v10 = vadd.f32 %v4051_v2, %v4050_v50  ;;  %v806_v4 = vmul.f32 %v4049_v37, %v5930_v16 }
 0x133   :  { %v807_v25 = vmul.f32 %v4052_v10, %v5932_v20 }
 0x135   :  { %v4053_v26 = vpop.f32.mrb[32].mxu0  ;;  %v831_v14 = vpack.c.bf16 %v807_v25, %v806_v4 }
 0x136   :  { %v4054_v17 = vpop.f32.mrb[33].mxu0 }
 0x137   :  { %v4055_v18 = vadd.f32 %v4054_v17, %v4053_v26  ;;  %v4056_v35 = vpop.f32.mrb[34].mxu0  ;;  %4682 = vmatmul.mubr.bf16.gmra.mrb[28].mxu1 %v831_v14 }
 0x138   :  { %v4057_v19 = vpop.f32.mrb[35].mxu0 }
 0x139   :  { %v4058_v39 = vadd.f32 %v4057_v19, %v4056_v35  ;;  %v808_v27 = vmul.f32 %v4055_v18, %v5934_v61 }
 0x13b   :  { %v809_v42 = vmul.f32 %v4058_v39, %v5936_v62 }
 0x13d   :  { %v4059_v38 = vpop.f32.mrb[36].mxu0  ;;  %v832_v21 = vpack.c.bf16 %v809_v42, %v808_v27 }
 0x13e   :  { %v4060_v32 = vpop.f32.mrb[37].mxu0 }
 0x13f   :  { %v4061_v22 = vadd.f32 %v4060_v32, %v4059_v38  ;;  %v4062_v36 = vpop.f32.mrb[38].mxu0  ;;  %4685 = vmatprep.mubr.bf16.mxu1 %v832_v21 }
 0x140   :  { %v4063_v37 = vpop.f32.mrb[39].mxu0 }
 0x141   :  { %v4064_v50 = vadd.f32 %v4063_v37, %v4062_v36  ;;  %v810_v2 = vmul.f32 %v4061_v22, %v5941_v0 }
 0x143   :  { %v811_v10 = vmul.f32 %v4064_v50, %v5943_v24 }
 0x145   :  { %v4065_v4 = vpop.f32.mrb[40].mxu0  ;;  %v833_v25 = vpack.c.bf16 %v811_v10, %v810_v2  ;;  %v5110_v10 = vld [vmem:[%s7733_s8 + $0x30] sm:$0xff]  }
 0x146   :  { %v4066_v26 = vpop.f32.mrb[41].mxu0  ;;  %4713 = vmatprep.subr.bf16.mxu1 %v5110_v10 }
 0x147   :  { %v4067_v17 = vadd.f32 %v4066_v26, %v4065_v4  ;;  %v4068_v14 = vpop.f32.mrb[42].mxu0  ;;  %4686 = vmatmul.mubr.bf16.gmra.mrb[32].mxu1 %v833_v25  ;;  %v5111_v4 = vld [vmem:[%s7733_s8 + $0x38] sm:$0xff]  }
 0x148   :  { %v4069_v18 = vpop.f32.mrb[43].mxu0  ;;  %4714 = vmatpush3.bf16.msra.mxu1 %v5110_v10 }
 0x149   :  { %v4070_v35 = vadd.f32 %v4069_v18, %v4068_v14  ;;  %v812_v19 = vmul.f32 %v4067_v17, %v5945_v1  ;;  %4715 = vmatprep.subr.bf16.mxu1 %v5111_v4 }
 0x14b   :  { %v813_v39 = vmul.f32 %v4070_v35, %v5947_v29 }
 0x14c   :  { %4716 = vmatpush3.bf16.msra.mxu1 %v5111_v4 }
 0x14d   :  { %v4071_v27 = vpop.f32.mrb[44].mxu0  ;;  %v834_v42 = vpack.c.bf16 %v813_v39, %v812_v19 }
 0x14e   :  { %v4072_v38 = vpop.f32.mrb[45].mxu0 }
 0x14f   :  { %v4073_v32 = vadd.f32 %v4072_v38, %v4071_v27  ;;  %v4074_v21 = vpop.f32.mrb[46].mxu0  ;;  %4689 = vmatprep.mubr.bf16.mxu1 %v834_v42 }
 0x150   :  { %v4075_v22 = vpop.f32.mrb[47].mxu0 }
 0x151   :  { %v4076_v36 = vadd.f32 %v4075_v22, %v4074_v21  ;;  %v814_v37 = vmul.f32 %v4073_v32, %v5949_v6 }
 0x153   :  { %v815_v50 = vmul.f32 %v4076_v36, %v5951_v13 }
 0x155   :  { %v835_v2 = vpack.c.bf16 %v815_v50, %v814_v37 }
 0x157   :  { %4690 = vmatmul.mubr.bf16.gmra.mrb[36].mxu1 %v835_v2 }
 0x158   :  { %4693 = vmatprep.mubr.bf16.mxu1 %v836_v43 }
 0x15f   :  { %4694 = vmatmul.mubr.bf16.gmra.mrb[40].mxu1 %v837_v28 }
 0x160   :  { %4697 = vmatprep.mubr.bf16.mxu1 %v838_v45 }
 0x167   :  { %4698 = vmatmul.mubr.bf16.gmra.mrb[44].mxu1 %v839_v46 }
 0x1da   :  { %v4671_v40 = vpop.f32.mrb[16].mxu1 }
 0x1db   :  { %v1266_v43 = vadd.f32 %v4671_v40, %v6061_v34  ;;  %v1131_v44 = vpop.f32.mrb[17].mxu1 }
 0x1dc   :  { %v1264_v33 = vadd.f32 %v6061_v34, %v1131_v44  ;;  %v4672_v28 = vpop.f32.mrb[18].mxu1 }
 0x1dd   :  { %v1267_v41 = vadd.f32 %v4672_v28, %v6061_v34  ;;  %v1134_v5 = vpop.f32.mrb[19].mxu1  ;;  %v1298_v25 = vmax.f32 %v1266_v43, 0.0 }
 0x1de   :  { %v1265_v45 = vadd.f32 %v6061_v34, %v1134_v5  ;;  %v1296_v63 = vmax.f32 %v1264_v33, 0.0 }
 0x1df   :  { %v1299_v11 = vmax.f32 %v1267_v41, 0.0 }
 0x1e0   :  { %v1297_v46 = vmax.f32 %v1265_v45, 0.0 }
 0x1e1   :  { %v6067_v26 = vpack.c.bf16 %v1299_v11, %v1298_v25 }
 0x1e2   :  { %v6069_v17 = vpack.c.bf16 %v1297_v46, %v1296_v63 }
 0x1e4   :  { %4717 = vmatprep.mubr.bf16.mxu1 %v6069_v17 }
 0x1e5   :  { %4718 = vmatmul.mubr.bf16.vlgmr.msra.gmra.mrb[48].mxu1 %v6067_v26 }
 0x1ea   :  { %v4675_v14 = vpop.f32.mrb[20].mxu1 }
 0x1eb   :  { %v1270_v18 = vadd.f32 %v4675_v14, %v6061_v34  ;;  %v1147_v35 = vpop.f32.mrb[21].mxu1 }
 0x1ec   :  { %v1268_v19 = vadd.f32 %v6061_v34, %v1147_v35  ;;  %v4676_v39 = vpop.f32.mrb[22].mxu1 }
 0x1ed   :  { %v1271_v27 = vadd.f32 %v4676_v39, %v6061_v34  ;;  %v1150_v42 = vpop.f32.mrb[23].mxu1  ;;  %v1302_v32 = vmax.f32 %v1270_v18, 0.0 }
 0x1ee   :  { %v1269_v38 = vadd.f32 %v6061_v34, %v1150_v42  ;;  %v1300_v22 = vmax.f32 %v1268_v19, 0.0 }
 0x1ef   :  { %v1303_v21 = vmax.f32 %v1271_v27, 0.0 }
 0x1f0   :  { %v1301_v36 = vmax.f32 %v1269_v38, 0.0 }
 0x1f1   :  { %v6077_v37 = vpack.c.bf16 %v1303_v21, %v1302_v32 }
 0x1f2   :  { %v6079_v50 = vpack.c.bf16 %v1301_v36, %v1300_v22 }
 0x1f4   :  { %4721 = vmatprep.mubr.bf16.mxu1 %v6079_v50 }
 0x1f5   :  { %4722 = vmatmul.mubr.bf16.gmra.mrb[52].mxu1 %v6077_v37 }
 0x1fa   :  { %v4679_v2 = vpop.f32.mrb[24].mxu1 }
 0x1fb   :  { %v1274_v10 = vadd.f32 %v4679_v2, %v6061_v34  ;;  %v1163_v4 = vpop.f32.mrb[25].mxu1 }
 0x1fc   :  { %v1272_v40 = vadd.f32 %v6061_v34, %v1163_v4  ;;  %v4680_v43 = vpop.f32.mrb[26].mxu1 }
 0x1fd   :  { %v1275_v44 = vadd.f32 %v4680_v43, %v6061_v34  ;;  %v1166_v33 = vpop.f32.mrb[27].mxu1  ;;  %v1306_v41 = vmax.f32 %v1274_v10, 0.0 }
 0x1fe   :  { %v1273_v28 = vadd.f32 %v6061_v34, %v1166_v33  ;;  %v1304_v45 = vmax.f32 %v1272_v40, 0.0 }
 0x1ff   :  { %v1307_v5 = vmax.f32 %v1275_v44, 0.0 }
 0x200   :  { %v1305_v25 = vmax.f32 %v1273_v28, 0.0 }
 0x201   :  { %v6087_v11 = vpack.c.bf16 %v1307_v5, %v1306_v41 }
 0x202   :  { %v6089_v63 = vpack.c.bf16 %v1305_v25, %v1304_v45 }
 0x204   :  { %4725 = vmatprep.mubr.bf16.mxu1 %v6089_v63 }
 0x205   :  { %4726 = vmatmul.mubr.bf16.gmra.mrb[56].mxu1 %v6087_v11 }
 0x20a   :  { %v4683_v46 = vpop.f32.mrb[28].mxu1 }
 0x20b   :  { %v1278_v14 = vadd.f32 %v4683_v46, %v6061_v34  ;;  %v1179_v18 = vpop.f32.mrb[29].mxu1 }
 0x20c   :  { %v1276_v35 = vadd.f32 %v6061_v34, %v1179_v18  ;;  %v4684_v19 = vpop.f32.mrb[30].mxu1 }
 0x20d   :  { %v1279_v39 = vadd.f32 %v4684_v19, %v6061_v34  ;;  %v1182_v27 = vpop.f32.mrb[31].mxu1  ;;  %v1310_v38 = vmax.f32 %v1278_v14, 0.0 }
 0x20e   :  { %v1277_v42 = vadd.f32 %v6061_v34, %v1182_v27  ;;  %v1308_v21 = vmax.f32 %v1276_v35, 0.0 }
 0x20f   :  { %v1311_v32 = vmax.f32 %v1279_v39, 0.0 }
 0x210   :  { %v1309_v22 = vmax.f32 %v1277_v42, 0.0 }
 0x211   :  { %v6097_v36 = vpack.c.bf16 %v1311_v32, %v1310_v38 }
 0x212   :  { %v6099_v2 = vpack.c.bf16 %v1309_v22, %v1308_v21 }
 0x214   :  { %4729 = vmatprep.mubr.bf16.mxu1 %v6099_v2 }
 0x215   :  { %4730 = vmatmul.mubr.bf16.gmra.mrb[60].mxu1 %v6097_v36 }
 0x21a   :  { %v4687_v10 = vpop.f32.mrb[32].mxu1 }
 0x21b   :  { %v1282_v4 = vadd.f32 %v4687_v10, %v6061_v34  ;;  %v1195_v40 = vpop.f32.mrb[33].mxu1 }
 0x21c   :  { %v1280_v43 = vadd.f32 %v6061_v34, %v1195_v40  ;;  %v4688_v44 = vpop.f32.mrb[34].mxu1 }
 0x21d   :  { %v1283_v33 = vadd.f32 %v4688_v44, %v6061_v34  ;;  %v1198_v28 = vpop.f32.mrb[35].mxu1  ;;  %v1314_v5 = vmax.f32 %v1282_v4, 0.0 }
 0x21e   :  { %v1281_v41 = vadd.f32 %v6061_v34, %v1198_v28  ;;  %v1312_v25 = vmax.f32 %v1280_v43, 0.0 }
 0x21f   :  { %v1315_v45 = vmax.f32 %v1283_v33, 0.0 }
 0x220   :  { %v1313_v46 = vmax.f32 %v1281_v41, 0.0 }
 0x221   :  { %v1337_v14 = vpack.c.bf16 %v1315_v45, %v1314_v5 }
 0x222   :  { %v1336_v18 = vpack.c.bf16 %v1313_v46, %v1312_v25 }
 0x224   :  { %4149 = vmatprep.subr.bf16.mxu0 %v1336_v18  ;;  %4733 = vmatprep.mubr.bf16.mxu1 %v1336_v18 }
 0x225   :  { %4150 = vmatpush3.bf16.msra.mxu0 %v6069_v17  ;;  %4734 = vmatmul.mubr.bf16.gmra.mrb[64].mxu1 %v1337_v14 }
 0x226   :  { %4151 = vmatprep.subr.bf16.mxu0 %v1337_v14 }
 0x229   :  { %4152 = vmatpush3.bf16.msra.mxu0 %v6067_v26 }
 0x22a   :  { %v4691_v35 = vpop.f32.mrb[36].mxu1 }
 0x22b   :  { %v1286_v19 = vadd.f32 %v4691_v35, %v6061_v34  ;;  %v1211_v39 = vpop.f32.mrb[37].mxu1 }
 0x22c   :  { %v1284_v27 = vadd.f32 %v6061_v34, %v1211_v39  ;;  %v4692_v42 = vpop.f32.mrb[38].mxu1 }
 0x22d   :  { %v1287_v38 = vadd.f32 %v4692_v42, %v6061_v34  ;;  %v1214_v32 = vpop.f32.mrb[39].mxu1  ;;  %v1318_v22 = vmax.f32 %v1286_v19, 0.0 }
 0x22e   :  { %v1285_v21 = vadd.f32 %v6061_v34, %v1214_v32  ;;  %v1316_v4 = vmax.f32 %v1284_v27, 0.0 }
 0x22f   :  { %v1319_v10 = vmax.f32 %v1287_v38, 0.0 }
 0x230   :  { %v1317_v17 = vmax.f32 %v1285_v21, 0.0 }
 0x231   :  { %v1339_v40 = vpack.c.bf16 %v1319_v10, %v1318_v22 }
 0x232   :  { %v1338_v43 = vpack.c.bf16 %v1317_v17, %v1316_v4  ;;  %v4695_v44 = vpop.f32.mrb[40].mxu1 }
 0x233   :  { %v1290_v26 = vadd.f32 %v4695_v44, %v6061_v34  ;;  %v1227_v33 = vpop.f32.mrb[41].mxu1 }
 0x234   :  { %v1288_v28 = vadd.f32 %v6061_v34, %v1227_v33  ;;  %v4696_v41 = vpop.f32.mrb[42].mxu1  ;;  %4153 = vmatprep.subr.bf16.mxu0 %v1338_v43  ;;  %4737 = vmatprep.mubr.bf16.mxu1 %v1338_v43  ;;  %v6154_v33 = vld [vmem:[%s7729_s0 + $0x10] ss:$8 sps:$4 sm:$0xff]  }
 0x235   :  { %v1291_v5 = vadd.f32 %v4696_v41, %v6061_v34  ;;  %v1230_v45 = vpop.f32.mrb[43].mxu1  ;;  %4154 = vmatpush3.bf16.msra.mxu0 %v6079_v50  ;;  %4738 = vmatmul.mubr.bf16.gmra.mrb[68].mxu1 %v1339_v40  ;;  %v1322_v46 = vmax.f32 %v1290_v26, 0.0  ;;  %v6145_v26 = vld [vmem:[%s7729_s0 + $0x14] ss:$8 sps:$4 sm:$0xff]   ;;  %v6166_v41 = vld [vmem:[%s7729_s0 + $0x20] ss:$8 sps:$4 sm:$0xff]  }
 0x236   :  { %v1289_v25 = vadd.f32 %v6061_v34, %v1230_v45  ;;  %4155 = vmatprep.subr.bf16.mxu0 %v1339_v40  ;;  %v1320_v18 = vmax.f32 %v1288_v28, 0.0  ;;  %v6160_v28 = vld [vmem:[%s7729_s0 + $0x24] ss:$8 sps:$4 sm:$0xff]   ;;  %v6178_v45 = vld [vmem:[%s7729_s0 + $0x30] ss:$8 sps:$4 sm:$0xff]  }
 0x237   :  { %v1323_v14 = vmax.f32 %v1291_v5, 0.0  ;;  %v6172_v5 = vld [vmem:[%s7729_s0 + $0x34] ss:$8 sps:$4 sm:$0xff]  }
 0x238   :  { %v1321_v35 = vmax.f32 %v1289_v25, 0.0  ;;  %v6184_v25 = vld [vmem:[%s7729_s0 + $0x44] ss:$8 sps:$4 sm:$0xff]  }
 0x239   :  { %v1341_v19 = vpack.c.bf16 %v1323_v14, %v1322_v46  ;;  %4156 = vmatpush3.bf16.msra.mxu0 %v6077_v37  ;;  %v6190_v46 = vld [vmem:[%s7729_s0 + $0x40] ss:$8 sps:$4 sm:$0xff]   ;;  %v6196_v14 = vld [vmem:[%s7729_s0 + $0x54] ss:$8 sps:$4 sm:$0xff]  }
 0x23a   :  { %v1340_v39 = vpack.c.bf16 %v1321_v35, %v1320_v18  ;;  %v4699_v27 = vpop.f32.mrb[44].mxu1  ;;  %v6202_v18 = vld [vmem:[%s7729_s0 + $0x50] ss:$8 sps:$4 sm:$0xff]   ;;  %v6208_v35 = vld [vmem:[%s7729_s0 + $0x64] ss:$8 sps:$4 sm:$0xff]  }
 0x23b   :  { %v1294_v42 = vadd.f32 %v4699_v27, %v6061_v34  ;;  %v1243_v38 = vpop.f32.mrb[45].mxu1  ;;  %v6226_v27 = vld [vmem:[%s7729_s0 + $0x70] ss:$8 sps:$4 sm:$0xff]  }
 0x23c   :  { %v1292_v32 = vadd.f32 %v6061_v34, %v1243_v38  ;;  %v4700_v21 = vpop.f32.mrb[46].mxu1  ;;  %4157 = vmatprep.subr.bf16.mxu0 %v1340_v39  ;;  %4741 = vmatprep.mubr.bf16.mxu1 %v1340_v39  ;;  %v6220_v39 = vld [vmem:[%s7729_s0 + $0x74] ss:$8 sps:$4 sm:$0xff]   ;;  %7925 = vst [vmem:[#allocation2_spill] sm:$0xff] %v6226_v27  ;;  %v6238_v38 = vld [vmem:[%s7729_s0 + $0x80] ss:$8 sps:$4 sm:$0xff]  }
 0x23d   :  { %v1295_v50 = vadd.f32 %v4700_v21, %v6061_v34  ;;  %v1246_v22 = vpop.f32.mrb[47].mxu1  ;;  %4158 = vmatpush3.bf16.msra.mxu0 %v6089_v63  ;;  %4742 = vmatmul.mubr.bf16.gmra.mrb[72].mxu1 %v1341_v19  ;;  %v1326_v37 = vmax.f32 %v1294_v42, 0.0  ;;  %v5112_v63 = vld [vmem:[%s7735_s7] sm:$0xff]   ;;  %7927 = vst [vmem:[#allocation4_spill] sm:$0xff] %v6238_v38  ;;  %v6250_v21 = vld [vmem:[%s7729_s0 + $0x90] ss:$8 sps:$4 sm:$0xff]  }
 0x23e   :  { %v1293_v10 = vadd.f32 %v6061_v34, %v1246_v22  ;;  %4159 = vmatprep.subr.bf16.mxu0 %v1341_v19  ;;  %v1324_v17 = vmax.f32 %v1292_v32, 0.0  ;;  %v5113_v34 = vld [vmem:[%s7735_s7 + $0x8] sm:$0xff]   ;;  %4749 = vmatprep.subr.bf16.mxu1 %v5112_v63  ;;  %v6244_v32 = vld [vmem:[%s7729_s0 + $0x94] ss:$8 sps:$4 sm:$0xff]   ;;  %7929 = vst [vmem:[#allocation6_spill] sm:$0xff] %v6250_v21 }
 0x23f   :  { %v1327_v4 = vmax.f32 %v1295_v50, 0.0  ;;  %4750 = vmatpush3.bf16.msra.mxu1 %v5112_v63  ;;  %v6214_v19 = vld [vmem:[%s7729_s0 + $0x60] ss:$8 sps:$4 sm:$0xff]   ;;  %v6232_v42 = vld [vmem:[%s7729_s0 + $0x84] ss:$8 sps:$4 sm:$0xff]   ;;  %7928 = vst [vmem:[#allocation5_spill] sm:$0xff] %v6244_v32 }
 0x240   :  { %v1325_v40 = vmax.f32 %v1293_v10, 0.0  ;;  %4751 = vmatprep.subr.bf16.mxu1 %v5113_v34  ;;  %7926 = vst [vmem:[#allocation3_spill] sm:$0xff] %v6232_v42  ;;  %v6256_v50 = vld [vmem:[%s7729_s0 + $0xa4] ss:$8 sps:$4 sm:$0xff]   ;;  %v6262_v22 = vld [vmem:[%s7729_s0 + $0xa0] ss:$8 sps:$4 sm:$0xff]  }
 0x241   :  { %v1343_v43 = vpack.c.bf16 %v1327_v4, %v1326_v37  ;;  %4160 = vmatpush3.bf16.msra.mxu0 %v6087_v11  ;;  %v5114_v11 = vld [vmem:[%s7735_s7 + $0x10] sm:$0xff]   ;;  %7930 = vst [vmem:[#allocation7_spill] sm:$0xff] %v6256_v50  ;;  %7931 = vst [vmem:[#allocation8_spill] sm:$0xff] %v6262_v22  ;;  %v5116_v37 = vld [vmem:[%s7735_s7 + $0x20] sm:$0xff]  }
 0x242   :  { %v1342_v44 = vpack.c.bf16 %v1325_v40, %v1324_v17  ;;  %v6268_v10 = vld [vmem:[%s7729_s0 + $0xb4] ss:$8 sps:$4 sm:$0xff]   ;;  %v6277_v4 = vld [vmem:[%s7729_s0 + $0xb0] ss:$8 sps:$4 sm:$0xff]   ;;  %v5117_v17 = vld [vmem:[%s7735_s7 + $0x28] sm:$0xff]  }
 0x243   :  { %4752 = vmatpush3.bf16.msra.mxu1 %v5113_v34  ;;  %7932 = vst [vmem:[#allocation9_spill] sm:$0xff] %v6268_v10  ;;  %7933 = vst [vmem:[#allocation10_spill] sm:$0xff] %v6277_v4  ;;  %v6286_v40 = vld [vmem:[%s7729_s0 + $0xc4] ss:$8 sps:$4 sm:$0xff]   ;;  %v5119_v63 = vld [vmem:[%s7735_s7 + $0x38] sm:$0xff]  }
 0x244   :  { %4161 = vmatprep.subr.bf16.mxu0 %v1342_v44  ;;  %4745 = vmatprep.mubr.bf16.mxu1 %v1342_v44  ;;  %7934 = vst [vmem:[#allocation11_spill] sm:$0xff] %v6286_v40  ;;  %v6295_v44 = vld [vmem:[%s7729_s0 + $0xc0] ss:$8 sps:$4 sm:$0xff]   ;;  %v6304_v34 = vld [vmem:[%s7729_s0 + $0xd4] ss:$8 sps:$4 sm:$0xff]  }
 0x245   :  { %4162 = vmatpush3.bf16.msra.mxu0 %v6099_v2  ;;  %4746 = vmatmul.mubr.bf16.gmra.mrb[76].mxu1 %v1343_v43  ;;  %v6139_v2 = vld [vmem:[%s7729_s0] ss:$8 sps:$4 sm:$0xff]   ;;  %7935 = vst [vmem:[#allocation12_spill] sm:$0xff] %v6295_v44  ;;  %7936 = vst [vmem:[#allocation13_spill] sm:$0xff] %v6304_v34 }
 0x246   :  { %4163 = vmatprep.subr.bf16.mxu0 %v1343_v43  ;;  %4753 = vmatprep.subr.bf16.mxu1 %v5114_v11  ;;  %v5118_v43 = vld [vmem:[%s7735_s7 + $0x30] sm:$0xff]  }
 0x247   :  { %4754 = vmatpush3.bf16.msra.mxu1 %v5114_v11  ;;  %v6310_v11 = vld [vmem:[%s7729_s0 + $0xd0] ss:$8 sps:$4 sm:$0xff]  }
 0x248   :  { %7937 = vst [vmem:[#allocation14_spill] sm:$0xff] %v6310_v11 }
 0x249   :  { %4164 = vmatpush3.bf16.msra.mxu0 %v6097_v36  ;;  %v5115_v36 = vld [vmem:[%s7735_s7 + $0x18] sm:$0xff]  }
 0x24a   :  { %4755 = vmatprep.subr.bf16.mxu1 %v5115_v36 }
 0x24b   :  { %4756 = vmatpush3.bf16.msra.mxu1 %v5115_v36  ;;  %v6316_v36 = vld [vmem:[%s7729_s0 + $0xe4] ss:$8 sps:$4 sm:$0xff]  }
 0x24c   :  { %1410 = vmatmul.mubr.bf16.vlgmr.msra.gmra.mrb[48].mxu0 %v6139_v2  ;;  %4757 = vmatprep.subr.bf16.mxu1 %v5116_v37  ;;  %7938 = vst [vmem:[#allocation15_spill] sm:$0xff] %v6316_v36 }
 0x24d   :  { %1417 = vmatprep.mubr.bf16.mxu0 %v6145_v26 }
 0x24f   :  { %4758 = vmatpush3.bf16.msra.mxu1 %v5116_v37  ;;  %v6322_v37 = vld [vmem:[%s7729_s0 + $0xe0] ss:$8 sps:$4 sm:$0xff]  }
 0x250   :  { %4759 = vmatprep.subr.bf16.mxu1 %v5117_v17  ;;  %7939 = vst [vmem:[#allocation16_spill] sm:$0xff] %v6322_v37 }
 0x253   :  { %4760 = vmatpush3.bf16.msra.mxu1 %v5117_v17  ;;  %v6328_v17 = vld [vmem:[%s7729_s0 + $0xf4] ss:$8 sps:$4 sm:$0xff]  }
 0x254   :  { %1418 = vmatmul.mubr.bf16.gmra.mrb[52].mxu0 %v6154_v33  ;;  %4761 = vmatprep.subr.bf16.mxu1 %v5118_v43  ;;  %7940 = vst [vmem:[#allocation17_spill] sm:$0xff] %v6328_v17 }
 0x255   :  { %1425 = vmatprep.mubr.bf16.mxu0 %v6160_v28 }
 0x257   :  { %4762 = vmatpush3.bf16.msra.mxu1 %v5118_v43  ;;  %v6334_v43 = vld [vmem:[%s7729_s0 + $0xf0] ss:$8 sps:$4 sm:$0xff]  }
 0x258   :  { %4763 = vmatprep.subr.bf16.mxu1 %v5119_v63  ;;  %7941 = vst [vmem:[#allocation18_spill] sm:$0xff] %v6334_v43 }
 0x25b   :  { %4764 = vmatpush3.bf16.msra.mxu1 %v5119_v63  ;;  %v5175_v63 = vld [vmem:[%s7729_s0 + $0x4] ss:$8 sps:$4 sm:$0xff]  }
 0x25c   :  { %1426 = vmatmul.mubr.bf16.gmra.mrb[56].mxu0 %v6166_v41 }
 0x25d   :  { %1433 = vmatprep.mubr.bf16.mxu0 %v6172_v5 }
 0x264   :  { %1434 = vmatmul.mubr.bf16.gmra.mrb[60].mxu0 %v6178_v45 }
 0x265   :  { %1441 = vmatprep.mubr.bf16.mxu0 %v6184_v25 }
 0x26c   :  { %1442 = vmatmul.mubr.bf16.gmra.mrb[64].mxu0 %v6190_v46 }
 0x26d   :  { %1449 = vmatprep.mubr.bf16.mxu0 %v6196_v14 }
 0x274   :  { %1450 = vmatmul.mubr.bf16.gmra.mrb[68].mxu0 %v6202_v18 }
 0x275   :  { %1457 = vmatprep.mubr.bf16.mxu0 %v6208_v35 }
 0x27c   :  { %1458 = vmatmul.mubr.bf16.gmra.mrb[72].mxu0 %v6214_v19 }
 0x27d   :  { %1465 = vmatprep.mubr.bf16.mxu0 %v6220_v39 }
 0x284   :  { %1466 = vmatmul.mubr.bf16.gmra.mrb[76].mxu0 %v6226_v27 }
 0x285   :  { %1473 = vmatprep.mubr.bf16.mxu0 %v6232_v42 }
 0x28c   :  { %1474 = vmatmul.mubr.bf16.gmra.mrb[80].mxu0 %v6238_v38 }
 0x28d   :  { %1481 = vmatprep.mubr.bf16.mxu0 %v6244_v32 }
 0x294   :  { %1482 = vmatmul.mubr.bf16.gmra.mrb[84].mxu0 %v6250_v21 }
 0x295   :  { %1489 = vmatprep.mubr.bf16.mxu0 %v6256_v50 }
 0x29c   :  { %1490 = vmatmul.mubr.bf16.gmra.mrb[88].mxu0 %v6262_v22 }
 0x29d   :  { %1497 = vmatprep.mubr.bf16.mxu0 %v6268_v10 }
 0x2a4   :  { %1498 = vmatmul.mubr.bf16.gmra.mrb[92].mxu0 %v6277_v4 }
 0x2a5   :  { %1505 = vmatprep.mubr.bf16.mxu0 %v6286_v40 }
 0x2ac   :  { %1506 = vmatmul.mubr.bf16.gmra.mrb[96].mxu0 %v6295_v44 }
 0x2ad   :  { %1513 = vmatprep.mubr.bf16.mxu0 %v6304_v34 }
 0x2b4   :  { %1514 = vmatmul.mubr.bf16.gmra.mrb[100].mxu0 %v6310_v11 }
 0x2b5   :  { %1521 = vmatprep.mubr.bf16.mxu0 %v6316_v36 }
 0x2bc   :  { %1522 = vmatmul.mubr.bf16.gmra.mrb[104].mxu0 %v6322_v37 }
 0x2bd   :  { %1529 = vmatprep.mubr.bf16.mxu0 %v6328_v17 }
 0x2c4   :  { %1530 = vmatmul.mubr.bf16.gmra.mrb[108].mxu0 %v6334_v43 }
 0x2c5   :  { %2331 = vmatprep.mubr.bf16.mxu0 %v5175_v63 }
 0x31f   :  { %v4165_v37 = vpop.f32.mrb[48].mxu0 }
 0x320   :  { %v4166_v36 = vpop.f32.mrb[49].mxu0 }
 0x321   :  { %v4167_v11 = vadd.f32 %v4166_v36, %v4165_v37  ;;  %v4168_v34 = vpop.f32.mrb[50].mxu0 }
 0x322   :  { %v4169_v44 = vpop.f32.mrb[51].mxu0 }
 0x323   :  { %v4170_v40 = vadd.f32 %v4169_v44, %v4168_v34  ;;  %v1538_v17 = vmul.f32 %v4167_v11, %v5898_v47 }
 0x325   :  { %v1539_v4 = vmul.f32 %v4170_v40, %v5906_v51 }
 0x327   :  { %v4171_v10 = vpop.f32.mrb[52].mxu0  ;;  %v1570_v22 = vpack.c.bf16 %v1539_v4, %v1538_v17 }
 0x328   :  { %v4172_v50 = vpop.f32.mrb[53].mxu0 }
 0x329   :  { %v4173_v21 = vadd.f32 %v4172_v50, %v4171_v10  ;;  %v4174_v43 = vpop.f32.mrb[54].mxu0  ;;  %4765 = vmatprep.mubr.bf16.mxu1 %v1570_v22 }
 0x32a   :  { %v4175_v32 = vpop.f32.mrb[55].mxu0 }
 0x32b   :  { %v4176_v38 = vadd.f32 %v4175_v32, %v4174_v43  ;;  %v1540_v63 = vmul.f32 %v4173_v21, %v5900_v48 }
 0x32d   :  { %v1541_v42 = vmul.f32 %v4176_v38, %v5908_v52 }
 0x32f   :  { %v1571_v36 = vpack.c.bf16 %v1541_v42, %v1540_v63  ;;  %v4177_v37 = vpop.f32.mrb[56].mxu0 }
 0x330   :  { %v4178_v27 = vpop.f32.mrb[57].mxu0 }
 0x331   :  { %v4179_v44 = vadd.f32 %v4178_v27, %v4177_v37  ;;  %v4180_v34 = vpop.f32.mrb[58].mxu0  ;;  %4766 = vmatmul.mubr.bf16.vlgmr.msra.gmra.mrb[48].mxu1 %v1571_v36 }
 0x332   :  { %v4181_v47 = vpop.f32.mrb[59].mxu0 }
 0x333   :  { %v4182_v51 = vadd.f32 %v4181_v47, %v4180_v34  ;;  %v1542_v4 = vmul.f32 %v4179_v44, %v5910_v53 }
 0x335   :  { %v1543_v50 = vmul.f32 %v4182_v51, %v5912_v54 }
 0x337   :  { %v4183_v10 = vpop.f32.mrb[60].mxu0  ;;  %v1572_v22 = vpack.c.bf16 %v1543_v50, %v1542_v4 }
 0x338   :  { %v4184_v40 = vpop.f32.mrb[61].mxu0 }
 0x339   :  { %v4185_v32 = vadd.f32 %v4184_v40, %v4183_v10  ;;  %v4186_v11 = vpop.f32.mrb[62].mxu0  ;;  %4769 = vmatprep.mubr.bf16.mxu1 %v1572_v22 }
 0x33a   :  { %v4187_v48 = vpop.f32.mrb[63].mxu0 }
 0x33b   :  { %v4188_v52 = vadd.f32 %v4187_v48, %v4186_v11  ;;  %v1544_v42 = vmul.f32 %v4185_v32, %v5914_v8 }
 0x33d   :  { %v1545_v27 = vmul.f32 %v4188_v52, %v5916_v12 }
 0x33f   :  { %v4189_v38 = vpop.f32.mrb[64].mxu0  ;;  %v1573_v21 = vpack.c.bf16 %v1545_v27, %v1544_v42 }
 0x340   :  { %v4190_v17 = vpop.f32.mrb[65].mxu0 }
 0x341   :  { %v4191_v43 = vadd.f32 %v4190_v17, %v4189_v38  ;;  %v4192_v63 = vpop.f32.mrb[66].mxu0  ;;  %4770 = vmatmul.mubr.bf16.gmra.mrb[52].mxu1 %v1573_v21 }
 0x342   :  { %v4193_v53 = vpop.f32.mrb[67].mxu0 }
 0x343   :  { %v4194_v54 = vadd.f32 %v4193_v53, %v4192_v63  ;;  %v1546_v36 = vmul.f32 %v4191_v43, %v5918_v55 }
 0x345   :  { %v1547_v37 = vmul.f32 %v4194_v54, %v5920_v56 }
 0x347   :  { %v4195_v44 = vpop.f32.mrb[68].mxu0  ;;  %v1574_v34 = vpack.c.bf16 %v1547_v37, %v1546_v36 }
 0x348   :  { %v4196_v47 = vpop.f32.mrb[69].mxu0 }
 0x349   :  { %v4197_v51 = vadd.f32 %v4196_v47, %v4195_v44  ;;  %v4198_v4 = vpop.f32.mrb[70].mxu0  ;;  %4773 = vmatprep.mubr.bf16.mxu1 %v1574_v34 }
 0x34a   :  { %v4199_v8 = vpop.f32.mrb[71].mxu0 }
 0x34b   :  { %v4200_v12 = vadd.f32 %v4199_v8, %v4198_v4  ;;  %v1548_v50 = vmul.f32 %v4197_v51, %v5922_v57 }
 0x34d   :  { %v1549_v10 = vmul.f32 %v4200_v12, %v5924_v58 }
 0x34f   :  { %v4201_v22 = vpop.f32.mrb[72].mxu0  ;;  %v1575_v40 = vpack.c.bf16 %v1549_v10, %v1548_v50 }
 0x350   :  { %v4202_v32 = vpop.f32.mrb[73].mxu0 }
 0x351   :  { %v4203_v11 = vadd.f32 %v4202_v32, %v4201_v22  ;;  %v4204_v48 = vpop.f32.mrb[74].mxu0  ;;  %4774 = vmatmul.mubr.bf16.gmra.mrb[56].mxu1 %v1575_v40 }
 0x352   :  { %v4205_v55 = vpop.f32.mrb[75].mxu0 }
 0x353   :  { %v4206_v56 = vadd.f32 %v4205_v55, %v4204_v48  ;;  %v1550_v52 = vmul.f32 %v4203_v11, %v5926_v59 }
 0x355   :  { %v1551_v42 = vmul.f32 %v4206_v56, %v5928_v60 }
 0x357   :  { %v4207_v27 = vpop.f32.mrb[76].mxu0  ;;  %v1576_v38 = vpack.c.bf16 %v1551_v42, %v1550_v52 }
 0x358   :  { %v4208_v21 = vpop.f32.mrb[77].mxu0 }
 0x359   :  { %v4209_v17 = vadd.f32 %v4208_v21, %v4207_v27  ;;  %v4210_v43 = vpop.f32.mrb[78].mxu0  ;;  %4777 = vmatprep.mubr.bf16.mxu1 %v1576_v38 }
 0x35a   :  { %v4211_v57 = vpop.f32.mrb[79].mxu0 }
 0x35b   :  { %v4212_v58 = vadd.f32 %v4211_v57, %v4210_v43  ;;  %v1552_v63 = vmul.f32 %v4209_v17, %v5930_v16 }
 0x35d   :  { %v1553_v53 = vmul.f32 %v4212_v58, %v5932_v20 }
 0x35f   :  { %v4213_v54 = vpop.f32.mrb[80].mxu0  ;;  %v1577_v36 = vpack.c.bf16 %v1553_v53, %v1552_v63 }
 0x360   :  { %v4214_v37 = vpop.f32.mrb[81].mxu0 }
 0x361   :  { %v4215_v44 = vadd.f32 %v4214_v37, %v4213_v54  ;;  %v4216_v34 = vpop.f32.mrb[82].mxu0  ;;  %4778 = vmatmul.mubr.bf16.gmra.mrb[60].mxu1 %v1577_v36 }
 0x362   :  { %v4217_v59 = vpop.f32.mrb[83].mxu0 }
 0x363   :  { %v4218_v60 = vadd.f32 %v4217_v59, %v4216_v34  ;;  %v1554_v47 = vmul.f32 %v4215_v44, %v5934_v61 }
 0x365   :  { %v1555_v51 = vmul.f32 %v4218_v60, %v5936_v62 }
 0x367   :  { %v4219_v4 = vpop.f32.mrb[84].mxu0  ;;  %v1578_v8 = vpack.c.bf16 %v1555_v51, %v1554_v47 }
 0x368   :  { %v4220_v12 = vpop.f32.mrb[85].mxu0 }
 0x369   :  { %v4221_v50 = vadd.f32 %v4220_v12, %v4219_v4  ;;  %v4222_v10 = vpop.f32.mrb[86].mxu0  ;;  %4781 = vmatprep.mubr.bf16.mxu1 %v1578_v8 }
 0x36a   :  { %v4223_v16 = vpop.f32.mrb[87].mxu0 }
 0x36b   :  { %v4224_v20 = vadd.f32 %v4223_v16, %v4222_v10  ;;  %v1556_v22 = vmul.f32 %v4221_v50, %v5941_v0 }
 0x36d   :  { %v1557_v40 = vmul.f32 %v4224_v20, %v5943_v24 }
 0x36f   :  { %v4225_v32 = vpop.f32.mrb[88].mxu0  ;;  %v1579_v11 = vpack.c.bf16 %v1557_v40, %v1556_v22 }
 0x370   :  { %v4226_v48 = vpop.f32.mrb[89].mxu0 }
 0x371   :  { %v4227_v55 = vadd.f32 %v4226_v48, %v4225_v32  ;;  %v4228_v56 = vpop.f32.mrb[90].mxu0  ;;  %4782 = vmatmul.mubr.bf16.gmra.mrb[64].mxu1 %v1579_v11 }
 0x372   :  { %v4229_v61 = vpop.f32.mrb[91].mxu0 }
 0x373   :  { %v4230_v62 = vadd.f32 %v4229_v61, %v4228_v56  ;;  %v1558_v52 = vmul.f32 %v4227_v55, %v5945_v1 }
 0x375   :  { %v1559_v42 = vmul.f32 %v4230_v62, %v5947_v29 }
 0x377   :  { %v4231_v27 = vpop.f32.mrb[92].mxu0  ;;  %v1580_v38 = vpack.c.bf16 %v1559_v42, %v1558_v52 }
 0x378   :  { %v4232_v21 = vpop.f32.mrb[93].mxu0 }
 0x379   :  { %v4233_v17 = vadd.f32 %v4232_v21, %v4231_v27  ;;  %v4234_v43 = vpop.f32.mrb[94].mxu0  ;;  %4785 = vmatprep.mubr.bf16.mxu1 %v1580_v38  ;;  %v6372_v27 = vpop.permute.xlu1 %2178 }
 0x37a   :  { %v4235_v0 = vpop.f32.mrb[95].mxu0  ;;  %v6374_v38 = vpop.permute.xlu0 %2173 }
 0x37b   :  { %v4236_v24 = vadd.f32 %v4235_v0, %v4234_v43  ;;  %v1560_v57 = vmul.f32 %v4233_v17, %v5949_v6 }
 0x37d   :  { %v1561_v58 = vmul.f32 %v4236_v24, %v5951_v13 }
 0x37f   :  { %v4237_v63 = vpop.f32.mrb[96].mxu0  ;;  %v1581_v53 = vpack.c.bf16 %v1561_v58, %v1560_v57  ;;  %v6399_v58 = vld [vmem:[%s7736_s9] ss:$0 sm:$0xff] }
 0x380   :  { %v4238_v54 = vpop.f32.mrb[97].mxu0 }
 0x381   :  { %v4239_v36 = vadd.f32 %v4238_v54, %v4237_v63  ;;  %v4240_v37 = vpop.f32.mrb[98].mxu0  ;;  %4786 = vmatmul.mubr.bf16.gmra.mrb[68].mxu1 %v1581_v53 }
 0x382   :  { %v4241_v1 = vpop.f32.mrb[99].mxu0 }
 0x383   :  { %v4242_v29 = vadd.f32 %v4241_v1, %v4240_v37  ;;  %v1562_v44 = vmul.f32 %v4239_v36, %v5953_v7 }
 0x385   :  { %v1563_v34 = vmul.f32 %v4242_v29, %v5960_v15 }
 0x387   :  { %v4243_v59 = vpop.f32.mrb[100].mxu0  ;;  %v1582_v60 = vpack.c.bf16 %v1563_v34, %v1562_v44 }
 0x388   :  { %v4244_v47 = vpop.f32.mrb[101].mxu0 }
 0x389   :  { %v4245_v51 = vadd.f32 %v4244_v47, %v4243_v59  ;;  %v4246_v4 = vpop.f32.mrb[102].mxu0  ;;  %4789 = vmatprep.mubr.bf16.mxu1 %v1582_v60 }
 0x38a   :  { %v4247_v6 = vpop.f32.mrb[103].mxu0 }
 0x38b   :  { %v4248_v13 = vadd.f32 %v4247_v6, %v4246_v4  ;;  %v1564_v8 = vmul.f32 %v4245_v51, %v5967_v9 }
 0x38d   :  { %v1565_v12 = vmul.f32 %v4248_v13, %v5974_v49 }
 0x38f   :  { %v4249_v50 = vpop.f32.mrb[104].mxu0  ;;  %v1583_v10 = vpack.c.bf16 %v1565_v12, %v1564_v8 }
 0x390   :  { %v4250_v16 = vpop.f32.mrb[105].mxu0 }
 0x391   :  { %v4251_v20 = vadd.f32 %v4250_v16, %v4249_v50  ;;  %v4252_v22 = vpop.f32.mrb[106].mxu0  ;;  %4790 = vmatmul.mubr.bf16.gmra.mrb[72].mxu1 %v1583_v10 }
 0x392   :  { %v4253_v7 = vpop.f32.mrb[107].mxu0 }
 0x393   :  { %v4254_v15 = vadd.f32 %v4253_v7, %v4252_v22  ;;  %v1566_v40 = vmul.f32 %v4251_v20, %v5987_v31  ;;  %v6376_v31 = vpop.permute.xlu1 %2098 }
 0x394   :  { %7942 = vst [vmem:[#allocation19_spill] sm:$0xff] %v6376_v31 }
 0x395   :  { %v1567_v32 = vmul.f32 %v4254_v15, %v5994_v23  ;;  %v6378_v23 = vpop.permute.xlu0 %2093 }
 0x397   :  { %v4255_v11 = vpop.f32.mrb[108].mxu0  ;;  %v1584_v48 = vpack.c.bf16 %v1567_v32, %v1566_v40  ;;  %v6380_v21 = vpop.permute.xlu1 %2188 }
 0x398   :  { %v4256_v55 = vpop.f32.mrb[109].mxu0  ;;  %7943 = vst [vmem:[#allocation20_spill] sm:$0xff] %v6380_v21 }
 0x399   :  { %v4257_v56 = vadd.f32 %v4256_v55, %v4255_v11  ;;  %v4258_v61 = vpop.f32.mrb[110].mxu0  ;;  %4793 = vmatprep.mubr.bf16.mxu1 %v1584_v48  ;;  %v6382_v17 = vpop.permute.xlu0 %2183 }
 0x39a   :  { %v4259_v9 = vpop.f32.mrb[111].mxu0 }
 0x39b   :  { %v4260_v49 = vadd.f32 %v4259_v9, %v4258_v61  ;;  %v1568_v62 = vmul.f32 %v4257_v56, %v6007_v3  ;;  %v6384_v43 = vpop.permute.xlu1 %2108 }
 0x39c   :  { %7944 = vst [vmem:[#allocation21_spill] sm:$0xff] %v6384_v43 }
 0x39d   :  { %v1569_v52 = vmul.f32 %v4260_v49, %v6014_v30  ;;  %v6386_v0 = vpop.permute.xlu0 %2103 }
 0x39e   :  { %7945 = vst [vmem:[#allocation22_spill] sm:$0xff] %v6386_v0 }
 0x39f   :  { %v1585_v42 = vpack.c.bf16 %v1569_v52, %v1568_v62  ;;  %v6388_v3 = vpop.permute.xlu1 %2198 }
 0x3a1   :  { %4794 = vmatmul.mubr.bf16.gmra.mrb[76].mxu1 %v1585_v42  ;;  %v6390_v30 = vpop.permute.xlu0 %2193 }
 0x3a3   :  { %v6392_v24 = vpop.permute.xlu1 %2118 }
 0x3a4   :  { %7946 = vst [vmem:[#allocation23_spill] sm:$0xff] %v6392_v24 }
 0x3a5   :  { %v6394_v57 = vpop.permute.xlu0 %2113 }
 0x3a6   :  { %7947 = vst [vmem:[#allocation24_spill] sm:$0xff] %v6394_v57 }
 0x3a7   :  { %v6401_v63 = vpop.permute.xlu1 %2208 }
 0x3a9   :  { %v6403_v53 = vpop.permute.xlu0 %2203 }
 0x3ab   :  { %v6419_v51 = vpop.permute.xlu1 %2128 }
 0x3ac   :  { %7950 = vst [vmem:[#allocation27_spill] sm:$0xff] %v6419_v51 }
 0x3ad   :  { %v6422_v6 = vpop.permute.xlu0 %2123 }
 0x3ae   :  { %7951 = vst [vmem:[#allocation28_spill] sm:$0xff] %v6422_v6 }
 0x3af   :  { %v6449_v22 = vpop.permute.xlu1 %2218 }
 0x3b1   :  { %v6451_v7 = vpop.permute.xlu0 %2213 }
 0x3b3   :  { %v6453_v40 = vpop.permute.xlu1 %2138 }
 0x3b4   :  { %7952 = vst [vmem:[#allocation29_spill] sm:$0xff] %v6453_v40 }
 0x3b5   :  { %v6458_v48 = vpop.permute.xlu0 %2133 }
 0x3b6   :  { %7954 = vst [vmem:[#allocation31_spill] sm:$0xff] %v6458_v48 }
 0x404   :  { %v4767_v54 = vpop.f32.mrb[48].mxu1 }
 0x405   :  { %v6406_v36 = vadd.f32 %v4767_v54, %v6399_v58  ;;  %v1877_v37 = vpop.f32.mrb[49].mxu1 }
 0x406   :  { %v6409_v1 = vadd.f32 %v6399_v58, %v1877_v37  ;;  %v4768_v29 = vpop.f32.mrb[50].mxu1  ;;  %v6473_v37 = vpop.permute.xlu1 %2228 }
 0x407   :  { %7948 = vst [vmem:[#allocation25_spill] sm:$0xff] %v6406_v36  ;;  %v7765_v44 = vmax.f32 %v6406_v36, 0.0  ;;  %v6413_v34 = vadd.f32 %v4768_v29, %v6399_v58  ;;  %v1880_v59 = vpop.f32.mrb[51].mxu1 }
 0x408   :  { %v7768_v60 = vmax.f32 %v6409_v1, 0.0  ;;  %v6417_v47 = vadd.f32 %v6399_v58, %v1880_v59 }
 0x409   :  { %7949 = vst [vmem:[#allocation26_spill] sm:$0xff] %v6413_v34  ;;  %v7764_v4 = vmax.f32 %v6413_v34, 0.0  ;;  %v6428_v8 = vmul.f32 %v6386_v0, %v7765_v44 }
 0x40a   :  { %v7766_v13 = vmax.f32 %v6417_v47, 0.0  ;;  %v6438_v50 = vmul.f32 %v6378_v23, %v7768_v60 }
 0x40b   :  { %v6433_v12 = vmul.f32 %v6384_v43, %v7764_v4 }
 0x40c   :  { %v6443_v10 = vmul.f32 %v6376_v31, %v7766_v13 }
 0x414   :  { %v4771_v15 = vpop.f32.mrb[52].mxu1 }
 0x415   :  { %v6456_v32 = vadd.f32 %v4771_v15, %v6399_v58  ;;  %v1893_v11 = vpop.f32.mrb[53].mxu1  ;;  %v6485_v15 = vpop.permute.xlu0 %2223 }
 0x416   :  { %v6461_v55 = vadd.f32 %v6399_v58, %v1893_v11  ;;  %v4772_v56 = vpop.f32.mrb[54].mxu1 }
 0x417   :  { %7953 = vst [vmem:[#allocation30_spill] sm:$0xff] %v6456_v32  ;;  %v7762_v61 = vmax.f32 %v6456_v32, 0.0  ;;  %v6465_v9 = vadd.f32 %v4772_v56, %v6399_v58  ;;  %v1896_v49 = vpop.f32.mrb[55].mxu1 }
 0x418   :  { %7955 = vst [vmem:[#allocation32_spill] sm:$0xff] %v6461_v55  ;;  %v7767_v62 = vmax.f32 %v6461_v55, 0.0  ;;  %v6469_v52 = vadd.f32 %v6399_v58, %v1896_v49 }
 0x419   :  { %7956 = vst [vmem:[#allocation33_spill] sm:$0xff] %v6465_v9  ;;  %v7763_v42 = vmax.f32 %v6465_v9, 0.0  ;;  %v6478_v29 = vmul.f32 %v6422_v6, %v7762_v61  ;;  %v6503_v4 = vpop.permute.xlu0 %2143 }
 0x41a   :  { %7957 = vst [vmem:[#allocation34_spill] sm:$0xff] %v6469_v52  ;;  %v7769_v54 = vmax.f32 %v6469_v52, 0.0  ;;  %v6490_v11 = vmul.f32 %v6394_v57, %v7767_v62  ;;  %7959 = vst [vmem:[#allocation36_spill] sm:$0xff] %v6503_v4 }
 0x41b   :  { %v6483_v59 = vmul.f32 %v6419_v51, %v7763_v42  ;;  %v6501_v42 = vpop.permute.xlu1 %2148 }
 0x41c   :  { %v6495_v56 = vmul.f32 %v6392_v24, %v7769_v54  ;;  %7958 = vst [vmem:[#allocation35_spill] sm:$0xff] %v6501_v42 }
 0x41d   :  { %v6517_v51 = vpop.permute.xlu0 %2233 }
 0x41f   :  { %v6511_v16 = vpop.permute.xlu1 %2238 }
 0x423   :  { %v6545_v52 = vpop.permute.xlu1 %2158 }
 0x424   :  { %v4775_v44 = vpop.f32.mrb[56].mxu1  ;;  %7964 = vst [vmem:[#allocation41_spill] sm:$0xff] %v6545_v52 }
 0x425   :  { %v6506_v13 = vadd.f32 %v4775_v44, %v6399_v58  ;;  %v1909_v62 = vpop.f32.mrb[57].mxu1 }
 0x426   :  { %v6509_v60 = vadd.f32 %v6399_v58, %v1909_v62  ;;  %v4776_v54 = vpop.f32.mrb[58].mxu1 }
 0x427   :  { %7960 = vst [vmem:[#allocation37_spill] sm:$0xff] %v6506_v13  ;;  %v7779_v49 = vmax.f32 %v6506_v13, 0.0  ;;  %v6515_v20 = vadd.f32 %v4776_v54, %v6399_v58  ;;  %v1912_v61 = vpop.f32.mrb[59].mxu1 }
 0x428   :  { %7961 = vst [vmem:[#allocation38_spill] sm:$0xff] %v6509_v60  ;;  %v7786_v9 = vmax.f32 %v6509_v60, 0.0  ;;  %v6521_v44 = vadd.f32 %v6399_v58, %v1912_v61 }
 0x429   :  { %7962 = vst [vmem:[#allocation39_spill] sm:$0xff] %v6515_v20  ;;  %v7782_v6 = vmax.f32 %v6515_v20, 0.0  ;;  %v6528_v32 = vmul.f32 %v6503_v4, %v7779_v49  ;;  %v6549_v4 = vpop.permute.xlu0 %2153 }
 0x42a   :  { %7963 = vst [vmem:[#allocation40_spill] sm:$0xff] %v6521_v44  ;;  %v7788_v62 = vmax.f32 %v6521_v44, 0.0  ;;  %v6538_v24 = vmul.f32 %v6458_v48, %v7786_v9  ;;  %7965 = vst [vmem:[#allocation42_spill] sm:$0xff] %v6549_v4 }
 0x42b   :  { %v6533_v54 = vmul.f32 %v6501_v42, %v7782_v6  ;;  %v6553_v42 = vpop.permute.xlu1 %2248 }
 0x42c   :  { %v6543_v61 = vmul.f32 %v6453_v40, %v7788_v62  ;;  %7966 = vst [vmem:[#allocation43_spill] sm:$0xff] %v6553_v42 }
 0x42d   :  { %v6555_v20 = vpop.permute.xlu0 %2243 }
 0x431   :  { %v6574_v43 = vpop.permute.xlu0 %2163 }
 0x432   :  { %7972 = vst [vmem:[#allocation49_spill] sm:$0xff] %v6574_v43 }
 0x434   :  { %v4779_v9 = vpop.f32.mrb[60].mxu1 }
 0x435   :  { %v6558_v13 = vadd.f32 %v4779_v9, %v6399_v58  ;;  %v1925_v62 = vpop.f32.mrb[61].mxu1  ;;  %v6572_v9 = vpop.permute.xlu1 %2168 }
 0x436   :  { %v6561_v40 = vadd.f32 %v6399_v58, %v1925_v62  ;;  %v4780_v44 = vpop.f32.mrb[62].mxu1  ;;  %7971 = vst [vmem:[#allocation48_spill] sm:$0xff] %v6572_v9 }
 0x437   :  { %7967 = vst [vmem:[#allocation44_spill] sm:$0xff] %v6558_v13  ;;  %v7804_v49 = vmax.f32 %v6558_v13, 0.0  ;;  %v6565_v48 = vadd.f32 %v4780_v44, %v6399_v58  ;;  %v1928_v60 = vpop.f32.mrb[63].mxu1 }
 0x438   :  { %7968 = vst [vmem:[#allocation45_spill] sm:$0xff] %v6561_v40  ;;  %v7811_v6 = vmax.f32 %v6561_v40, 0.0  ;;  %v6569_v57 = vadd.f32 %v6399_v58, %v1928_v60 }
 0x439   :  { %7969 = vst [vmem:[#allocation46_spill] sm:$0xff] %v6565_v48  ;;  %v7806_v55 = vmax.f32 %v6565_v48, 0.0  ;;  %v6580_v34 = vmul.f32 %v6574_v43, %v7804_v49 }
 0x43a   :  { %7970 = vst [vmem:[#allocation47_spill] sm:$0xff] %v6569_v57  ;;  %v7813_v62 = vmax.f32 %v6569_v57, 0.0  ;;  %v6590_v60 = vmul.f32 %v6549_v4, %v7811_v6 }
 0x43b   :  { %v6585_v44 = vmul.f32 %v6572_v9, %v7806_v55 }
 0x43c   :  { %v6595_v0 = vmul.f32 %v6545_v52, %v7813_v62 }
 0x444   :  { %v4783_v48 = vpop.f32.mrb[64].mxu1 }
 0x445   :  { %v6602_v55 = vadd.f32 %v4783_v48, %v6399_v58  ;;  %v1941_v9 = vpop.f32.mrb[65].mxu1 }
 0x446   :  { %v6605_v43 = vadd.f32 %v6399_v58, %v1941_v9  ;;  %v4784_v6 = vpop.f32.mrb[66].mxu1 }
 0x447   :  { %7973 = vst [vmem:[#allocation50_spill] sm:$0xff] %v6602_v55  ;;  %v7823_v57 = vmax.f32 %v6602_v55, 0.0  ;;  %v6609_v62 = vadd.f32 %v4784_v6, %v6399_v58  ;;  %v1944_v52 = vpop.f32.mrb[67].mxu1  ;;  %v7975_v55 = vpack.c.bf16 %v6443_v10, %v6438_v50 }
 0x448   :  { %v7826_v13 = vmax.f32 %v6605_v43, 0.0  ;;  %v6613_v4 = vadd.f32 %v6399_v58, %v1944_v52 }
 0x449   :  { %7974 = vst [vmem:[#allocation51_spill] sm:$0xff] %v6609_v62  ;;  %v7825_v49 = vmax.f32 %v6609_v62, 0.0  ;;  %v2269_v9 = vmul.f32 %v6382_v17, %v7823_v57 }
 0x44a   :  { %v7832_v48 = vmax.f32 %v6613_v4, 0.0  ;;  %v2267_v6 = vmul.f32 %v6374_v38, %v7826_v13  ;;  %v7976_v13 = vpack.c.bf16 %v6433_v12, %v6428_v8 }
 0x44b   :  { %v2270_v40 = vmul.f32 %v6380_v21, %v7825_v49 }
 0x44c   :  { %v2268_v52 = vmul.f32 %v6372_v27, %v7832_v48 }
 0x44d   :  { %v2292_v36 = vpack.c.bf16 %v2270_v40, %v2269_v9 }
 0x44e   :  { %v2291_v31 = vpack.c.bf16 %v2268_v52, %v2267_v6 }
 0x450   :  { %4309 = vmatprep.subr.bf16.mxu0 %v2291_v31 }
 0x451   :  { %4310 = vmatpush3.bf16.msra.mxu0 %v7975_v55 }
 0x452   :  { %4311 = vmatprep.subr.bf16.mxu0 %v2292_v36 }
 0x454   :  { %v4787_v57 = vpop.f32.mrb[68].mxu1 }
 0x455   :  { %v6633_v62 = vadd.f32 %v4787_v57, %v6399_v58  ;;  %v1957_v49 = vpop.f32.mrb[69].mxu1  ;;  %4312 = vmatpush3.bf16.msra.mxu0 %v7976_v13 }
 0x456   :  { %v6639_v21 = vadd.f32 %v6399_v58, %v1957_v49  ;;  %v4788_v40 = vpop.f32.mrb[70].mxu1 }
 0x457   :  { %v7829_v31 = vmax.f32 %v6633_v62, 0.0  ;;  %v6643_v9 = vadd.f32 %v4788_v40, %v6399_v58  ;;  %v1960_v50 = vpop.f32.mrb[71].mxu1  ;;  %v7977_v40 = vpack.c.bf16 %v6495_v56, %v6490_v11 }
 0x458   :  { %v7831_v36 = vmax.f32 %v6639_v21, 0.0  ;;  %v6647_v57 = vadd.f32 %v6399_v58, %v1960_v50 }
 0x459   :  { %v7830_v10 = vmax.f32 %v6643_v9, 0.0  ;;  %v2273_v13 = vmul.f32 %v6403_v53, %v7829_v31 }
 0x45a   :  { %v7836_v8 = vmax.f32 %v6647_v57, 0.0  ;;  %v2271_v55 = vmul.f32 %v6390_v30, %v7831_v36  ;;  %v7978_v36 = vpack.c.bf16 %v6483_v59, %v6478_v29 }
 0x45b   :  { %v2274_v12 = vmul.f32 %v6401_v63, %v7830_v10 }
 0x45c   :  { %v2272_v49 = vmul.f32 %v6388_v3, %v7836_v8 }
 0x45d   :  { %v2294_v6 = vpack.c.bf16 %v2274_v12, %v2273_v13 }
 0x45e   :  { %v2293_v52 = vpack.c.bf16 %v2272_v49, %v2271_v55 }
 0x460   :  { %4313 = vmatprep.subr.bf16.mxu0 %v2293_v52 }
 0x461   :  { %4314 = vmatpush3.bf16.msra.mxu0 %v7977_v40 }
 0x462   :  { %4315 = vmatprep.subr.bf16.mxu0 %v2294_v6 }
 0x464   :  { %v4791_v50 = vpop.f32.mrb[72].mxu1 }
 0x465   :  { %v6667_v31 = vadd.f32 %v4791_v50, %v6399_v58  ;;  %v1973_v10 = vpop.f32.mrb[73].mxu1  ;;  %4316 = vmatpush3.bf16.msra.mxu0 %v7978_v36 }
 0x466   :  { %v6673_v48 = vadd.f32 %v6399_v58, %v1973_v10  ;;  %v4792_v13 = vpop.f32.mrb[74].mxu1 }
 0x467   :  { %v7833_v12 = vmax.f32 %v6667_v31, 0.0  ;;  %v6677_v55 = vadd.f32 %v4792_v13, %v6399_v58  ;;  %v1976_v11 = vpop.f32.mrb[75].mxu1  ;;  %v7979_v13 = vpack.c.bf16 %v6543_v61, %v6538_v24 }
 0x468   :  { %v7835_v56 = vmax.f32 %v6673_v48, 0.0  ;;  %v6681_v49 = vadd.f32 %v6399_v58, %v1976_v11 }
 0x469   :  { %v7834_v6 = vmax.f32 %v6677_v55, 0.0  ;;  %v2277_v59 = vmul.f32 %v6485_v15, %v7833_v12 }
 0x46a   :  { %v7841_v29 = vmax.f32 %v6681_v49, 0.0  ;;  %v2275_v10 = vmul.f32 %v6451_v7, %v7835_v56  ;;  %v7980_v56 = vpack.c.bf16 %v6533_v54, %v6528_v32 }
 0x46b   :  { %v2278_v36 = vmul.f32 %v6473_v37, %v7834_v6 }
 0x46c   :  { %v2276_v52 = vmul.f32 %v6449_v22, %v7841_v29 }
 0x46d   :  { %v2296_v40 = vpack.c.bf16 %v2278_v36, %v2277_v59 }
 0x46e   :  { %v2295_v50 = vpack.c.bf16 %v2276_v52, %v2275_v10 }
 0x470   :  { %4317 = vmatprep.subr.bf16.mxu0 %v2295_v50 }
 0x471   :  { %4318 = vmatpush3.bf16.msra.mxu0 %v7979_v13 }
 0x472   :  { %4319 = vmatprep.subr.bf16.mxu0 %v2296_v40 }
 0x474   :  { %v4795_v11 = vpop.f32.mrb[76].mxu1 }
 0x475   :  { %v6701_v12 = vadd.f32 %v4795_v11, %v6399_v58  ;;  %v1989_v6 = vpop.f32.mrb[77].mxu1  ;;  %4320 = vmatpush3.bf16.msra.mxu0 %v7980_v56  ;;  %v7981_v11 = vpack.c.bf16 %v6595_v0, %v6590_v60  ;;  %v7993_v0 = vld [vmem:[#allocation12_spill] sm:$0xff]  ;;  %v7995_v60 = vld [vmem:[#allocation14_spill] sm:$0xff] }
 0x476   :  { %v6707_v8 = vadd.f32 %v6399_v58, %v1989_v6  ;;  %v4796_v59 = vpop.f32.mrb[78].mxu1 }
 0x477   :  { %v7838_v36 = vmax.f32 %v6701_v12, 0.0  ;;  %v6711_v10 = vadd.f32 %v4796_v59, %v6399_v58  ;;  %v1992_v24 = vpop.f32.mrb[79].mxu1  ;;  %v5120_v59 = vld [vmem:[%s7737_s10] sm:$0xff]  }
 0x478   :  { %v7840_v61 = vmax.f32 %v6707_v8, 0.0  ;;  %v6715_v52 = vadd.f32 %v6399_v58, %v1992_v24  ;;  %v5121_v24 = vld [vmem:[%s7737_s10 + $0x8] sm:$0xff]   ;;  %4797 = vmatprep.subr.bf16.mxu1 %v5120_v59 }
 0x479   :  { %v7837_v40 = vmax.f32 %v6711_v10, 0.0  ;;  %v2281_v54 = vmul.f32 %v6555_v20, %v7838_v36  ;;  %4798 = vmatpush3.bf16.msra.mxu1 %v5120_v59  ;;  %v8024_v36 = vld [vmem:[#allocation28_spill] sm:$0xff] }
 0x47a   :  { %v7839_v32 = vmax.f32 %v6715_v52, 0.0  ;;  %v2279_v6 = vmul.f32 %v6517_v51, %v7840_v61  ;;  %4799 = vmatprep.subr.bf16.mxu1 %v5121_v24 }
 0x47b   :  { %v2282_v56 = vmul.f32 %v6553_v42, %v7837_v40 }
 0x47c   :  { %v2280_v58 = vmul.f32 %v6511_v16, %v7839_v32 }
 0x47d   :  { %v2298_v50 = vpack.c.bf16 %v2282_v56, %v2281_v54  ;;  %v5122_v54 = vld [vmem:[%s7737_s10 + $0x10] sm:$0xff]   ;;  %v7982_v56 = vpack.c.bf16 %v6585_v44, %v6580_v34  ;;  %4800 = vmatpush3.bf16.msra.mxu1 %v5121_v24  ;;  %v7994_v34 = vld [vmem:[#allocation13_spill] sm:$0xff] }
 0x47e   :  { %v2297_v13 = vpack.c.bf16 %v2280_v58, %v2279_v6  ;;  %4801 = vmatprep.subr.bf16.mxu1 %v5122_v54  ;;  %v5127_v44 = vld [vmem:[%s7737_s10 + $0x38] sm:$0xff]   ;;  %v7996_v6 = vld [vmem:[#allocation15_spill] sm:$0xff]  ;;  %v7997_v58 = vld [vmem:[#allocation16_spill] sm:$0xff] }
 0x480   :  { %4321 = vmatprep.subr.bf16.mxu0 %v2297_v13  ;;  %v7999_v13 = vld [vmem:[#allocation18_spill] sm:$0xff] }
 0x481   :  { %4322 = vmatpush3.bf16.msra.mxu0 %v7981_v11  ;;  %4802 = vmatpush3.bf16.msra.mxu1 %v5122_v54 }
 0x482   :  { %4323 = vmatprep.subr.bf16.mxu0 %v2298_v50  ;;  %v7998_v50 = vld [vmem:[#allocation17_spill] sm:$0xff] }
 0x485   :  { %4324 = vmatpush3.bf16.msra.mxu0 %v7982_v56  ;;  %v6792_v56 = vpop.permute.xlu0 %2526 }
 0x488   :  { %2332 = vmatmul.mubr.bf16.vlgmr.msra.gmra.mrb[112].mxu0 %v6139_v2  ;;  %v7983_v2 = vld [vmem:[#allocation2_spill] sm:$0xff] }
 0x489   :  { %2339 = vmatprep.mubr.bf16.mxu0 %v6145_v26  ;;  %v7984_v26 = vld [vmem:[#allocation3_spill] sm:$0xff]  ;;  %8000 = vst [vmem:[#allocation2_spill] sm:$0xff] %v6792_v56 }
 0x490   :  { %2340 = vmatmul.mubr.bf16.gmra.mrb[116].mxu0 %v6154_v33  ;;  %v7985_v33 = vld [vmem:[#allocation4_spill] sm:$0xff] }
 0x491   :  { %2347 = vmatprep.mubr.bf16.mxu0 %v6160_v28  ;;  %v7986_v28 = vld [vmem:[#allocation5_spill] sm:$0xff] }
 0x498   :  { %2348 = vmatmul.mubr.bf16.gmra.mrb[120].mxu0 %v6166_v41  ;;  %v7987_v41 = vld [vmem:[#allocation6_spill] sm:$0xff] }
 0x499   :  { %2355 = vmatprep.mubr.bf16.mxu0 %v6172_v5  ;;  %v7988_v5 = vld [vmem:[#allocation7_spill] sm:$0xff] }
 0x4a0   :  { %2356 = vmatmul.mubr.bf16.gmra.mrb[124].mxu0 %v6178_v45  ;;  %v7989_v45 = vld [vmem:[#allocation8_spill] sm:$0xff] }
 0x4a1   :  { %2363 = vmatprep.mubr.bf16.mxu0 %v6184_v25  ;;  %v7990_v25 = vld [vmem:[#allocation9_spill] sm:$0xff] }
 0x4a8   :  { %2364 = vmatmul.mubr.bf16.gmra.mrb[128].mxu0 %v6190_v46  ;;  %v5123_v46 = vld [vmem:[%s7737_s10 + $0x18] sm:$0xff]  }
 0x4a9   :  { %2371 = vmatprep.mubr.bf16.mxu0 %v6196_v14  ;;  %4803 = vmatprep.subr.bf16.mxu1 %v5123_v46  ;;  %v5124_v14 = vld [vmem:[%s7737_s10 + $0x20] sm:$0xff]  }
 0x4aa   :  { %4804 = vmatpush3.bf16.msra.mxu1 %v5123_v46 }
 0x4ab   :  { %4805 = vmatprep.subr.bf16.mxu1 %v5124_v14 }
 0x4ae   :  { %4806 = vmatpush3.bf16.msra.mxu1 %v5124_v14  ;;  %v8004_v14 = vld [vmem:[#allocation19_spill] sm:$0xff] }
 0x4b0   :  { %2372 = vmatmul.mubr.bf16.gmra.mrb[132].mxu0 %v6202_v18  ;;  %v7991_v18 = vld [vmem:[#allocation10_spill] sm:$0xff] }
 0x4b1   :  { %2379 = vmatprep.mubr.bf16.mxu0 %v6208_v35  ;;  %v7992_v35 = vld [vmem:[#allocation11_spill] sm:$0xff] }
 0x4b8   :  { %2380 = vmatmul.mubr.bf16.gmra.mrb[136].mxu0 %v6214_v19  ;;  %v5125_v19 = vld [vmem:[%s7737_s10 + $0x28] sm:$0xff]  }
 0x4b9   :  { %2387 = vmatprep.mubr.bf16.mxu0 %v6220_v39  ;;  %4807 = vmatprep.subr.bf16.mxu1 %v5125_v19  ;;  %v5126_v39 = vld [vmem:[%s7737_s10 + $0x30] sm:$0xff]  }
 0x4ba   :  { %4808 = vmatpush3.bf16.msra.mxu1 %v5125_v19 }
 0x4bb   :  { %4809 = vmatprep.subr.bf16.mxu1 %v5126_v39 }
 0x4be   :  { %4810 = vmatpush3.bf16.msra.mxu1 %v5126_v39 }
 0x4bf   :  { %4811 = vmatprep.subr.bf16.mxu1 %v5127_v44 }
 0x4c0   :  { %2388 = vmatmul.mubr.bf16.gmra.mrb[140].mxu0 %v7983_v2 }
 0x4c1   :  { %2395 = vmatprep.mubr.bf16.mxu0 %v7984_v26  ;;  %v8001_v26 = vmax.f32 %v6409_v1, 0.0 }
 0x4c2   :  { %4812 = vmatpush3.bf16.msra.mxu1 %v5127_v44  ;;  %v6804_v44 = vpop.permute.xlu0 %2536 }
 0x4c3   :  { %8005 = vst [vmem:[#allocation4_spill] sm:$0xff] %v6804_v44 }
 0x4c8   :  { %2396 = vmatmul.mubr.bf16.gmra.mrb[144].mxu0 %v7985_v33  ;;  %v2684_v33 = vmul.f32 %v6792_v56, %v8001_v26 }
 0x4c9   :  { %2403 = vmatprep.mubr.bf16.mxu0 %v7986_v28 }
 0x4d0   :  { %2404 = vmatmul.mubr.bf16.gmra.mrb[148].mxu0 %v7987_v41 }
 0x4d1   :  { %2411 = vmatprep.mubr.bf16.mxu0 %v7988_v5  ;;  %v6798_v5 = vpop.permute.xlu1 %2531 }
 0x4d2   :  { %8002 = vst [vmem:[#allocation3_spill] sm:$0xff] %v6798_v5 }
 0x4d8   :  { %2412 = vmatmul.mubr.bf16.gmra.mrb[152].mxu0 %v7989_v45  ;;  %v8003_v45 = vmax.f32 %v6417_v47, 0.0 }
 0x4d9   :  { %2419 = vmatprep.mubr.bf16.mxu0 %v7990_v25 }
 0x4da   :  { %v2685_v25 = vmul.f32 %v6798_v5, %v8003_v45 }
 0x4e0   :  { %2420 = vmatmul.mubr.bf16.gmra.mrb[156].mxu0 %v7991_v18 }
 0x4e1   :  { %2427 = vmatprep.mubr.bf16.mxu0 %v7992_v35 }
 0x4e8   :  { %2428 = vmatmul.mubr.bf16.gmra.mrb[160].mxu0 %v7993_v0 }
 0x4e9   :  { %2435 = vmatprep.mubr.bf16.mxu0 %v7994_v34 }
 0x4f0   :  { %2436 = vmatmul.mubr.bf16.gmra.mrb[164].mxu0 %v7995_v60 }
 0x4f1   :  { %2443 = vmatprep.mubr.bf16.mxu0 %v7996_v6  ;;  %v8006_v6 = vld [vmem:[#allocation25_spill] sm:$0xff] }
 0x4f8   :  { %2444 = vmatmul.mubr.bf16.gmra.mrb[168].mxu0 %v7997_v58  ;;  %v8007_v58 = vmax.f32 %v8006_v6, 0.0 }
 0x4f9   :  { %2451 = vmatprep.mubr.bf16.mxu0 %v7998_v50 }
 0x4fa   :  { %v2686_v50 = vmul.f32 %v6804_v44, %v8007_v58 }
 0x500   :  { %2452 = vmatmul.mubr.bf16.gmra.mrb[172].mxu0 %v7999_v13  ;;  %v8008_v13 = vld [vmem:[#allocation22_spill] sm:$0xff] }
 0x55b   :  { %v4325_v11 = vpop.f32.mrb[112].mxu0 }
 0x55c   :  { %v4326_v59 = vpop.f32.mrb[113].mxu0 }
 0x55d   :  { %v4327_v24 = vadd.f32 %v4326_v59, %v4325_v11  ;;  %v4328_v54 = vpop.f32.mrb[114].mxu0  ;;  %v6810_v59 = vpop.permute.xlu1 %2541 }
 0x55e   :  { %v4329_v2 = vpop.f32.mrb[115].mxu0  ;;  %8009 = vst [vmem:[#allocation5_spill] sm:$0xff] %v6810_v59 }
 0x55f   :  { %v2460_v28 = vmul.f32 %v4327_v24, %v6378_v23  ;;  %v4330_v41 = vadd.f32 %v4329_v2, %v4328_v54  ;;  %v8010_v24 = vld [vmem:[#allocation26_spill] sm:$0xff] }
 0x560   :  { %v8011_v54 = vmax.f32 %v8010_v24, 0.0 }
 0x561   :  { %v2716_v46 = vadd.f32 %v2684_v33, %v2460_v28  ;;  %v2461_v18 = vmul.f32 %v4330_v41, %v8004_v14  ;;  %v8012_v33 = vld [vmem:[#allocation21_spill] sm:$0xff] }
 0x562   :  { %v2687_v2 = vmul.f32 %v6810_v59, %v8011_v54 }
 0x563   :  { %v2717_v35 = vadd.f32 %v2685_v25, %v2461_v18  ;;  %v4331_v19 = vpop.f32.mrb[116].mxu0 }
 0x564   :  { %v4332_v39 = vpop.f32.mrb[117].mxu0 }
 0x565   :  { %v4333_v0 = vadd.f32 %v4332_v39, %v4331_v19  ;;  %v4334_v34 = vpop.f32.mrb[118].mxu0  ;;  %v2748_v1 = vpack.c.bf16 %v2717_v35, %v2716_v46  ;;  %v6816_v19 = vpop.permute.xlu0 %2546 }
 0x566   :  { %v4335_v60 = vpop.f32.mrb[119].mxu0  ;;  %8013 = vst [vmem:[#allocation6_spill] sm:$0xff] %v6816_v19 }
 0x567   :  { %v2462_v47 = vmul.f32 %v4333_v0, %v8008_v13  ;;  %v4336_v11 = vadd.f32 %v4335_v60, %v4334_v34  ;;  %4813 = vmatprep.mubr.bf16.mxu1 %v2748_v1  ;;  %v8014_v0 = vld [vmem:[#allocation32_spill] sm:$0xff] }
 0x568   :  { %v8015_v34 = vmax.f32 %v8014_v0, 0.0  ;;  %v8016_v60 = vld [vmem:[#allocation24_spill] sm:$0xff] }
 0x569   :  { %v2718_v26 = vadd.f32 %v2686_v50, %v2462_v47  ;;  %v2463_v28 = vmul.f32 %v4336_v11, %v8012_v33  ;;  %v6822_v50 = vpop.permute.xlu1 %2551  ;;  %v8018_v47 = vld [vmem:[#allocation34_spill] sm:$0xff] }
 0x56a   :  { %v2688_v1 = vmul.f32 %v6816_v19, %v8015_v34  ;;  %8017 = vst [vmem:[#allocation7_spill] sm:$0xff] %v6822_v50  ;;  %v8019_v11 = vmax.f32 %v8018_v47, 0.0  ;;  %v6828_v34 = vpop.permute.xlu0 %2556 }
 0x56b   :  { %v2719_v41 = vadd.f32 %v2687_v2, %v2463_v28  ;;  %v4337_v45 = vpop.f32.mrb[120].mxu0  ;;  %v8020_v2 = vld [vmem:[#allocation23_spill] sm:$0xff]  ;;  %8021 = vst [vmem:[#allocation8_spill] sm:$0xff] %v6828_v34 }
 0x56c   :  { %v4338_v25 = vpop.f32.mrb[121].mxu0  ;;  %v2689_v24 = vmul.f32 %v6822_v50, %v8019_v11 }
 0x56d   :  { %v2749_v46 = vpack.c.bf16 %v2719_v41, %v2718_v26  ;;  %v4339_v18 = vadd.f32 %v4338_v25, %v4337_v45  ;;  %v4340_v35 = vpop.f32.mrb[122].mxu0 }
 0x56e   :  { %v4341_v39 = vpop.f32.mrb[123].mxu0 }
 0x56f   :  { %v2464_v6 = vmul.f32 %v4339_v18, %v8016_v60  ;;  %v4342_v58 = vadd.f32 %v4341_v39, %v4340_v35  ;;  %4814 = vmatmul.mubr.bf16.vlgmr.msra.gmra.mrb[80].mxu1 %v2749_v46  ;;  %v8022_v35 = vld [vmem:[#allocation30_spill] sm:$0xff] }
 0x570   :  { %v8023_v46 = vmax.f32 %v8022_v35, 0.0 }
 0x571   :  { %v2720_v54 = vadd.f32 %v2688_v1, %v2464_v6  ;;  %v2465_v26 = vmul.f32 %v4342_v58, %v8020_v2  ;;  %v6834_v1 = vpop.permute.xlu1 %2561  ;;  %v8026_v6 = vld [vmem:[#allocation33_spill] sm:$0xff] }
 0x572   :  { %v2690_v39 = vmul.f32 %v6828_v34, %v8023_v46  ;;  %8025 = vst [vmem:[#allocation9_spill] sm:$0xff] %v6834_v1  ;;  %v8027_v58 = vmax.f32 %v8026_v6, 0.0  ;;  %v6840_v46 = vpop.permute.xlu0 %2566  ;;  %v8032_v34 = vld [vmem:[#allocation31_spill] sm:$0xff] }
 0x573   :  { %v2721_v28 = vadd.f32 %v2689_v24, %v2465_v26  ;;  %v4343_v41 = vpop.f32.mrb[124].mxu0  ;;  %v8028_v26 = vld [vmem:[#allocation27_spill] sm:$0xff]  ;;  %8029 = vst [vmem:[#allocation10_spill] sm:$0xff] %v6840_v46 }
 0x574   :  { %v4344_v45 = vpop.f32.mrb[125].mxu0  ;;  %v2691_v11 = vmul.f32 %v6834_v1, %v8027_v58 }
 0x575   :  { %v4345_v25 = vadd.f32 %v4344_v45, %v4343_v41  ;;  %v4346_v0 = vpop.f32.mrb[126].mxu0  ;;  %v2750_v40 = vpack.c.bf16 %v2721_v28, %v2720_v54 }
 0x576   :  { %v4347_v18 = vpop.f32.mrb[127].mxu0 }
 0x577   :  { %v2466_v47 = vmul.f32 %v4345_v25, %v8024_v36  ;;  %v4348_v32 = vadd.f32 %v4347_v18, %v4346_v0  ;;  %4817 = vmatprep.mubr.bf16.mxu1 %v2750_v40  ;;  %v8030_v0 = vld [vmem:[#allocation38_spill] sm:$0xff] }
 0x578   :  { %v8031_v40 = vmax.f32 %v8030_v0, 0.0 }
 0x579   :  { %v2722_v24 = vadd.f32 %v2690_v39, %v2466_v47  ;;  %v2467_v54 = vmul.f32 %v4348_v32, %v8028_v26  ;;  %v6846_v39 = vpop.permute.xlu1 %2571  ;;  %v8034_v32 = vld [vmem:[#allocation40_spill] sm:$0xff] }
 0x57a   :  { %v2692_v18 = vmul.f32 %v6840_v46, %v8031_v40  ;;  %8033 = vst [vmem:[#allocation11_spill] sm:$0xff] %v6846_v39  ;;  %v8035_v47 = vmax.f32 %v8034_v32, 0.0  ;;  %v6852_v40 = vpop.permute.xlu0 %2576  ;;  %v8040_v46 = vld [vmem:[#allocation36_spill] sm:$0xff] }
 0x57b   :  { %v2723_v28 = vadd.f32 %v2691_v11, %v2467_v54  ;;  %v4349_v41 = vpop.f32.mrb[128].mxu0  ;;  %v8036_v54 = vld [vmem:[#allocation29_spill] sm:$0xff]  ;;  %8037 = vst [vmem:[#allocation12_spill] sm:$0xff] %v6852_v40 }
 0x57c   :  { %v4350_v45 = vpop.f32.mrb[129].mxu0  ;;  %v2693_v58 = vmul.f32 %v6846_v39, %v8035_v47 }
 0x57d   :  { %v4351_v61 = vadd.f32 %v4350_v45, %v4349_v41  ;;  %v4352_v35 = vpop.f32.mrb[130].mxu0  ;;  %v2751_v29 = vpack.c.bf16 %v2723_v28, %v2722_v24 }
 0x57e   :  { %v4353_v25 = vpop.f32.mrb[131].mxu0 }
 0x57f   :  { %v2468_v6 = vmul.f32 %v4351_v61, %v8032_v34  ;;  %v4354_v50 = vadd.f32 %v4353_v25, %v4352_v35  ;;  %4818 = vmatmul.mubr.bf16.gmra.mrb[84].mxu1 %v2751_v29  ;;  %v8038_v35 = vld [vmem:[#allocation37_spill] sm:$0xff] }
 0x580   :  { %v8039_v29 = vmax.f32 %v8038_v35, 0.0 }
 0x581   :  { %v2724_v11 = vadd.f32 %v2692_v18, %v2468_v6  ;;  %v2469_v24 = vmul.f32 %v4354_v50, %v8036_v54  ;;  %v6858_v18 = vpop.permute.xlu1 %2581  ;;  %v8042_v50 = vld [vmem:[#allocation39_spill] sm:$0xff] }
 0x582   :  { %v2694_v25 = vmul.f32 %v6852_v40, %v8039_v29  ;;  %8041 = vst [vmem:[#allocation13_spill] sm:$0xff] %v6858_v18  ;;  %v8043_v6 = vmax.f32 %v8042_v50, 0.0  ;;  %v6864_v29 = vpop.permute.xlu0 %2586  ;;  %v8048_v40 = vld [vmem:[#allocation42_spill] sm:$0xff] }
 0x583   :  { %v2725_v28 = vadd.f32 %v2693_v58, %v2469_v24  ;;  %v4355_v41 = vpop.f32.mrb[132].mxu0  ;;  %v8044_v24 = vld [vmem:[#allocation35_spill] sm:$0xff]  ;;  %8045 = vst [vmem:[#allocation14_spill] sm:$0xff] %v6864_v29 }
 0x584   :  { %v4356_v45 = vpop.f32.mrb[133].mxu0  ;;  %v2695_v47 = vmul.f32 %v6858_v18, %v8043_v6 }
 0x585   :  { %v4357_v1 = vadd.f32 %v4356_v45, %v4355_v41  ;;  %v4358_v0 = vpop.f32.mrb[134].mxu0  ;;  %v2752_v19 = vpack.c.bf16 %v2725_v28, %v2724_v11 }
 0x586   :  { %v4359_v61 = vpop.f32.mrb[135].mxu0 }
 0x587   :  { %v2470_v32 = vmul.f32 %v4357_v1, %v8040_v46  ;;  %v4360_v59 = vadd.f32 %v4359_v61, %v4358_v0  ;;  %4821 = vmatprep.mubr.bf16.mxu1 %v2752_v19  ;;  %v8046_v0 = vld [vmem:[#allocation45_spill] sm:$0xff] }
 0x588   :  { %v8047_v19 = vmax.f32 %v8046_v0, 0.0 }
 0x589   :  { %v2726_v58 = vadd.f32 %v2694_v25, %v2470_v32  ;;  %v2471_v11 = vmul.f32 %v4360_v59, %v8044_v24  ;;  %v6870_v25 = vpop.permute.xlu1 %2591  ;;  %v8050_v59 = vld [vmem:[#allocation47_spill] sm:$0xff] }
 0x58a   :  { %v2696_v61 = vmul.f32 %v6864_v29, %v8047_v19  ;;  %8049 = vst [vmem:[#allocation15_spill] sm:$0xff] %v6870_v25  ;;  %v8051_v32 = vmax.f32 %v8050_v59, 0.0  ;;  %v6876_v19 = vpop.permute.xlu0 %2596  ;;  %v8056_v29 = vld [vmem:[#allocation49_spill] sm:$0xff] }
 0x58b   :  { %v2727_v28 = vadd.f32 %v2695_v47, %v2471_v11  ;;  %v4361_v41 = vpop.f32.mrb[136].mxu0  ;;  %v8052_v11 = vld [vmem:[#allocation41_spill] sm:$0xff]  ;;  %8053 = vst [vmem:[#allocation16_spill] sm:$0xff] %v6876_v19 }
 0x58c   :  { %v4362_v45 = vpop.f32.mrb[137].mxu0  ;;  %v2697_v6 = vmul.f32 %v6870_v25, %v8051_v32 }
 0x58d   :  { %v4363_v39 = vadd.f32 %v4362_v45, %v4361_v41  ;;  %v4364_v35 = vpop.f32.mrb[138].mxu0  ;;  %v2753_v44 = vpack.c.bf16 %v2727_v28, %v2726_v58 }
 0x58e   :  { %v4365_v1 = vpop.f32.mrb[139].mxu0 }
 0x58f   :  { %v2472_v50 = vmul.f32 %v4363_v39, %v8048_v40  ;;  %v4366_v5 = vadd.f32 %v4365_v1, %v4364_v35  ;;  %4822 = vmatmul.mubr.bf16.gmra.mrb[88].mxu1 %v2753_v44  ;;  %v8054_v35 = vld [vmem:[#allocation44_spill] sm:$0xff] }
 0x590   :  { %v8055_v44 = vmax.f32 %v8054_v35, 0.0 }
 0x591   :  { %v2728_v47 = vadd.f32 %v2696_v61, %v2472_v50  ;;  %v2473_v58 = vmul.f32 %v4366_v5, %v8052_v11  ;;  %v6882_v61 = vpop.permute.xlu1 %2601  ;;  %v8058_v5 = vld [vmem:[#allocation46_spill] sm:$0xff] }
 0x592   :  { %v2698_v1 = vmul.f32 %v6876_v19, %v8055_v44  ;;  %8057 = vst [vmem:[#allocation17_spill] sm:$0xff] %v6882_v61  ;;  %v8059_v50 = vmax.f32 %v8058_v5, 0.0  ;;  %v6888_v44 = vpop.permute.xlu0 %2606 }
 0x593   :  { %v2729_v28 = vadd.f32 %v2697_v6, %v2473_v58  ;;  %v4367_v41 = vpop.f32.mrb[140].mxu0  ;;  %v8060_v58 = vld [vmem:[#allocation48_spill] sm:$0xff]  ;;  %8061 = vst [vmem:[#allocation18_spill] sm:$0xff] %v6888_v44 }
 0x594   :  { %v4368_v45 = vpop.f32.mrb[141].mxu0  ;;  %v2699_v32 = vmul.f32 %v6882_v61, %v8059_v50 }
 0x595   :  { %v4369_v18 = vadd.f32 %v4368_v45, %v4367_v41  ;;  %v4370_v0 = vpop.f32.mrb[142].mxu0  ;;  %v2754_v56 = vpack.c.bf16 %v2729_v28, %v2728_v47 }
 0x596   :  { %v4371_v39 = vpop.f32.mrb[143].mxu0 }
 0x597   :  { %v2474_v59 = vmul.f32 %v4369_v18, %v8056_v29  ;;  %v4372_v40 = vadd.f32 %v4371_v39, %v4370_v0  ;;  %4825 = vmatprep.mubr.bf16.mxu1 %v2754_v56  ;;  %v8062_v56 = vmax.f32 %v6605_v43, 0.0 }
 0x599   :  { %v2730_v6 = vadd.f32 %v2698_v1, %v2474_v59  ;;  %v2475_v47 = vmul.f32 %v4372_v40, %v8060_v58  ;;  %v2700_v0 = vmul.f32 %v6888_v44, %v8062_v56  ;;  %v6894_v1 = vpop.permute.xlu1 %2611  ;;  %v8064_v40 = vmax.f32 %v6613_v4, 0.0  ;;  %v6900_v56 = vpop.permute.xlu0 %2616 }
 0x59a   :  { %8063 = vst [vmem:[#allocation19_spill] sm:$0xff] %v6894_v1  ;;  %8065 = vst [vmem:[#allocation25_spill] sm:$0xff] %v6900_v56 }
 0x59b   :  { %v2731_v28 = vadd.f32 %v2699_v32, %v2475_v47  ;;  %v4373_v41 = vpop.f32.mrb[144].mxu0  ;;  %v2701_v59 = vmul.f32 %v6894_v1, %v8064_v40 }
 0x59c   :  { %v4374_v45 = vpop.f32.mrb[145].mxu0 }
 0x59d   :  { %v4375_v25 = vadd.f32 %v4374_v45, %v4373_v41  ;;  %v4376_v35 = vpop.f32.mrb[146].mxu0  ;;  %v2755_v11 = vpack.c.bf16 %v2731_v28, %v2730_v6 }
 0x59e   :  { %v4377_v18 = vpop.f32.mrb[147].mxu0 }
 0x59f   :  { %v2476_v39 = vmul.f32 %v4375_v25, %v6374_v38  ;;  %v4378_v5 = vadd.f32 %v4377_v18, %v4376_v35  ;;  %4826 = vmatmul.mubr.bf16.gmra.mrb[92].mxu1 %v2755_v11  ;;  %v8066_v35 = vld [vmem:[#allocation50_spill] sm:$0xff] }
 0x5a0   :  { %v8067_v11 = vmax.f32 %v8066_v35, 0.0 }
 0x5a1   :  { %v2732_v50 = vadd.f32 %v2700_v0, %v2476_v39  ;;  %v2477_v32 = vmul.f32 %v4378_v5, %v6372_v27  ;;  %v6906_v0 = vpop.permute.xlu1 %2621  ;;  %v8069_v39 = vld [vmem:[#allocation51_spill] sm:$0xff] }
 0x5a2   :  { %v2702_v18 = vmul.f32 %v6900_v56, %v8067_v11  ;;  %8068 = vst [vmem:[#allocation22_spill] sm:$0xff] %v6906_v0  ;;  %v8070_v5 = vmax.f32 %v8069_v39, 0.0  ;;  %v6912_v11 = vpop.permute.xlu0 %2626 }
 0x5a3   :  { %v2733_v6 = vadd.f32 %v2701_v59, %v2477_v32  ;;  %v4379_v47 = vpop.f32.mrb[148].mxu0  ;;  %v8071_v32 = vld [vmem:[#allocation20_spill] sm:$0xff]  ;;  %8072 = vst [vmem:[#allocation26_spill] sm:$0xff] %v6912_v11 }
 0x5a4   :  { %v4380_v28 = vpop.f32.mrb[149].mxu0  ;;  %v2703_v40 = vmul.f32 %v6906_v0, %v8070_v5 }
 0x5a5   :  { %v4381_v41 = vadd.f32 %v4380_v28, %v4379_v47  ;;  %v4382_v43 = vpop.f32.mrb[150].mxu0  ;;  %v2756_v45 = vpack.c.bf16 %v2733_v6, %v2732_v50 }
 0x5a6   :  { %v4383_v25 = vpop.f32.mrb[151].mxu0 }
 0x5a7   :  { %v2478_v4 = vmul.f32 %v4381_v41, %v6382_v17  ;;  %v4384_v44 = vadd.f32 %v4383_v25, %v4382_v43  ;;  %4829 = vmatprep.mubr.bf16.mxu1 %v2756_v45  ;;  %v8073_v43 = vmax.f32 %v6639_v21, 0.0 }
 0x5a9   :  { %v2734_v59 = vadd.f32 %v2702_v18, %v2478_v4  ;;  %v2479_v50 = vmul.f32 %v4384_v44, %v8071_v32  ;;  %v2704_v45 = vmul.f32 %v6912_v11, %v8073_v43  ;;  %v6918_v18 = vpop.permute.xlu1 %2631  ;;  %v8075_v44 = vmax.f32 %v6647_v57, 0.0  ;;  %v6924_v43 = vpop.permute.xlu0 %2636 }
 0x5aa   :  { %8074 = vst [vmem:[#allocation21_spill] sm:$0xff] %v6918_v18  ;;  %8076 = vst [vmem:[#allocation32_spill] sm:$0xff] %v6924_v43 }
 0x5ab   :  { %v2735_v6 = vadd.f32 %v2703_v40, %v2479_v50  ;;  %v4385_v47 = vpop.f32.mrb[152].mxu0  ;;  %v2705_v4 = vmul.f32 %v6918_v18, %v8075_v44 }
 0x5ac   :  { %v4386_v28 = vpop.f32.mrb[153].mxu0 }
 0x5ad   :  { %v4387_v1 = vadd.f32 %v4386_v28, %v4385_v47  ;;  %v4388_v35 = vpop.f32.mrb[154].mxu0  ;;  %v2757_v61 = vpack.c.bf16 %v2735_v6, %v2734_v59 }
 0x5ae   :  { %v4389_v41 = vpop.f32.mrb[155].mxu0 }
 0x5af   :  { %v2480_v25 = vmul.f32 %v4387_v1, %v6390_v30  ;;  %v4390_v39 = vadd.f32 %v4389_v41, %v4388_v35  ;;  %4830 = vmatmul.mubr.bf16.gmra.mrb[96].mxu1 %v2757_v61  ;;  %v8077_v61 = vmax.f32 %v6633_v62, 0.0 }
 0x5b1   :  { %v2736_v5 = vadd.f32 %v2704_v45, %v2480_v25  ;;  %v2481_v40 = vmul.f32 %v4390_v39, %v6388_v3  ;;  %v2706_v35 = vmul.f32 %v6924_v43, %v8077_v61  ;;  %v6930_v45 = vpop.permute.xlu1 %2641  ;;  %v8079_v25 = vmax.f32 %v6643_v9, 0.0  ;;  %v6936_v61 = vpop.permute.xlu0 %2646 }
 0x5b2   :  { %8078 = vst [vmem:[#allocation24_spill] sm:$0xff] %v6930_v45  ;;  %8080 = vst [vmem:[#allocation34_spill] sm:$0xff] %v6936_v61 }
 0x5b3   :  { %v2737_v59 = vadd.f32 %v2705_v4, %v2481_v40  ;;  %v4391_v50 = vpop.f32.mrb[156].mxu0  ;;  %v2707_v39 = vmul.f32 %v6930_v45, %v8079_v25 }
 0x5b4   :  { %v4392_v6 = vpop.f32.mrb[157].mxu0 }
 0x5b5   :  { %v4393_v47 = vadd.f32 %v4392_v6, %v4391_v50  ;;  %v4394_v21 = vpop.f32.mrb[158].mxu0  ;;  %v2758_v28 = vpack.c.bf16 %v2737_v59, %v2736_v5 }
 0x5b6   :  { %v4395_v1 = vpop.f32.mrb[159].mxu0 }
 0x5b7   :  { %v2482_v57 = vmul.f32 %v4393_v47, %v6403_v53  ;;  %v4396_v41 = vadd.f32 %v4395_v1, %v4394_v21  ;;  %4833 = vmatprep.mubr.bf16.mxu1 %v2758_v28  ;;  %v8081_v21 = vmax.f32 %v6673_v48, 0.0 }
 0x5b9   :  { %v2738_v44 = vadd.f32 %v2706_v35, %v2482_v57  ;;  %v2483_v4 = vmul.f32 %v4396_v41, %v6401_v63  ;;  %v2708_v28 = vmul.f32 %v6936_v61, %v8081_v21  ;;  %v6942_v35 = vpop.permute.xlu1 %2651  ;;  %v8083_v57 = vmax.f32 %v6681_v49, 0.0  ;;  %v6948_v21 = vpop.permute.xlu0 %2656 }
 0x5ba   :  { %8082 = vst [vmem:[#allocation23_spill] sm:$0xff] %v6942_v35  ;;  %8084 = vst [vmem:[#allocation30_spill] sm:$0xff] %v6948_v21 }
 0x5bb   :  { %v2739_v5 = vadd.f32 %v2707_v39, %v2483_v4  ;;  %v4397_v40 = vpop.f32.mrb[160].mxu0  ;;  %v2709_v41 = vmul.f32 %v6942_v35, %v8083_v57 }
 0x5bc   :  { %v4398_v59 = vpop.f32.mrb[161].mxu0 }
 0x5bd   :  { %v4399_v50 = vadd.f32 %v4398_v59, %v4397_v40  ;;  %v4400_v62 = vpop.f32.mrb[162].mxu0  ;;  %v2759_v6 = vpack.c.bf16 %v2739_v5, %v2738_v44 }
 0x5be   :  { %v4401_v47 = vpop.f32.mrb[163].mxu0 }
 0x5bf   :  { %v2484_v9 = vmul.f32 %v4399_v50, %v6451_v7  ;;  %v4402_v1 = vadd.f32 %v4401_v47, %v4400_v62  ;;  %4834 = vmatmul.mubr.bf16.gmra.mrb[100].mxu1 %v2759_v6  ;;  %v8085_v62 = vmax.f32 %v6667_v31, 0.0 }
 0x5c1   :  { %v2740_v25 = vadd.f32 %v2708_v28, %v2484_v9  ;;  %v2485_v39 = vmul.f32 %v4402_v1, %v6449_v22  ;;  %v2710_v6 = vmul.f32 %v6948_v21, %v8085_v62  ;;  %v6954_v28 = vpop.permute.xlu1 %2661  ;;  %v8087_v9 = vmax.f32 %v6677_v55, 0.0  ;;  %v6960_v62 = vpop.permute.xlu0 %2666 }
 0x5c2   :  { %8086 = vst [vmem:[#allocation28_spill] sm:$0xff] %v6954_v28  ;;  %8088 = vst [vmem:[#allocation33_spill] sm:$0xff] %v6960_v62 }
 0x5c3   :  { %v2741_v44 = vadd.f32 %v2709_v41, %v2485_v39  ;;  %v4403_v4 = vpop.f32.mrb[164].mxu0  ;;  %v2711_v1 = vmul.f32 %v6954_v28, %v8087_v9 }
 0x5c4   :  { %v4404_v5 = vpop.f32.mrb[165].mxu0 }
 0x5c5   :  { %v4405_v40 = vadd.f32 %v4404_v5, %v4403_v4  ;;  %v4406_v48 = vpop.f32.mrb[166].mxu0  ;;  %v2760_v59 = vpack.c.bf16 %v2741_v44, %v2740_v25 }
 0x5c6   :  { %v4407_v50 = vpop.f32.mrb[167].mxu0 }
 0x5c7   :  { %v2486_v49 = vmul.f32 %v4405_v40, %v6485_v15  ;;  %v4408_v47 = vadd.f32 %v4407_v50, %v4406_v48  ;;  %4837 = vmatprep.mubr.bf16.mxu1 %v2760_v59  ;;  %v8089_v48 = vmax.f32 %v6707_v8, 0.0 }
 0x5c9   :  { %v2742_v57 = vadd.f32 %v2710_v6, %v2486_v49  ;;  %v2487_v41 = vmul.f32 %v4408_v47, %v6473_v37  ;;  %v2712_v59 = vmul.f32 %v6960_v62, %v8089_v48  ;;  %v6966_v6 = vpop.permute.xlu1 %2671  ;;  %v8091_v49 = vmax.f32 %v6715_v52, 0.0  ;;  %v6972_v48 = vpop.permute.xlu0 %2676 }
 0x5ca   :  { %8090 = vst [vmem:[#allocation27_spill] sm:$0xff] %v6966_v6  ;;  %8092 = vst [vmem:[#allocation38_spill] sm:$0xff] %v6972_v48 }
 0x5cb   :  { %v2743_v25 = vadd.f32 %v2711_v1, %v2487_v41  ;;  %v4409_v39 = vpop.f32.mrb[168].mxu0  ;;  %v2713_v47 = vmul.f32 %v6966_v6, %v8091_v49 }
 0x5cc   :  { %v4410_v44 = vpop.f32.mrb[169].mxu0 }
 0x5cd   :  { %v4411_v4 = vadd.f32 %v4410_v44, %v4409_v39  ;;  %v4412_v31 = vpop.f32.mrb[170].mxu0  ;;  %v2761_v5 = vpack.c.bf16 %v2743_v25, %v2742_v57 }
 0x5ce   :  { %v4413_v40 = vpop.f32.mrb[171].mxu0 }
 0x5cf   :  { %v2488_v55 = vmul.f32 %v4411_v4, %v6517_v51  ;;  %v4414_v50 = vadd.f32 %v4413_v40, %v4412_v31  ;;  %4838 = vmatmul.mubr.bf16.gmra.mrb[104].mxu1 %v2761_v5  ;;  %v8093_v31 = vmax.f32 %v6701_v12, 0.0  ;;  %v5176_v12 = vld [vmem:[%s7729_s0 + $0x4] ss:$8 sps:$4 sm:$0xff]  }
 0x5d1   :  { %v2744_v9 = vadd.f32 %v2712_v59, %v2488_v55  ;;  %v2489_v1 = vmul.f32 %v4414_v50, %v6511_v16  ;;  %v2714_v5 = vmul.f32 %v6972_v48, %v8093_v31  ;;  %v6978_v59 = vpop.permute.xlu1 %2681  ;;  %v8095_v55 = vmax.f32 %v6711_v10, 0.0 }
 0x5d2   :  { %8094 = vst [vmem:[#allocation40_spill] sm:$0xff] %v6978_v59 }
 0x5d3   :  { %v2745_v57 = vadd.f32 %v2713_v47, %v2489_v1  ;;  %v4415_v41 = vpop.f32.mrb[172].mxu0  ;;  %v2715_v50 = vmul.f32 %v6978_v59, %v8095_v55 }
 0x5d4   :  { %v4416_v25 = vpop.f32.mrb[173].mxu0 }
 0x5d5   :  { %v4417_v39 = vadd.f32 %v4416_v25, %v4415_v41  ;;  %v4418_v8 = vpop.f32.mrb[174].mxu0  ;;  %v2762_v44 = vpack.c.bf16 %v2745_v57, %v2744_v9  ;;  %v6990_v57 = vld [vmem:[%s7738_s11] ss:$0 sm:$0xff] }
 0x5d6   :  { %v4419_v4 = vpop.f32.mrb[175].mxu0 }
 0x5d7   :  { %v2490_v52 = vmul.f32 %v4417_v39, %v6555_v20  ;;  %v4420_v40 = vadd.f32 %v4419_v4, %v4418_v8  ;;  %4841 = vmatprep.mubr.bf16.mxu1 %v2762_v44 }
 0x5d9   :  { %v2746_v49 = vadd.f32 %v2714_v5, %v2490_v52  ;;  %v2491_v47 = vmul.f32 %v4420_v40, %v6553_v42 }
 0x5db   :  { %v2747_v9 = vadd.f32 %v2715_v50, %v2491_v47 }
 0x5dd   :  { %v2763_v1 = vpack.c.bf16 %v2747_v9, %v2746_v49 }
 0x5df   :  { %4842 = vmatmul.mubr.bf16.gmra.mrb[108].mxu1 %v2763_v1 }
 0x5e0   :  { %3108 = vmatprep.mubr.bf16.mxu1 %v5176_v12 }
 0x642   :  { %v4815_v41 = vpop.f32.mrb[80].mxu1 }
 0x643   :  { %v6993_v10 = vadd.f32 %v4815_v41, %v6990_v57  ;;  %v2852_v25 = vpop.f32.mrb[81].mxu1 }
 0x644   :  { %v6996_v39 = vadd.f32 %v6990_v57, %v2852_v25  ;;  %v4816_v8 = vpop.f32.mrb[82].mxu1 }
 0x645   :  { %v7860_v44 = vmax.f32 %v6993_v10, 0.0  ;;  %v7000_v4 = vadd.f32 %v4816_v8, %v6990_v57  ;;  %v2855_v31 = vpop.f32.mrb[83].mxu1 }
 0x646   :  { %v7862_v5 = vmax.f32 %v6996_v39, 0.0  ;;  %v7004_v52 = vadd.f32 %v6990_v57, %v2855_v31 }
 0x647   :  { %v7859_v40 = vmax.f32 %v7000_v4, 0.0  ;;  %v7011_v50 = vmul.f32 %v7860_v44, %v8008_v13 }
 0x648   :  { %v7861_v55 = vmax.f32 %v7004_v52, 0.0  ;;  %v7021_v47 = vmul.f32 %v7862_v5, %v6378_v23 }
 0x649   :  { %v7016_v49 = vmul.f32 %v7859_v40, %v8012_v33 }
 0x64a   :  { %v7026_v9 = vmul.f32 %v7861_v55, %v8004_v14 }
 0x652   :  { %v4819_v41 = vpop.f32.mrb[84].mxu1 }
 0x653   :  { %v7033_v25 = vadd.f32 %v4819_v41, %v6990_v57  ;;  %v2868_v8 = vpop.f32.mrb[85].mxu1 }
 0x654   :  { %v7036_v31 = vadd.f32 %v6990_v57, %v2868_v8  ;;  %v4820_v40 = vpop.f32.mrb[86].mxu1 }
 0x655   :  { %v7866_v44 = vmax.f32 %v7033_v25, 0.0  ;;  %v7040_v55 = vadd.f32 %v4820_v40, %v6990_v57  ;;  %v2871_v5 = vpop.f32.mrb[87].mxu1 }
 0x656   :  { %v7871_v1 = vmax.f32 %v7036_v31, 0.0  ;;  %v7044_v59 = vadd.f32 %v6990_v57, %v2871_v5 }
 0x657   :  { %v7868_v12 = vmax.f32 %v7040_v55, 0.0  ;;  %v7051_v8 = vmul.f32 %v7866_v44, %v8024_v36 }
 0x658   :  { %v7873_v41 = vmax.f32 %v7044_v59, 0.0  ;;  %v7061_v48 = vmul.f32 %v7871_v1, %v8016_v60 }
 0x659   :  { %v7056_v40 = vmul.f32 %v7868_v12, %v8028_v26 }
 0x65a   :  { %v7066_v5 = vmul.f32 %v7873_v41, %v8020_v2 }
 0x662   :  { %v4823_v62 = vpop.f32.mrb[88].mxu1 }
 0x663   :  { %v7073_v12 = vadd.f32 %v4823_v62, %v6990_v57  ;;  %v2884_v28 = vpop.f32.mrb[89].mxu1 }
 0x664   :  { %v7076_v21 = vadd.f32 %v6990_v57, %v2884_v28  ;;  %v4824_v1 = vpop.f32.mrb[90].mxu1 }
 0x665   :  { %8096 = vst [vmem:[#allocation37_spill] sm:$0xff] %v7073_v12  ;;  %v7878_v35 = vmax.f32 %v7073_v12, 0.0  ;;  %v7080_v41 = vadd.f32 %v4824_v1, %v6990_v57  ;;  %v2887_v61 = vpop.f32.mrb[91].mxu1 }
 0x666   :  { %8097 = vst [vmem:[#allocation39_spill] sm:$0xff] %v7076_v21  ;;  %v7883_v6 = vmax.f32 %v7076_v21, 0.0  ;;  %v7084_v45 = vadd.f32 %v6990_v57, %v2887_v61  ;;  %v8107_v21 = vpack.c.bf16 %v7026_v9, %v7021_v47 }
 0x667   :  { %8098 = vst [vmem:[#allocation45_spill] sm:$0xff] %v7080_v41  ;;  %v7880_v44 = vmax.f32 %v7080_v41, 0.0  ;;  %v7091_v28 = vmul.f32 %v7878_v35, %v8040_v46  ;;  %v8104_v46 = vld [vmem:[#allocation42_spill] sm:$0xff] }
 0x668   :  { %8099 = vst [vmem:[#allocation47_spill] sm:$0xff] %v7084_v45  ;;  %v7885_v62 = vmax.f32 %v7084_v45, 0.0  ;;  %v7101_v43 = vmul.f32 %v7883_v6, %v8032_v34 }
 0x669   :  { %v7096_v1 = vmul.f32 %v7880_v44, %v8044_v24 }
 0x66a   :  { %v7106_v61 = vmul.f32 %v7885_v62, %v8036_v54 }
 0x672   :  { %v4827_v11 = vpop.f32.mrb[92].mxu1 }
 0x673   :  { %v7113_v44 = vadd.f32 %v4827_v11, %v6990_v57  ;;  %v2900_v0 = vpop.f32.mrb[93].mxu1 }
 0x674   :  { %v7116_v56 = vadd.f32 %v6990_v57, %v2900_v0  ;;  %v4828_v6 = vpop.f32.mrb[94].mxu1 }
 0x675   :  { %8100 = vst [vmem:[#allocation44_spill] sm:$0xff] %v7113_v44  ;;  %v7892_v19 = vmax.f32 %v7113_v44, 0.0  ;;  %v7120_v62 = vadd.f32 %v4828_v6, %v6990_v57  ;;  %v2903_v24 = vpop.f32.mrb[95].mxu1 }
 0x676   :  { %8101 = vst [vmem:[#allocation46_spill] sm:$0xff] %v7116_v56  ;;  %v7897_v18 = vmax.f32 %v7116_v56, 0.0  ;;  %v7124_v41 = vadd.f32 %v6990_v57, %v2903_v24  ;;  %v8105_v24 = vld [vmem:[#allocation41_spill] sm:$0xff] }
 0x677   :  { %8102 = vst [vmem:[#allocation50_spill] sm:$0xff] %v7120_v62  ;;  %v7894_v35 = vmax.f32 %v7120_v62, 0.0  ;;  %v7131_v0 = vmul.f32 %v7892_v19, %v8056_v29 }
 0x678   :  { %8103 = vst [vmem:[#allocation51_spill] sm:$0xff] %v7124_v41  ;;  %v7898_v11 = vmax.f32 %v7124_v41, 0.0  ;;  %v7141_v12 = vmul.f32 %v7897_v18, %v8104_v46 }
 0x679   :  { %v7136_v6 = vmul.f32 %v7894_v35, %v8060_v58 }
 0x67a   :  { %v7146_v54 = vmul.f32 %v7898_v11, %v8105_v24 }
 0x682   :  { %v4831_v29 = vpop.f32.mrb[96].mxu1 }
 0x683   :  { %v7153_v35 = vadd.f32 %v4831_v29, %v6990_v57  ;;  %v2916_v58 = vpop.f32.mrb[97].mxu1 }
 0x684   :  { %v7156_v62 = vadd.f32 %v6990_v57, %v2916_v58  ;;  %v4832_v18 = vpop.f32.mrb[98].mxu1 }
 0x685   :  { %v7904_v46 = vmax.f32 %v7153_v35, 0.0  ;;  %v7160_v11 = vadd.f32 %v4832_v18, %v6990_v57  ;;  %v2919_v24 = vpop.f32.mrb[99].mxu1 }
 0x686   :  { %v7907_v44 = vmax.f32 %v7156_v62, 0.0  ;;  %v7164_v41 = vadd.f32 %v6990_v57, %v2919_v24 }
 0x687   :  { %8106 = vst [vmem:[#allocation52_spill] sm:$0xff] %v7160_v11  ;;  %v7906_v19 = vmax.f32 %v7160_v11, 0.0  ;;  %v3046_v58 = vmul.f32 %v7904_v46, %v6382_v17 }
 0x688   :  { %v7912_v29 = vmax.f32 %v7164_v41, 0.0  ;;  %v3044_v18 = vmul.f32 %v7907_v44, %v6374_v38  ;;  %v8108_v44 = vpack.c.bf16 %v7016_v49, %v7011_v50 }
 0x689   :  { %v3047_v56 = vmul.f32 %v7906_v19, %v8071_v32 }
 0x68a   :  { %v3045_v24 = vmul.f32 %v7912_v29, %v6372_v27 }
 0x68b   :  { %v3069_v45 = vpack.c.bf16 %v3047_v56, %v3046_v58 }
 0x68c   :  { %v3068_v34 = vpack.c.bf16 %v3045_v24, %v3044_v18 }
 0x68e   :  { %4445 = vmatprep.subr.bf16.mxu1 %v3068_v34 }
 0x68f   :  { %4446 = vmatpush3.bf16.msra.mxu1 %v8107_v21 }
 0x690   :  { %4447 = vmatprep.subr.bf16.mxu1 %v3069_v45 }
 0x692   :  { %v4835_v46 = vpop.f32.mrb[100].mxu1 }
 0x693   :  { %v7184_v11 = vadd.f32 %v4835_v46, %v6990_v57  ;;  %v2932_v19 = vpop.f32.mrb[101].mxu1  ;;  %4448 = vmatpush3.bf16.msra.mxu1 %v8108_v44 }
 0x694   :  { %v7190_v32 = vadd.f32 %v6990_v57, %v2932_v19  ;;  %v4836_v56 = vpop.f32.mrb[102].mxu1 }
 0x695   :  { %v7909_v34 = vmax.f32 %v7184_v11, 0.0  ;;  %v7194_v58 = vadd.f32 %v4836_v56, %v6990_v57  ;;  %v2935_v21 = vpop.f32.mrb[103].mxu1  ;;  %v8109_v56 = vpack.c.bf16 %v7066_v5, %v7061_v48 }
 0x696   :  { %v7911_v45 = vmax.f32 %v7190_v32, 0.0  ;;  %v7198_v46 = vadd.f32 %v6990_v57, %v2935_v21 }
 0x697   :  { %v7910_v47 = vmax.f32 %v7194_v58, 0.0  ;;  %v3050_v19 = vmul.f32 %v7909_v34, %v6403_v53 }
 0x698   :  { %v7916_v50 = vmax.f32 %v7198_v46, 0.0  ;;  %v3048_v49 = vmul.f32 %v7911_v45, %v6390_v30  ;;  %v8110_v45 = vpack.c.bf16 %v7056_v40, %v7051_v8 }
 0x699   :  { %v3051_v44 = vmul.f32 %v7910_v47, %v6401_v63 }
 0x69a   :  { %v3049_v9 = vmul.f32 %v7916_v50, %v6388_v3 }
 0x69b   :  { %v3071_v18 = vpack.c.bf16 %v3051_v44, %v3050_v19 }
 0x69c   :  { %v3070_v24 = vpack.c.bf16 %v3049_v9, %v3048_v49 }
 0x69e   :  { %4449 = vmatprep.subr.bf16.mxu1 %v3070_v24 }
 0x69f   :  { %4450 = vmatpush3.bf16.msra.mxu1 %v8109_v56 }
 0x6a0   :  { %4451 = vmatprep.subr.bf16.mxu1 %v3071_v18 }
 0x6a2   :  { %v4839_v21 = vpop.f32.mrb[104].mxu1 }
 0x6a3   :  { %v7218_v34 = vadd.f32 %v4839_v21, %v6990_v57  ;;  %v2948_v47 = vpop.f32.mrb[105].mxu1  ;;  %4452 = vmatpush3.bf16.msra.mxu1 %v8110_v45 }
 0x6a4   :  { %v7224_v29 = vadd.f32 %v6990_v57, %v2948_v47  ;;  %v4840_v19 = vpop.f32.mrb[106].mxu1 }
 0x6a5   :  { %v7913_v44 = vmax.f32 %v7218_v34, 0.0  ;;  %v7228_v49 = vadd.f32 %v4840_v19, %v6990_v57  ;;  %v2951_v48 = vpop.f32.mrb[107].mxu1  ;;  %v8111_v19 = vpack.c.bf16 %v7106_v61, %v7101_v43 }
 0x6a6   :  { %v7915_v5 = vmax.f32 %v7224_v29, 0.0  ;;  %v7232_v9 = vadd.f32 %v6990_v57, %v2951_v48 }
 0x6a7   :  { %v7914_v18 = vmax.f32 %v7228_v49, 0.0  ;;  %v3054_v40 = vmul.f32 %v7913_v44, %v6485_v15 }
 0x6a8   :  { %v7921_v8 = vmax.f32 %v7232_v9, 0.0  ;;  %v3052_v47 = vmul.f32 %v7915_v5, %v6451_v7  ;;  %v8112_v5 = vpack.c.bf16 %v7096_v1, %v7091_v28 }
 0x6a9   :  { %v3055_v45 = vmul.f32 %v7914_v18, %v6473_v37 }
 0x6aa   :  { %v3053_v24 = vmul.f32 %v7921_v8, %v6449_v22 }
 0x6ab   :  { %v3073_v56 = vpack.c.bf16 %v3055_v45, %v3054_v40 }
 0x6ac   :  { %v3072_v21 = vpack.c.bf16 %v3053_v24, %v3052_v47 }
 0x6ae   :  { %4453 = vmatprep.subr.bf16.mxu1 %v3072_v21 }
 0x6af   :  { %4454 = vmatpush3.bf16.msra.mxu1 %v8111_v19 }
 0x6b0   :  { %4455 = vmatprep.subr.bf16.mxu1 %v3073_v56 }
 0x6b2   :  { %v4843_v48 = vpop.f32.mrb[108].mxu1 }
 0x6b3   :  { %v7252_v44 = vadd.f32 %v4843_v48, %v6990_v57  ;;  %v2964_v18 = vpop.f32.mrb[109].mxu1  ;;  %4456 = vmatpush3.bf16.msra.mxu1 %v8112_v5  ;;  %v8113_v48 = vpack.c.bf16 %v7146_v54, %v7141_v12  ;;  %v5177_v54 = vld [vmem:[%s7729_s0] ss:$8 sps:$4 sm:$0xff]   ;;  %v5178_v12 = vld [vmem:[%s7729_s0 + $0x14] ss:$8 sps:$4 sm:$0xff]  }
 0x6b4   :  { %v7258_v50 = vadd.f32 %v6990_v57, %v2964_v18  ;;  %v4844_v40 = vpop.f32.mrb[110].mxu1 }
 0x6b5   :  { %v7918_v45 = vmax.f32 %v7252_v44, 0.0  ;;  %v7262_v47 = vadd.f32 %v4844_v40, %v6990_v57  ;;  %v2967_v43 = vpop.f32.mrb[111].mxu1  ;;  %v5128_v40 = vld [vmem:[%s7739_s12] sm:$0xff]  }
 0x6b6   :  { %v7920_v61 = vmax.f32 %v7258_v50, 0.0  ;;  %v7266_v24 = vadd.f32 %v6990_v57, %v2967_v43  ;;  %v5129_v43 = vld [vmem:[%s7739_s12 + $0x8] sm:$0xff]   ;;  %4845 = vmatprep.subr.bf16.mxu0 %v5128_v40 }
 0x6b7   :  { %v7917_v56 = vmax.f32 %v7262_v47, 0.0  ;;  %v3058_v1 = vmul.f32 %v7918_v45, %v6555_v20  ;;  %4846 = vmatpush3.bf16.msra.mxu0 %v5128_v40  ;;  %v5186_v40 = vld [vmem:[%s7729_s0 + $0x54] ss:$8 sps:$4 sm:$0xff]  }
 0x6b8   :  { %v7919_v28 = vmax.f32 %v7266_v24, 0.0  ;;  %v3056_v18 = vmul.f32 %v7920_v61, %v6517_v51  ;;  %4847 = vmatprep.subr.bf16.mxu0 %v5129_v43 }
 0x6b9   :  { %v3059_v5 = vmul.f32 %v7917_v56, %v6553_v42  ;;  %v8118_v56 = vmax.f32 %v7004_v52, 0.0  ;;  %v8121_v52 = vld [vmem:[#allocation5_spill] sm:$0xff] }
 0x6ba   :  { %v3057_v57 = vmul.f32 %v7919_v28, %v6511_v16 }
 0x6bb   :  { %v3075_v21 = vpack.c.bf16 %v3059_v5, %v3058_v1  ;;  %v5130_v1 = vld [vmem:[%s7739_s12 + $0x10] sm:$0xff]   ;;  %v8114_v5 = vpack.c.bf16 %v7136_v6, %v7131_v0  ;;  %4848 = vmatpush3.bf16.msra.mxu0 %v5129_v43  ;;  %v5180_v0 = vld [vmem:[%s7729_s0 + $0x24] ss:$8 sps:$4 sm:$0xff]   ;;  %v5181_v6 = vld [vmem:[%s7729_s0 + $0x20] ss:$8 sps:$4 sm:$0xff]  }
 0x6bc   :  { %v3074_v19 = vpack.c.bf16 %v3057_v57, %v3056_v18  ;;  %4849 = vmatprep.subr.bf16.mxu0 %v5130_v1  ;;  %v5179_v18 = vld [vmem:[%s7729_s0 + $0x10] ss:$8 sps:$4 sm:$0xff]   ;;  %v5182_v57 = vld [vmem:[%s7729_s0 + $0x34] ss:$8 sps:$4 sm:$0xff]  }
 0x6bd   :  { %v5187_v43 = vld [vmem:[%s7729_s0 + $0x50] ss:$8 sps:$4 sm:$0xff]  }
 0x6be   :  { %4457 = vmatprep.subr.bf16.mxu1 %v3074_v19  ;;  %v5184_v19 = vld [vmem:[%s7729_s0 + $0x44] ss:$8 sps:$4 sm:$0xff]  }
 0x6bf   :  { %4458 = vmatpush3.bf16.msra.mxu1 %v8113_v48  ;;  %4850 = vmatpush3.bf16.msra.mxu0 %v5130_v1  ;;  %v5185_v48 = vld [vmem:[%s7729_s0 + $0x40] ss:$8 sps:$4 sm:$0xff]   ;;  %v5188_v1 = vld [vmem:[%s7729_s0 + $0x64] ss:$8 sps:$4 sm:$0xff]  }
 0x6c0   :  { %4459 = vmatprep.subr.bf16.mxu1 %v3075_v21  ;;  %v5183_v21 = vld [vmem:[%s7729_s0 + $0x30] ss:$8 sps:$4 sm:$0xff]  }
 0x6c3   :  { %4460 = vmatpush3.bf16.msra.mxu1 %v8114_v5  ;;  %v5189_v5 = vld [vmem:[%s7729_s0 + $0x60] ss:$8 sps:$4 sm:$0xff]  }
 0x6c6   :  { %3109 = vmatmul.mubr.bf16.vlgmr.msra.gmra.mrb[112].mxu1 %v5177_v54  ;;  %v5190_v54 = vld [vmem:[%s7729_s0 + $0x74] ss:$8 sps:$4 sm:$0xff]  }
 0x6c7   :  { %3116 = vmatprep.mubr.bf16.mxu1 %v5178_v12  ;;  %v5191_v12 = vld [vmem:[%s7729_s0 + $0x70] ss:$8 sps:$4 sm:$0xff]  }
 0x6ce   :  { %3117 = vmatmul.mubr.bf16.gmra.mrb[116].mxu1 %v5179_v18  ;;  %v5192_v18 = vld [vmem:[%s7729_s0 + $0x84] ss:$8 sps:$4 sm:$0xff]  }
 0x6cf   :  { %3124 = vmatprep.mubr.bf16.mxu1 %v5180_v0  ;;  %v5193_v0 = vld [vmem:[%s7729_s0 + $0x80] ss:$8 sps:$4 sm:$0xff]  }
 0x6d6   :  { %3125 = vmatmul.mubr.bf16.gmra.mrb[120].mxu1 %v5181_v6  ;;  %v5194_v6 = vld [vmem:[%s7729_s0 + $0x94] ss:$8 sps:$4 sm:$0xff]  }
 0x6d7   :  { %3132 = vmatprep.mubr.bf16.mxu1 %v5182_v57  ;;  %v5195_v57 = vld [vmem:[%s7729_s0 + $0x90] ss:$8 sps:$4 sm:$0xff]  }
 0x6de   :  { %3133 = vmatmul.mubr.bf16.gmra.mrb[124].mxu1 %v5183_v21  ;;  %v5196_v21 = vld [vmem:[%s7729_s0 + $0xa4] ss:$8 sps:$4 sm:$0xff]  }
 0x6df   :  { %3140 = vmatprep.mubr.bf16.mxu1 %v5184_v19  ;;  %v5197_v19 = vld [vmem:[%s7729_s0 + $0xa0] ss:$8 sps:$4 sm:$0xff]  }
 0x6e6   :  { %3141 = vmatmul.mubr.bf16.gmra.mrb[128].mxu1 %v5185_v48  ;;  %v5198_v48 = vld [vmem:[%s7729_s0 + $0xb4] ss:$8 sps:$4 sm:$0xff]  }
 0x6e7   :  { %3148 = vmatprep.mubr.bf16.mxu1 %v5186_v40  ;;  %v5131_v40 = vld [vmem:[%s7739_s12 + $0x18] sm:$0xff]  }
 0x6e8   :  { %4851 = vmatprep.subr.bf16.mxu0 %v5131_v40 }
 0x6e9   :  { %4852 = vmatpush3.bf16.msra.mxu0 %v5131_v40  ;;  %v5207_v40 = vld [vmem:[%s7729_s0 + $0xf0] ss:$8 sps:$4 sm:$0xff]  }
 0x6ee   :  { %3149 = vmatmul.mubr.bf16.gmra.mrb[132].mxu1 %v5187_v43  ;;  %v5132_v43 = vld [vmem:[%s7739_s12 + $0x20] sm:$0xff]  }
 0x6ef   :  { %3156 = vmatprep.mubr.bf16.mxu1 %v5188_v1  ;;  %v5199_v1 = vld [vmem:[%s7729_s0 + $0xb0] ss:$8 sps:$4 sm:$0xff]   ;;  %4853 = vmatprep.subr.bf16.mxu0 %v5132_v43 }
 0x6f0   :  { %4854 = vmatpush3.bf16.msra.mxu0 %v5132_v43 }
 0x6f6   :  { %3157 = vmatmul.mubr.bf16.gmra.mrb[136].mxu1 %v5189_v5  ;;  %v5200_v5 = vld [vmem:[%s7729_s0 + $0xc4] ss:$8 sps:$4 sm:$0xff]  }
 0x6f7   :  { %3164 = vmatprep.mubr.bf16.mxu1 %v5190_v54  ;;  %v5133_v54 = vld [vmem:[%s7739_s12 + $0x28] sm:$0xff]  }
 0x6f8   :  { %4855 = vmatprep.subr.bf16.mxu0 %v5133_v54 }
 0x6f9   :  { %4856 = vmatpush3.bf16.msra.mxu0 %v5133_v54 }
 0x6fe   :  { %3165 = vmatmul.mubr.bf16.gmra.mrb[140].mxu1 %v5191_v12  ;;  %v5134_v12 = vld [vmem:[%s7739_s12 + $0x30] sm:$0xff]  }
 0x6ff   :  { %3172 = vmatprep.mubr.bf16.mxu1 %v5192_v18  ;;  %v5201_v18 = vld [vmem:[%s7729_s0 + $0xc0] ss:$8 sps:$4 sm:$0xff]   ;;  %4857 = vmatprep.subr.bf16.mxu0 %v5134_v12 }
 0x700   :  { %4858 = vmatpush3.bf16.msra.mxu0 %v5134_v12 }
 0x706   :  { %3173 = vmatmul.mubr.bf16.gmra.mrb[144].mxu1 %v5193_v0  ;;  %v5202_v0 = vld [vmem:[%s7729_s0 + $0xd4] ss:$8 sps:$4 sm:$0xff]  }
 0x707   :  { %3180 = vmatprep.mubr.bf16.mxu1 %v5194_v6  ;;  %v5135_v6 = vld [vmem:[%s7739_s12 + $0x38] sm:$0xff]  }
 0x708   :  { %4859 = vmatprep.subr.bf16.mxu0 %v5135_v6 }
 0x709   :  { %4860 = vmatpush3.bf16.msra.mxu0 %v5135_v6 }
 0x70e   :  { %3181 = vmatmul.mubr.bf16.gmra.mrb[148].mxu1 %v5195_v57  ;;  %v5203_v57 = vld [vmem:[%s7729_s0 + $0xd0] ss:$8 sps:$4 sm:$0xff]  }
 0x70f   :  { %3188 = vmatprep.mubr.bf16.mxu1 %v5196_v21  ;;  %v5204_v21 = vld [vmem:[%s7729_s0 + $0xe4] ss:$8 sps:$4 sm:$0xff]  }
 0x716   :  { %3189 = vmatmul.mubr.bf16.gmra.mrb[152].mxu1 %v5197_v19  ;;  %v5205_v19 = vld [vmem:[%s7729_s0 + $0xe0] ss:$8 sps:$4 sm:$0xff]  }
 0x717   :  { %3196 = vmatprep.mubr.bf16.mxu1 %v5198_v48  ;;  %v5206_v48 = vld [vmem:[%s7729_s0 + $0xf4] ss:$8 sps:$4 sm:$0xff]  }
 0x71e   :  { %3197 = vmatmul.mubr.bf16.gmra.mrb[156].mxu1 %v5199_v1 }
 0x71f   :  { %3204 = vmatprep.mubr.bf16.mxu1 %v5200_v5 }
 0x726   :  { %3205 = vmatmul.mubr.bf16.gmra.mrb[160].mxu1 %v5201_v18  ;;  %v8115_v18 = vld [vmem:[#allocation2_spill] sm:$0xff] }
 0x727   :  { %3212 = vmatprep.mubr.bf16.mxu1 %v5202_v0  ;;  %v8116_v0 = vmax.f32 %v6996_v39, 0.0 }
 0x729   :  { %v3269_v6 = vmul.f32 %v8116_v0, %v8115_v18 }
 0x72e   :  { %3213 = vmatmul.mubr.bf16.gmra.mrb[164].mxu1 %v5203_v57 }
 0x72f   :  { %3220 = vmatprep.mubr.bf16.mxu1 %v5204_v21 }
 0x736   :  { %3221 = vmatmul.mubr.bf16.gmra.mrb[168].mxu1 %v5205_v19  ;;  %v5136_v19 = vld [vmem:[%s7740_s14] sm:$0xff]  }
 0x737   :  { %3228 = vmatprep.mubr.bf16.mxu1 %v5206_v48  ;;  %v8117_v48 = vld [vmem:[#allocation3_spill] sm:$0xff]  ;;  %4893 = vmatprep.subr.bf16.mxu0 %v5136_v19 }
 0x73e   :  { %3229 = vmatmul.mubr.bf16.gmra.mrb[172].mxu1 %v5207_v40  ;;  %v3270_v40 = vmul.f32 %v8118_v56, %v8117_v48  ;;  %v8122_v56 = vmax.f32 %v7000_v4, 0.0 }
 0x799   :  { %v4461_v43 = vpop.f32.mrb[112].mxu1 }
 0x79a   :  { %v4462_v1 = vpop.f32.mrb[113].mxu1 }
 0x79b   :  { %v4463_v5 = vadd.f32 %v4462_v1, %v4461_v43  ;;  %v4464_v54 = vpop.f32.mrb[114].mxu1 }
 0x79c   :  { %v4465_v12 = vpop.f32.mrb[115].mxu1 }
 0x79d   :  { %v3237_v57 = vmul.f32 %v4463_v5, %v6378_v23  ;;  %v4466_v21 = vadd.f32 %v4465_v12, %v4464_v54  ;;  %v8119_v5 = vld [vmem:[#allocation4_spill] sm:$0xff]  ;;  %v8120_v54 = vmax.f32 %v6993_v10, 0.0  ;;  %v5137_v10 = vld [vmem:[%s7740_s14 + $0x8] sm:$0xff]  }
 0x79f   :  { %v3301_v45 = vadd.f32 %v3269_v6, %v3237_v57  ;;  %v3238_v43 = vmul.f32 %v4466_v21, %v8004_v14  ;;  %v3271_v12 = vmul.f32 %v8120_v54, %v8119_v5  ;;  %v3272_v14 = vmul.f32 %v8122_v56, %v8121_v52  ;;  %v5138_v5 = vld [vmem:[%s7740_s14 + $0x10] sm:$0xff]  }
 0x7a1   :  { %v3302_v1 = vadd.f32 %v3270_v40, %v3238_v43  ;;  %v4467_v28 = vpop.f32.mrb[116].mxu1  ;;  %v8123_v43 = vld [vmem:[#allocation6_spill] sm:$0xff] }
 0x7a2   :  { %v4468_v61 = vpop.f32.mrb[117].mxu1 }
 0x7a3   :  { %v4469_v39 = vadd.f32 %v4468_v61, %v4467_v28  ;;  %v4470_v18 = vpop.f32.mrb[118].mxu1  ;;  %v3333_v0 = vpack.c.bf16 %v3302_v1, %v3301_v45  ;;  %v8124_v1 = vmax.f32 %v7036_v31, 0.0 }
 0x7a4   :  { %v4471_v23 = vpop.f32.mrb[119].mxu1 }
 0x7a5   :  { %v3239_v8 = vmul.f32 %v4469_v39, %v8008_v13  ;;  %v4472_v42 = vadd.f32 %v4471_v23, %v4470_v18  ;;  %4861 = vmatprep.mubr.bf16.mxu0 %v3333_v0  ;;  %v3273_v39 = vmul.f32 %v8124_v1, %v8123_v43 }
 0x7a7   :  { %v3303_v6 = vadd.f32 %v3271_v12, %v3239_v8  ;;  %v3240_v57 = vmul.f32 %v4472_v42, %v8012_v33  ;;  %v8125_v42 = vld [vmem:[#allocation7_spill] sm:$0xff]  ;;  %v8126_v33 = vmax.f32 %v7044_v59, 0.0  ;;  %v5139_v59 = vld [vmem:[%s7740_s14 + $0x18] sm:$0xff]  }
 0x7a9   :  { %v3304_v21 = vadd.f32 %v3272_v14, %v3240_v57  ;;  %v4473_v61 = vpop.f32.mrb[120].mxu1  ;;  %v3274_v18 = vmul.f32 %v8126_v33, %v8125_v42  ;;  %v8127_v14 = vld [vmem:[#allocation8_spill] sm:$0xff] }
 0x7aa   :  { %v4474_v28 = vpop.f32.mrb[121].mxu1 }
 0x7ab   :  { %v3334_v45 = vpack.c.bf16 %v3304_v21, %v3303_v6  ;;  %v4475_v48 = vadd.f32 %v4474_v28, %v4473_v61  ;;  %v4476_v40 = vpop.f32.mrb[122].mxu1  ;;  %v8129_v61 = vld [vmem:[#allocation9_spill] sm:$0xff]  ;;  %v8130_v28 = vmax.f32 %v7040_v55, 0.0  ;;  %v5141_v55 = vld [vmem:[%s7740_s14 + $0x28] sm:$0xff]  }
 0x7ac   :  { %v4477_v13 = vpop.f32.mrb[123].mxu1 }
 0x7ad   :  { %v3241_v4 = vmul.f32 %v4475_v48, %v8016_v60  ;;  %v4478_v8 = vadd.f32 %v4477_v13, %v4476_v40  ;;  %4862 = vmatmul.mubr.bf16.vlgmr.msra.gmra.mrb[176].mxu0 %v3334_v45  ;;  %v3276_v45 = vmul.f32 %v8130_v28, %v8129_v61  ;;  %v8139_v61 = vld [vmem:[#allocation12_spill] sm:$0xff]  ;;  %v8140_v28 = vld [vmem:[#allocation37_spill] sm:$0xff] }
 0x7ae   :  { %4894 = vmatpush3.bf16.msra.mxu0 %v5136_v19 }
 0x7af   :  { %v3305_v0 = vadd.f32 %v3273_v39, %v3241_v4  ;;  %v3242_v23 = vmul.f32 %v4478_v8, %v8020_v2  ;;  %4895 = vmatprep.subr.bf16.mxu0 %v5137_v10  ;;  %v8128_v2 = vmax.f32 %v7033_v25, 0.0  ;;  %v8131_v8 = vld [vmem:[#allocation10_spill] sm:$0xff] }
 0x7b1   :  { %v3306_v54 = vadd.f32 %v3274_v18, %v3242_v23  ;;  %v4479_v31 = vpop.f32.mrb[124].mxu1  ;;  %v3275_v6 = vmul.f32 %v8128_v2, %v8127_v14  ;;  %v8134_v18 = vld [vmem:[#allocation31_spill] sm:$0xff] }
 0x7b2   :  { %v4480_v12 = vpop.f32.mrb[125].mxu1  ;;  %4896 = vmatpush3.bf16.msra.mxu0 %v5137_v10  ;;  %v5140_v10 = vld [vmem:[%s7740_s14 + $0x20] sm:$0xff]  }
 0x7b3   :  { %v4481_v60 = vadd.f32 %v4480_v12, %v4479_v31  ;;  %v4482_v52 = vpop.f32.mrb[126].mxu1  ;;  %v3335_v56 = vpack.c.bf16 %v3306_v54, %v3305_v0  ;;  %4897 = vmatprep.subr.bf16.mxu0 %v5138_v5  ;;  %v8136_v54 = vld [vmem:[#allocation47_spill] sm:$0xff] }
 0x7b4   :  { %v4483_v19 = vpop.f32.mrb[127].mxu1  ;;  %v8137_v31 = vmax.f32 %v8136_v54, 0.0  ;;  %v8148_v54 = vld [vmem:[#allocation46_spill] sm:$0xff] }
 0x7b5   :  { %v3243_v57 = vmul.f32 %v4481_v60, %v8024_v36  ;;  %v4484_v21 = vadd.f32 %v4483_v19, %v4482_v52  ;;  %4865 = vmatprep.mubr.bf16.mxu0 %v3335_v56  ;;  %v8138_v52 = vld [vmem:[#allocation29_spill] sm:$0xff] }
 0x7b6   :  { %4898 = vmatpush3.bf16.msra.mxu0 %v5138_v5  ;;  %v8135_v5 = vld [vmem:[#allocation11_spill] sm:$0xff] }
 0x7b7   :  { %v3307_v48 = vadd.f32 %v3275_v6, %v3243_v57  ;;  %v3244_v40 = vmul.f32 %v4484_v21, %v8028_v26  ;;  %4899 = vmatprep.subr.bf16.mxu0 %v5139_v59  ;;  %v8132_v26 = vld [vmem:[#allocation39_spill] sm:$0xff]  ;;  %v3278_v12 = vmul.f32 %v8137_v31, %v8135_v5  ;;  %v8147_v5 = vld [vmem:[#allocation14_spill] sm:$0xff]  ;;  %v8149_v31 = vmax.f32 %v8148_v54, 0.0 }
 0x7b8   :  { %v8133_v42 = vmax.f32 %v8132_v26, 0.0 }
 0x7b9   :  { %v3308_v13 = vadd.f32 %v3276_v45, %v3244_v40  ;;  %v4485_v25 = vpop.f32.mrb[128].mxu1  ;;  %v8141_v45 = vmax.f32 %v8140_v28, 0.0  ;;  %v8142_v40 = vld [vmem:[#allocation36_spill] sm:$0xff] }
 0x7ba   :  { %v4486_v43 = vpop.f32.mrb[129].mxu1  ;;  %4900 = vmatpush3.bf16.msra.mxu0 %v5139_v59  ;;  %v3277_v33 = vmul.f32 %v8133_v42, %v8131_v8 }
 0x7bb   :  { %v4487_v36 = vadd.f32 %v4486_v43, %v4485_v25  ;;  %v4488_v1 = vpop.f32.mrb[130].mxu1  ;;  %v3336_v39 = vpack.c.bf16 %v3308_v13, %v3307_v48  ;;  %4901 = vmatprep.subr.bf16.mxu0 %v5140_v10  ;;  %v3279_v48 = vmul.f32 %v8141_v45, %v8139_v61  ;;  %v8143_v25 = vld [vmem:[#allocation13_spill] sm:$0xff] }
 0x7bc   :  { %v4489_v4 = vpop.f32.mrb[131].mxu1  ;;  %v8144_v43 = vld [vmem:[#allocation45_spill] sm:$0xff] }
 0x7bd   :  { %v3245_v0 = vmul.f32 %v4487_v36, %v8134_v18  ;;  %v4490_v23 = vadd.f32 %v4489_v4, %v4488_v1  ;;  %4866 = vmatmul.mubr.bf16.gmra.mrb[180].mxu0 %v3336_v39  ;;  %v8145_v36 = vmax.f32 %v8144_v43, 0.0  ;;  %v8146_v4 = vld [vmem:[#allocation35_spill] sm:$0xff]  ;;  %v8156_v43 = vld [vmem:[#allocation44_spill] sm:$0xff] }
 0x7be   :  { %4902 = vmatpush3.bf16.msra.mxu0 %v5140_v10 }
 0x7bf   :  { %v3309_v60 = vadd.f32 %v3277_v33, %v3245_v0  ;;  %v3246_v56 = vmul.f32 %v4490_v23, %v8138_v52  ;;  %4903 = vmatprep.subr.bf16.mxu0 %v5141_v55  ;;  %v3280_v1 = vmul.f32 %v8145_v36, %v8143_v25  ;;  %v8155_v25 = vld [vmem:[#allocation16_spill] sm:$0xff]  ;;  %v8157_v36 = vmax.f32 %v8156_v43, 0.0 }
 0x7c1   :  { %v3310_v59 = vadd.f32 %v3278_v12, %v3246_v56  ;;  %v4491_v19 = vpop.f32.mrb[132].mxu1  ;;  %v3281_v12 = vmul.f32 %v8149_v31, %v8147_v5 }
 0x7c2   :  { %v4492_v14 = vpop.f32.mrb[133].mxu1  ;;  %4904 = vmatpush3.bf16.msra.mxu0 %v5141_v55 }
 0x7c3   :  { %v4493_v2 = vadd.f32 %v4492_v14, %v4491_v19  ;;  %v4494_v6 = vpop.f32.mrb[134].mxu1  ;;  %v3337_v57 = vpack.c.bf16 %v3310_v59, %v3309_v60  ;;  %v8150_v60 = vld [vmem:[#allocation42_spill] sm:$0xff]  ;;  %v8151_v59 = vld [vmem:[#allocation15_spill] sm:$0xff] }
 0x7c4   :  { %v4495_v21 = vpop.f32.mrb[135].mxu1  ;;  %v8152_v19 = vld [vmem:[#allocation51_spill] sm:$0xff] }
 0x7c5   :  { %v3247_v10 = vmul.f32 %v4493_v2, %v8142_v40  ;;  %v4496_v13 = vadd.f32 %v4495_v21, %v4494_v6  ;;  %4869 = vmatprep.mubr.bf16.mxu0 %v3337_v57  ;;  %v8153_v14 = vmax.f32 %v8152_v19, 0.0  ;;  %v8154_v57 = vld [vmem:[#allocation41_spill] sm:$0xff]  ;;  %v8164_v19 = vmax.f32 %v7156_v62, 0.0 }
 0x7c6   :  { %v8167_v62 = vld [vmem:[#allocation25_spill] sm:$0xff] }
 0x7c7   :  { %v3311_v39 = vadd.f32 %v3279_v48, %v3247_v10  ;;  %v3248_v8 = vmul.f32 %v4496_v13, %v8146_v4  ;;  %v3282_v2 = vmul.f32 %v8153_v14, %v8151_v59  ;;  %v8163_v59 = vld [vmem:[#allocation18_spill] sm:$0xff] }
 0x7c8   :  { %v3285_v14 = vmul.f32 %v8164_v19, %v8163_v59  ;;  %v8175_v59 = vld [vmem:[#allocation21_spill] sm:$0xff]  ;;  %v8176_v19 = vmax.f32 %v7198_v46, 0.0  ;;  %v8179_v46 = vld [vmem:[#allocation24_spill] sm:$0xff] }
 0x7c9   :  { %v3312_v55 = vadd.f32 %v3280_v1, %v3248_v8  ;;  %v4497_v26 = vpop.f32.mrb[136].mxu1  ;;  %v3283_v1 = vmul.f32 %v8157_v36, %v8155_v25 }
 0x7ca   :  { %v4498_v42 = vpop.f32.mrb[137].mxu1 }
 0x7cb   :  { %v4499_v33 = vadd.f32 %v4498_v42, %v4497_v26  ;;  %v4500_v18 = vpop.f32.mrb[138].mxu1  ;;  %v3338_v0 = vpack.c.bf16 %v3312_v55, %v3311_v39  ;;  %v8158_v39 = vld [vmem:[#allocation49_spill] sm:$0xff]  ;;  %v8160_v26 = vld [vmem:[#allocation50_spill] sm:$0xff] }
 0x7cc   :  { %v4501_v23 = vpop.f32.mrb[139].mxu1  ;;  %v8159_v55 = vld [vmem:[#allocation17_spill] sm:$0xff]  ;;  %v8161_v42 = vmax.f32 %v8160_v26, 0.0 }
 0x7cd   :  { %v3249_v52 = vmul.f32 %v4499_v33, %v8150_v60  ;;  %v4502_v56 = vadd.f32 %v4501_v23, %v4500_v18  ;;  %4870 = vmatmul.mubr.bf16.gmra.mrb[184].mxu0 %v3338_v0  ;;  %v8162_v0 = vld [vmem:[#allocation48_spill] sm:$0xff] }
 0x7ce   :  { %v3284_v33 = vmul.f32 %v8161_v42, %v8159_v55  ;;  %v8172_v42 = vld [vmem:[#allocation20_spill] sm:$0xff] }
 0x7cf   :  { %v3313_v6 = vadd.f32 %v3281_v12, %v3249_v52  ;;  %v3250_v21 = vmul.f32 %v4502_v56, %v8154_v57  ;;  %v8165_v57 = vld [vmem:[#allocation19_spill] sm:$0xff] }
 0x7d1   :  { %v3314_v61 = vadd.f32 %v3282_v2, %v3250_v21  ;;  %v4503_v28 = vpop.f32.mrb[140].mxu1  ;;  %v8166_v21 = vmax.f32 %v7164_v41, 0.0  ;;  %v8169_v41 = vld [vmem:[#allocation22_spill] sm:$0xff] }
 0x7d2   :  { %v4504_v45 = vpop.f32.mrb[141].mxu1 }
 0x7d3   :  { %v4505_v48 = vadd.f32 %v4504_v45, %v4503_v28  ;;  %v4506_v40 = vpop.f32.mrb[142].mxu1  ;;  %v3339_v10 = vpack.c.bf16 %v3314_v61, %v3313_v6  ;;  %v3286_v61 = vmul.f32 %v8166_v21, %v8165_v57 }
 0x7d4   :  { %v4507_v13 = vpop.f32.mrb[143].mxu1 }
 0x7d5   :  { %v3251_v4 = vmul.f32 %v4505_v48, %v8158_v39  ;;  %v4508_v8 = vadd.f32 %v4507_v13, %v4506_v40  ;;  %4873 = vmatprep.mubr.bf16.mxu0 %v3339_v10 }
 0x7d7   :  { %v3315_v18 = vadd.f32 %v3283_v1, %v3251_v4  ;;  %v3252_v23 = vmul.f32 %v4508_v8, %v8162_v0  ;;  %v8168_v1 = vmax.f32 %v7153_v35, 0.0  ;;  %v8170_v8 = vld [vmem:[#allocation52_spill] sm:$0xff]  ;;  %v8173_v35 = vld [vmem:[#allocation26_spill] sm:$0xff] }
 0x7d8   :  { %v8171_v55 = vmax.f32 %v8170_v8, 0.0 }
 0x7d9   :  { %v3316_v5 = vadd.f32 %v3284_v33, %v3252_v23  ;;  %v4509_v54 = vpop.f32.mrb[144].mxu1 }
 0x7da   :  { %v4510_v31 = vpop.f32.mrb[145].mxu1  ;;  %v3288_v26 = vmul.f32 %v8171_v55, %v8169_v41 }
 0x7db   :  { %v4511_v12 = vadd.f32 %v4510_v31, %v4509_v54  ;;  %v4512_v60 = vpop.f32.mrb[146].mxu1  ;;  %v3340_v52 = vpack.c.bf16 %v3316_v5, %v3315_v18 }
 0x7dc   :  { %v4513_v56 = vpop.f32.mrb[147].mxu1 }
 0x7dd   :  { %v3253_v2 = vmul.f32 %v4511_v12, %v6374_v38  ;;  %v4514_v6 = vadd.f32 %v4513_v56, %v4512_v60  ;;  %4874 = vmatmul.mubr.bf16.gmra.mrb[188].mxu0 %v3340_v52  ;;  %v3287_v38 = vmul.f32 %v8168_v1, %v8167_v62  ;;  %v8174_v60 = vmax.f32 %v7190_v32, 0.0  ;;  %v8177_v32 = vld [vmem:[#allocation32_spill] sm:$0xff] }
 0x7df   :  { %v3317_v28 = vadd.f32 %v3285_v14, %v3253_v2  ;;  %v3254_v45 = vmul.f32 %v4514_v6, %v6372_v27  ;;  %v3290_v14 = vmul.f32 %v8176_v19, %v8175_v59  ;;  %v8187_v59 = vld [vmem:[#allocation28_spill] sm:$0xff]  ;;  %v8188_v19 = vmax.f32 %v7228_v49, 0.0 }
 0x7e1   :  { %v3318_v48 = vadd.f32 %v3286_v61, %v3254_v45  ;;  %v4515_v40 = vpop.f32.mrb[148].mxu1 }
 0x7e2   :  { %v4516_v10 = vpop.f32.mrb[149].mxu1 }
 0x7e3   :  { %v4517_v13 = vadd.f32 %v4516_v10, %v4515_v40  ;;  %v4518_v25 = vpop.f32.mrb[150].mxu1  ;;  %v3341_v43 = vpack.c.bf16 %v3318_v48, %v3317_v28  ;;  %v8178_v10 = vmax.f32 %v7184_v11, 0.0  ;;  %v8181_v11 = vld [vmem:[#allocation34_spill] sm:$0xff] }
 0x7e4   :  { %v4519_v36 = vpop.f32.mrb[151].mxu1 }
 0x7e5   :  { %v3255_v39 = vmul.f32 %v4517_v13, %v6382_v17  ;;  %v4520_v4 = vadd.f32 %v4519_v36, %v4518_v25  ;;  %4877 = vmatprep.mubr.bf16.mxu0 %v3341_v43  ;;  %v3289_v17 = vmul.f32 %v8174_v60, %v8173_v35  ;;  %v8180_v43 = vmax.f32 %v7194_v58, 0.0  ;;  %v8183_v58 = vld [vmem:[#allocation23_spill] sm:$0xff]  ;;  %v8185_v60 = vld [vmem:[#allocation30_spill] sm:$0xff] }
 0x7e7   :  { %v3319_v27 = vadd.f32 %v3287_v38, %v3255_v39  ;;  %v3256_v33 = vmul.f32 %v4520_v4, %v8172_v42  ;;  %v3292_v36 = vmul.f32 %v8180_v43, %v8179_v46 }
 0x7e9   :  { %v3320_v18 = vadd.f32 %v3288_v26, %v3256_v33  ;;  %v4521_v0 = vpop.f32.mrb[152].mxu1  ;;  %v8182_v26 = vmax.f32 %v7224_v29, 0.0  ;;  %v8184_v33 = vmax.f32 %v7232_v9, 0.0 }
 0x7ea   :  { %v4522_v23 = vpop.f32.mrb[153].mxu1 }
 0x7eb   :  { %v4523_v5 = vadd.f32 %v4522_v23, %v4521_v0  ;;  %v4524_v54 = vpop.f32.mrb[154].mxu1  ;;  %v3342_v31 = vpack.c.bf16 %v3320_v18, %v3319_v27  ;;  %v3294_v18 = vmul.f32 %v8184_v33, %v8183_v58  ;;  %v7560_v58 = vld [vmem:[%s7741_s13] ss:$0 sm:$0xff] }
 0x7ec   :  { %v4525_v12 = vpop.f32.mrb[155].mxu1 }
 0x7ed   :  { %v3257_v52 = vmul.f32 %v4523_v5, %v6390_v30  ;;  %v4526_v56 = vadd.f32 %v4525_v12, %v4524_v54  ;;  %4878 = vmatmul.mubr.bf16.gmra.mrb[192].mxu0 %v3342_v31  ;;  %v3291_v30 = vmul.f32 %v8178_v10, %v8177_v32  ;;  %v5142_v31 = vld [vmem:[%s7740_s14 + $0x30] sm:$0xff]  }
 0x7ee   :  { %4905 = vmatprep.subr.bf16.mxu0 %v5142_v31 }
 0x7ef   :  { %v3321_v2 = vadd.f32 %v3289_v17, %v3257_v52  ;;  %v3258_v6 = vmul.f32 %v4526_v56, %v6388_v3  ;;  %v8186_v17 = vmax.f32 %v7218_v34, 0.0  ;;  %4906 = vmatpush3.bf16.msra.mxu0 %v5142_v31 }
 0x7f1   :  { %v3322_v57 = vadd.f32 %v3290_v14, %v3258_v6  ;;  %v4527_v21 = vpop.f32.mrb[156].mxu1  ;;  %v3295_v9 = vmul.f32 %v8186_v17, %v8185_v60  ;;  %v3296_v14 = vmul.f32 %v8188_v19, %v8187_v59 }
 0x7f2   :  { %v4528_v61 = vpop.f32.mrb[157].mxu1 }
 0x7f3   :  { %v4529_v28 = vadd.f32 %v4528_v61, %v4527_v21  ;;  %v4530_v45 = vpop.f32.mrb[158].mxu1  ;;  %v3343_v48 = vpack.c.bf16 %v3322_v57, %v3321_v2 }
 0x7f4   :  { %v4531_v40 = vpop.f32.mrb[159].mxu1 }
 0x7f5   :  { %v3259_v13 = vmul.f32 %v4529_v28, %v6403_v53  ;;  %v4532_v25 = vadd.f32 %v4531_v40, %v4530_v45  ;;  %4881 = vmatprep.mubr.bf16.mxu0 %v3343_v48  ;;  %v3293_v53 = vmul.f32 %v8182_v26, %v8181_v11  ;;  %v8189_v48 = vld [vmem:[#allocation33_spill] sm:$0xff]  ;;  %v8190_v40 = vmax.f32 %v7258_v50, 0.0  ;;  %v8193_v50 = vld [vmem:[#allocation38_spill] sm:$0xff]  ;;  %v8197_v26 = vld [vmem:[#allocation43_spill] sm:$0xff] }
 0x7f7   :  { %v3323_v3 = vadd.f32 %v3291_v30, %v3259_v13  ;;  %v3260_v62 = vmul.f32 %v4532_v25, %v6401_v63  ;;  %v3297_v32 = vmul.f32 %v8190_v40, %v8189_v48  ;;  %v8191_v30 = vld [vmem:[#allocation27_spill] sm:$0xff] }
 0x7f9   :  { %v3324_v1 = vadd.f32 %v3292_v36, %v3260_v62  ;;  %v4533_v38 = vpop.f32.mrb[160].mxu1 }
 0x7fa   :  { %v4534_v39 = vpop.f32.mrb[161].mxu1 }
 0x7fb   :  { %v4535_v4 = vadd.f32 %v4534_v39, %v4533_v38  ;;  %v4536_v41 = vpop.f32.mrb[162].mxu1  ;;  %v3344_v8 = vpack.c.bf16 %v3324_v1, %v3323_v3 }
 0x7fc   :  { %v4537_v55 = vpop.f32.mrb[163].mxu1 }
 0x7fd   :  { %v3261_v27 = vmul.f32 %v4535_v4, %v6451_v7  ;;  %v4538_v42 = vadd.f32 %v4537_v55, %v4536_v41  ;;  %4882 = vmatmul.mubr.bf16.gmra.mrb[196].mxu0 %v3344_v8  ;;  %v8194_v4 = vmax.f32 %v7252_v44, 0.0  ;;  %v8196_v55 = vmax.f32 %v7262_v47, 0.0 }
 0x7ff   :  { %v3325_v63 = vadd.f32 %v3293_v53, %v3261_v27  ;;  %v3262_v0 = vmul.f32 %v4538_v42, %v6449_v22  ;;  %v5143_v22 = vld [vmem:[%s7740_s14 + $0x38] sm:$0xff]  }
 0x800   :  { %4907 = vmatprep.subr.bf16.mxu0 %v5143_v22 }
 0x801   :  { %v3326_v23 = vadd.f32 %v3294_v18, %v3262_v0  ;;  %v4539_v5 = vpop.f32.mrb[164].mxu1  ;;  %4908 = vmatpush3.bf16.msra.mxu0 %v5143_v22 }
 0x802   :  { %v4540_v54 = vpop.f32.mrb[165].mxu1 }
 0x803   :  { %v4541_v29 = vadd.f32 %v4540_v54, %v4539_v5  ;;  %v4542_v12 = vpop.f32.mrb[166].mxu1  ;;  %v3345_v35 = vpack.c.bf16 %v3326_v23, %v3325_v63 }
 0x804   :  { %v4543_v7 = vpop.f32.mrb[167].mxu1 }
 0x805   :  { %v3263_v52 = vmul.f32 %v4541_v29, %v6485_v15  ;;  %v4544_v56 = vadd.f32 %v4543_v7, %v4542_v12  ;;  %4885 = vmatprep.mubr.bf16.mxu0 %v3345_v35 }
 0x807   :  { %v3327_v2 = vadd.f32 %v3295_v9, %v3263_v52  ;;  %v3264_v6 = vmul.f32 %v4544_v56, %v6473_v37  ;;  %v8192_v37 = vmax.f32 %v7266_v24, 0.0  ;;  %v8195_v24 = vld [vmem:[#allocation40_spill] sm:$0xff] }
 0x808   :  { %v3300_v11 = vmul.f32 %v8196_v55, %v8195_v24 }
 0x809   :  { %v3328_v57 = vadd.f32 %v3296_v14, %v3264_v6  ;;  %v4545_v34 = vpop.f32.mrb[168].mxu1  ;;  %v3298_v13 = vmul.f32 %v8192_v37, %v8191_v30 }
 0x80a   :  { %v4546_v21 = vpop.f32.mrb[169].mxu1 }
 0x80b   :  { %v4547_v15 = vadd.f32 %v4546_v21, %v4545_v34  ;;  %v4548_v61 = vpop.f32.mrb[170].mxu1  ;;  %v3346_v28 = vpack.c.bf16 %v3328_v57, %v3327_v2 }
 0x80c   :  { %v4549_v45 = vpop.f32.mrb[171].mxu1 }
 0x80d   :  { %v3265_v10 = vmul.f32 %v4547_v15, %v6517_v51  ;;  %v4550_v49 = vadd.f32 %v4549_v45, %v4548_v61  ;;  %4886 = vmatmul.mubr.bf16.gmra.mrb[200].mxu0 %v3346_v28  ;;  %v3299_v51 = vmul.f32 %v8194_v4, %v8193_v50 }
 0x80f   :  { %v3329_v25 = vadd.f32 %v3297_v32, %v3265_v10  ;;  %v3266_v46 = vmul.f32 %v4550_v49, %v6511_v16 }
 0x811   :  { %v3330_v43 = vadd.f32 %v3298_v13, %v3266_v46  ;;  %v4551_v36 = vpop.f32.mrb[172].mxu1 }
 0x812   :  { %v4552_v3 = vpop.f32.mrb[173].mxu1 }
 0x813   :  { %v4553_v62 = vadd.f32 %v4552_v3, %v4551_v36  ;;  %v4554_v1 = vpop.f32.mrb[174].mxu1  ;;  %v3347_v38 = vpack.c.bf16 %v3330_v43, %v3329_v25 }
 0x814   :  { %v4555_v39 = vpop.f32.mrb[175].mxu1 }
 0x815   :  { %v3267_v41 = vmul.f32 %v4553_v62, %v6555_v20  ;;  %v4556_v8 = vadd.f32 %v4555_v39, %v4554_v1  ;;  %4889 = vmatprep.mubr.bf16.mxu0 %v3347_v38 }
 0x817   :  { %v3331_v16 = vadd.f32 %v3299_v51, %v3267_v41  ;;  %v3268_v53 = vmul.f32 %v4556_v8, %v8197_v26 }
 0x819   :  { %v3332_v27 = vadd.f32 %v3300_v11, %v3268_v53 }
 0x81b   :  { %v3348_v42 = vpack.c.bf16 %v3332_v27, %v3331_v16 }
 0x81d   :  { %4890 = vmatmul.mubr.bf16.gmra.mrb[204].mxu0 %v3348_v42 }
 0x880   :  { %v4863_v44 = vpop.f32.mrb[176].mxu0 }
 0x881   :  { %v3446_v20 = vadd.f32 %v4863_v44, %v7560_v58  ;;  %v3437_v33 = vpop.f32.mrb[177].mxu0 }
 0x882   :  { %v3438_v18 = vadd.f32 %v7560_v58, %v3437_v33  ;;  %v4864_v63 = vpop.f32.mrb[178].mxu0 }
 0x883   :  { %v3449_v47 = vadd.f32 %v4864_v63, %v7560_v58  ;;  %v3440_v0 = vpop.f32.mrb[179].mxu0  ;;  %v3566_v5 = vmax.f32 %v3446_v20, 0.0 }
 0x884   :  { %v3441_v23 = vadd.f32 %v7560_v58, %v3440_v0  ;;  %v3564_v31 = vmax.f32 %v3438_v18, 0.0 }
 0x885   :  { %v3567_v54 = vmax.f32 %v3449_v47, 0.0 }
 0x886   :  { %v3565_v29 = vmax.f32 %v3441_v23, 0.0 }
 0x887   :  { %v3597_v12 = vpack.c.bf16 %v3567_v54, %v3566_v5 }
 0x888   :  { %v3596_v35 = vpack.c.bf16 %v3565_v29, %v3564_v31 }
 0x88a   :  { %4909 = vmatprep.mubr.bf16.mxu0 %v3596_v35 }
 0x88b   :  { %4910 = vmatmul.mubr.bf16.vlgmr.msra.gmra.mrb[208].mxu0 %v3597_v12 }
 0x890   :  { %v4867_v7 = vpop.f32.mrb[180].mxu0 }
 0x891   :  { %v3462_v60 = vadd.f32 %v4867_v7, %v7560_v58  ;;  %v3453_v17 = vpop.f32.mrb[181].mxu0 }
 0x892   :  { %v3454_v9 = vadd.f32 %v7560_v58, %v3453_v17  ;;  %v4868_v52 = vpop.f32.mrb[182].mxu0 }
 0x893   :  { %v3465_v56 = vadd.f32 %v4868_v52, %v7560_v58  ;;  %v3456_v22 = vpop.f32.mrb[183].mxu0  ;;  %v3570_v19 = vmax.f32 %v3462_v60, 0.0 }
 0x894   :  { %v3457_v59 = vadd.f32 %v7560_v58, %v3456_v22  ;;  %v3568_v2 = vmax.f32 %v3454_v9, 0.0 }
 0x895   :  { %v3571_v14 = vmax.f32 %v3465_v56, 0.0 }
 0x896   :  { %v3569_v6 = vmax.f32 %v3457_v59, 0.0 }
 0x897   :  { %v3599_v57 = vpack.c.bf16 %v3571_v14, %v3570_v19 }
 0x898   :  { %v3598_v34 = vpack.c.bf16 %v3569_v6, %v3568_v2 }
 0x89a   :  { %4913 = vmatprep.mubr.bf16.mxu0 %v3598_v34 }
 0x89b   :  { %4914 = vmatmul.mubr.bf16.gmra.mrb[212].mxu0 %v3599_v57 }
 0x8a0   :  { %v4871_v21 = vpop.f32.mrb[184].mxu0 }
 0x8a1   :  { %v3478_v15 = vadd.f32 %v4871_v21, %v7560_v58  ;;  %v3469_v61 = vpop.f32.mrb[185].mxu0 }
 0x8a2   :  { %v3470_v28 = vadd.f32 %v7560_v58, %v3469_v61  ;;  %v4872_v45 = vpop.f32.mrb[186].mxu0 }
 0x8a3   :  { %v3481_v48 = vadd.f32 %v4872_v45, %v7560_v58  ;;  %v3472_v40 = vpop.f32.mrb[187].mxu0  ;;  %v3574_v10 = vmax.f32 %v3478_v15, 0.0 }
 0x8a4   :  { %v3473_v32 = vadd.f32 %v7560_v58, %v3472_v40  ;;  %v3572_v30 = vmax.f32 %v3470_v28, 0.0 }
 0x8a5   :  { %v3575_v49 = vmax.f32 %v3481_v48, 0.0 }
 0x8a6   :  { %v3573_v37 = vmax.f32 %v3473_v32, 0.0 }
 0x8a7   :  { %v3601_v13 = vpack.c.bf16 %v3575_v49, %v3574_v10 }
 0x8a8   :  { %v3600_v25 = vpack.c.bf16 %v3573_v37, %v3572_v30 }
 0x8aa   :  { %4917 = vmatprep.mubr.bf16.mxu0 %v3600_v25 }
 0x8ab   :  { %4918 = vmatmul.mubr.bf16.gmra.mrb[216].mxu0 %v3601_v13 }
 0x8b0   :  { %v4875_v46 = vpop.f32.mrb[188].mxu0 }
 0x8b1   :  { %v3494_v43 = vadd.f32 %v4875_v46, %v7560_v58  ;;  %v3485_v36 = vpop.f32.mrb[189].mxu0 }
 0x8b2   :  { %v3486_v3 = vadd.f32 %v7560_v58, %v3485_v36  ;;  %v4876_v62 = vpop.f32.mrb[190].mxu0 }
 0x8b3   :  { %v3497_v1 = vadd.f32 %v4876_v62, %v7560_v58  ;;  %v3488_v38 = vpop.f32.mrb[191].mxu0  ;;  %v3578_v50 = vmax.f32 %v3494_v43, 0.0 }
 0x8b4   :  { %v3489_v39 = vadd.f32 %v7560_v58, %v3488_v38  ;;  %v3576_v51 = vmax.f32 %v3486_v3, 0.0 }
 0x8b5   :  { %v3579_v4 = vmax.f32 %v3497_v1, 0.0 }
 0x8b6   :  { %v3577_v41 = vmax.f32 %v3489_v39, 0.0  ;;  %v7597_v39 = vld [vmem:[%s7742_s15] ss:$0 sm:$0xff] }
 0x8b7   :  { %v3603_v8 = vpack.c.bf16 %v3579_v4, %v3578_v50 }
 0x8b8   :  { %v3602_v24 = vpack.c.bf16 %v3577_v41, %v3576_v51 }
 0x8ba   :  { %4921 = vmatprep.mubr.bf16.mxu0 %v3602_v24 }
 0x8bb   :  { %4922 = vmatmul.mubr.bf16.gmra.mrb[220].mxu0 %v3603_v8 }
 0x8c0   :  { %v4879_v55 = vpop.f32.mrb[192].mxu0 }
 0x8c1   :  { %v3510_v11 = vadd.f32 %v4879_v55, %v7560_v58  ;;  %v3501_v16 = vpop.f32.mrb[193].mxu0 }
 0x8c2   :  { %v3502_v26 = vadd.f32 %v7560_v58, %v3501_v16  ;;  %v4880_v53 = vpop.f32.mrb[194].mxu0 }
 0x8c3   :  { %v3513_v27 = vadd.f32 %v4880_v53, %v7560_v58  ;;  %v3504_v42 = vpop.f32.mrb[195].mxu0  ;;  %v3582_v20 = vmax.f32 %v3510_v11, 0.0 }
 0x8c4   :  { %v3505_v44 = vadd.f32 %v7560_v58, %v3504_v42  ;;  %v3580_v18 = vmax.f32 %v3502_v26, 0.0 }
 0x8c5   :  { %v3583_v33 = vmax.f32 %v3513_v27, 0.0 }
 0x8c6   :  { %v3581_v63 = vmax.f32 %v3505_v44, 0.0 }
 0x8c7   :  { %v3605_v47 = vpack.c.bf16 %v3583_v33, %v3582_v20 }
 0x8c8   :  { %v3604_v0 = vpack.c.bf16 %v3581_v63, %v3580_v18 }
 0x8ca   :  { %4925 = vmatprep.mubr.bf16.mxu0 %v3604_v0 }
 0x8cb   :  { %4926 = vmatmul.mubr.bf16.gmra.mrb[224].mxu0 %v3605_v47 }
 0x8d0   :  { %v4883_v23 = vpop.f32.mrb[196].mxu0 }
 0x8d1   :  { %v3526_v5 = vadd.f32 %v4883_v23, %v7560_v58  ;;  %v3517_v54 = vpop.f32.mrb[197].mxu0 }
 0x8d2   :  { %v3518_v31 = vadd.f32 %v7560_v58, %v3517_v54  ;;  %v4884_v29 = vpop.f32.mrb[198].mxu0 }
 0x8d3   :  { %v3529_v12 = vadd.f32 %v4884_v29, %v7560_v58  ;;  %v3520_v35 = vpop.f32.mrb[199].mxu0  ;;  %v3586_v60 = vmax.f32 %v3526_v5, 0.0 }
 0x8d4   :  { %v3521_v7 = vadd.f32 %v7560_v58, %v3520_v35  ;;  %v3584_v9 = vmax.f32 %v3518_v31, 0.0 }
 0x8d5   :  { %v3587_v17 = vmax.f32 %v3529_v12, 0.0 }
 0x8d6   :  { %v3585_v52 = vmax.f32 %v3521_v7, 0.0 }
 0x8d7   :  { %v3607_v56 = vpack.c.bf16 %v3587_v17, %v3586_v60 }
 0x8d8   :  { %v3606_v22 = vpack.c.bf16 %v3585_v52, %v3584_v9 }
 0x8da   :  { %4929 = vmatprep.mubr.bf16.mxu0 %v3606_v22 }
 0x8db   :  { %4930 = vmatmul.mubr.bf16.gmra.mrb[228].mxu0 %v3607_v56 }
 0x8e0   :  { %v4887_v59 = vpop.f32.mrb[200].mxu0 }
 0x8e1   :  { %v3542_v19 = vadd.f32 %v4887_v59, %v7560_v58  ;;  %v3533_v14 = vpop.f32.mrb[201].mxu0 }
 0x8e2   :  { %v3534_v2 = vadd.f32 %v7560_v58, %v3533_v14  ;;  %v4888_v6 = vpop.f32.mrb[202].mxu0 }
 0x8e3   :  { %v3545_v57 = vadd.f32 %v4888_v6, %v7560_v58  ;;  %v3536_v34 = vpop.f32.mrb[203].mxu0  ;;  %v3590_v15 = vmax.f32 %v3542_v19, 0.0 }
 0x8e4   :  { %v3537_v21 = vadd.f32 %v7560_v58, %v3536_v34  ;;  %v3588_v28 = vmax.f32 %v3534_v2, 0.0 }
 0x8e5   :  { %v3591_v61 = vmax.f32 %v3545_v57, 0.0 }
 0x8e6   :  { %v3589_v45 = vmax.f32 %v3537_v21, 0.0 }
 0x8e7   :  { %v3609_v48 = vpack.c.bf16 %v3591_v61, %v3590_v15 }
 0x8e8   :  { %v3608_v40 = vpack.c.bf16 %v3589_v45, %v3588_v28 }
 0x8ea   :  { %4933 = vmatprep.mubr.bf16.mxu0 %v3608_v40 }
 0x8eb   :  { %4934 = vmatmul.mubr.bf16.gmra.mrb[232].mxu0 %v3609_v48 }
 0x8f0   :  { %v4891_v32 = vpop.f32.mrb[204].mxu0 }
 0x8f1   :  { %v3558_v10 = vadd.f32 %v4891_v32, %v7560_v58  ;;  %v3549_v49 = vpop.f32.mrb[205].mxu0 }
 0x8f2   :  { %v3550_v30 = vadd.f32 %v7560_v58, %v3549_v49  ;;  %v4892_v37 = vpop.f32.mrb[206].mxu0 }
 0x8f3   :  { %v3561_v13 = vadd.f32 %v4892_v37, %v7560_v58  ;;  %v3552_v25 = vpop.f32.mrb[207].mxu0  ;;  %v3594_v43 = vmax.f32 %v3558_v10, 0.0 }
 0x8f4   :  { %v3553_v46 = vadd.f32 %v7560_v58, %v3552_v25  ;;  %v3592_v3 = vmax.f32 %v3550_v30, 0.0 }
 0x8f5   :  { %v3595_v36 = vmax.f32 %v3561_v13, 0.0 }
 0x8f6   :  { %v3593_v62 = vmax.f32 %v3553_v46, 0.0 }
 0x8f7   :  { %v3611_v1 = vpack.c.bf16 %v3595_v36, %v3594_v43 }
 0x8f8   :  { %v3610_v38 = vpack.c.bf16 %v3593_v62, %v3592_v3 }
 0x8fa   :  { %4937 = vmatprep.mubr.bf16.mxu0 %v3610_v38 }
 0x8fb   :  { %4938 = vmatmul.mubr.bf16.gmra.mrb[236].mxu0 %v3611_v1 }
 0x95e   :  { %v4911_v50 = vpop.f32.mrb[208].mxu0 }
 0x95f   :  { %v3726_v4 = vadd.f32 %v4911_v50, %v7597_v39  ;;  %v3717_v51 = vpop.f32.mrb[209].mxu0 }
 0x960   :  { %v3718_v41 = vadd.f32 %v7597_v39, %v3717_v51  ;;  %v4912_v58 = vpop.f32.mrb[210].mxu0 }
 0x961   :  { %3846 = vst [vmem:[%s7743_s16 + $0x10] sm:$0xff] %v3726_v4  ;;  %v3729_v8 = vadd.f32 %v4912_v58, %v7597_v39  ;;  %v3720_v24 = vpop.f32.mrb[211].mxu0 }
 0x962   :  { %3844 = vst [vmem:[%s7743_s16] sm:$0xff] %v3718_v41  ;;  %v3721_v55 = vadd.f32 %v7597_v39, %v3720_v24 }
 0x963   :  { %3847 = vst [vmem:[%s7743_s16 + $0x18] sm:$0xff] %v3729_v8 }
 0x964   :  { %3845 = vst [vmem:[%s7743_s16 + $0x8] sm:$0xff] %v3721_v55 }
 0x96e   :  { %v4915_v11 = vpop.f32.mrb[212].mxu0 }
 0x96f   :  { %v3742_v16 = vadd.f32 %v4915_v11, %v7597_v39  ;;  %v3733_v26 = vpop.f32.mrb[213].mxu0 }
 0x970   :  { %v3734_v53 = vadd.f32 %v7597_v39, %v3733_v26  ;;  %v4916_v27 = vpop.f32.mrb[214].mxu0 }
 0x971   :  { %3850 = vst [vmem:[%s7743_s16 + $0x30] sm:$0xff] %v3742_v16  ;;  %v3745_v42 = vadd.f32 %v4916_v27, %v7597_v39  ;;  %v3736_v44 = vpop.f32.mrb[215].mxu0 }
 0x972   :  { %3848 = vst [vmem:[%s7743_s16 + $0x20] sm:$0xff] %v3734_v53  ;;  %v3737_v20 = vadd.f32 %v7597_v39, %v3736_v44 }
 0x973   :  { %3851 = vst [vmem:[%s7743_s16 + $0x38] sm:$0xff] %v3745_v42 }
 0x974   :  { %3849 = vst [vmem:[%s7743_s16 + $0x28] sm:$0xff] %v3737_v20 }
 0x97e   :  { %v4919_v33 = vpop.f32.mrb[216].mxu0 }
 0x97f   :  { %v3758_v18 = vadd.f32 %v4919_v33, %v7597_v39  ;;  %v3749_v63 = vpop.f32.mrb[217].mxu0 }
 0x980   :  { %v3750_v47 = vadd.f32 %v7597_v39, %v3749_v63  ;;  %v4920_v0 = vpop.f32.mrb[218].mxu0 }
 0x981   :  { %3854 = vst [vmem:[%s7743_s16 + $0x50] sm:$0xff] %v3758_v18  ;;  %v3761_v23 = vadd.f32 %v4920_v0, %v7597_v39  ;;  %v3752_v5 = vpop.f32.mrb[219].mxu0 }
 0x982   :  { %3852 = vst [vmem:[%s7743_s16 + $0x40] sm:$0xff] %v3750_v47  ;;  %v3753_v54 = vadd.f32 %v7597_v39, %v3752_v5 }
 0x983   :  { %3855 = vst [vmem:[%s7743_s16 + $0x58] sm:$0xff] %v3761_v23 }
 0x984   :  { %3853 = vst [vmem:[%s7743_s16 + $0x48] sm:$0xff] %v3753_v54 }
 0x98e   :  { %v4923_v31 = vpop.f32.mrb[220].mxu0 }
 0x98f   :  { %v3774_v29 = vadd.f32 %v4923_v31, %v7597_v39  ;;  %v3765_v12 = vpop.f32.mrb[221].mxu0 }
 0x990   :  { %v3766_v35 = vadd.f32 %v7597_v39, %v3765_v12  ;;  %v4924_v7 = vpop.f32.mrb[222].mxu0 }
 0x991   :  { %3858 = vst [vmem:[%s7743_s16 + $0x70] sm:$0xff] %v3774_v29  ;;  %v3777_v60 = vadd.f32 %v4924_v7, %v7597_v39  ;;  %v3768_v17 = vpop.f32.mrb[223].mxu0 }
 0x992   :  { %3856 = vst [vmem:[%s7743_s16 + $0x60] sm:$0xff] %v3766_v35  ;;  %v3769_v9 = vadd.f32 %v7597_v39, %v3768_v17 }
 0x993   :  { %3859 = vst [vmem:[%s7743_s16 + $0x78] sm:$0xff] %v3777_v60 }
 0x994   :  { %3857 = vst [vmem:[%s7743_s16 + $0x68] sm:$0xff] %v3769_v9 }
 0x99e   :  { %v4927_v52 = vpop.f32.mrb[224].mxu0 }
 0x99f   :  { %v3790_v56 = vadd.f32 %v4927_v52, %v7597_v39  ;;  %v3781_v22 = vpop.f32.mrb[225].mxu0 }
 0x9a0   :  { %v3782_v59 = vadd.f32 %v7597_v39, %v3781_v22  ;;  %v4928_v19 = vpop.f32.mrb[226].mxu0 }
 0x9a1   :  { %3862 = vst [vmem:[%s7743_s16 + $0x90] sm:$0xff] %v3790_v56  ;;  %v3793_v14 = vadd.f32 %v4928_v19, %v7597_v39  ;;  %v3784_v2 = vpop.f32.mrb[227].mxu0 }
 0x9a2   :  { %3860 = vst [vmem:[%s7743_s16 + $0x80] sm:$0xff] %v3782_v59  ;;  %v3785_v6 = vadd.f32 %v7597_v39, %v3784_v2 }
 0x9a3   :  { %3863 = vst [vmem:[%s7743_s16 + $0x98] sm:$0xff] %v3793_v14 }
 0x9a4   :  { %3861 = vst [vmem:[%s7743_s16 + $0x88] sm:$0xff] %v3785_v6 }
 0x9ae   :  { %v4931_v57 = vpop.f32.mrb[228].mxu0 }
 0x9af   :  { %v3806_v34 = vadd.f32 %v4931_v57, %v7597_v39  ;;  %v3797_v21 = vpop.f32.mrb[229].mxu0 }
 0x9b0   :  { %v3798_v15 = vadd.f32 %v7597_v39, %v3797_v21  ;;  %v4932_v61 = vpop.f32.mrb[230].mxu0 }
 0x9b1   :  { %3866 = vst [vmem:[%s7743_s16 + $0xb0] sm:$0xff] %v3806_v34  ;;  %v3809_v28 = vadd.f32 %v4932_v61, %v7597_v39  ;;  %v3800_v45 = vpop.f32.mrb[231].mxu0 }
 0x9b2   :  { %3864 = vst [vmem:[%s7743_s16 + $0xa0] sm:$0xff] %v3798_v15  ;;  %v3801_v48 = vadd.f32 %v7597_v39, %v3800_v45 }
 0x9b3   :  { %3867 = vst [vmem:[%s7743_s16 + $0xb8] sm:$0xff] %v3809_v28 }
 0x9b4   :  { %3865 = vst [vmem:[%s7743_s16 + $0xa8] sm:$0xff] %v3801_v48 }
 0x9be   :  { %v4935_v40 = vpop.f32.mrb[232].mxu0 }
 0x9bf   :  { %v3822_v32 = vadd.f32 %v4935_v40, %v7597_v39  ;;  %v3813_v10 = vpop.f32.mrb[233].mxu0 }
 0x9c0   :  { %v3814_v49 = vadd.f32 %v7597_v39, %v3813_v10  ;;  %v4936_v30 = vpop.f32.mrb[234].mxu0 }
 0x9c1   :  { %3870 = vst [vmem:[%s7743_s16 + $0xd0] sm:$0xff] %v3822_v32  ;;  %v3825_v37 = vadd.f32 %v4936_v30, %v7597_v39  ;;  %v3816_v13 = vpop.f32.mrb[235].mxu0 }
 0x9c2   :  { %3868 = vst [vmem:[%s7743_s16 + $0xc0] sm:$0xff] %v3814_v49  ;;  %v3817_v25 = vadd.f32 %v7597_v39, %v3816_v13 }
 0x9c3   :  { %3871 = vst [vmem:[%s7743_s16 + $0xd8] sm:$0xff] %v3825_v37 }
 0x9c4   :  { %3869 = vst [vmem:[%s7743_s16 + $0xc8] sm:$0xff] %v3817_v25 }
 0x9ce   :  { %v4939_v46 = vpop.f32.mrb[236].mxu0 }
 0x9cf   :  { %v3838_v43 = vadd.f32 %v4939_v46, %v7597_v39  ;;  %v3829_v36 = vpop.f32.mrb[237].mxu0 }
 0x9d0   :  { %v3830_v3 = vadd.f32 %v7597_v39, %v3829_v36  ;;  %v4940_v62 = vpop.f32.mrb[238].mxu0 }
 0x9d1   :  { %3874 = vst [vmem:[%s7743_s16 + $0xf0] sm:$0xff] %v3838_v43  ;;  %v3841_v1 = vadd.f32 %v4940_v62, %v7597_v39  ;;  %v3832_v38 = vpop.f32.mrb[239].mxu0 }
 0x9d2   :  { %3872 = vst [vmem:[%s7743_s16 + $0xe0] sm:$0xff] %v3830_v3  ;;  %v3833_v50 = vadd.f32 %v7597_v39, %v3832_v38 }
 0x9d3   :  { %3875 = vst [vmem:[%s7743_s16 + $0xf8] sm:$0xff] %v3841_v1 }
 0x9d4   :  { %3873 = vst [vmem:[%s7743_s16 + $0xe8] sm:$0xff] %v3833_v50 }

</bundles_post_ra>
